<compile_context>
chip_gen: v6e
topology: v6e:2x2x1
jax: 0.10.0
libtpu: 0.0.40
codegen_flags: <defaults>
</compile_context>

<pallas_src>
import functools

import jax
import jax.numpy as jnp
from jax.experimental import pallas as pl
from jax.experimental.pallas import tpu as pltpu

_LN_EPS = 1e-5          # torch.nn.LayerNorm default


# ----------------------------- in-kernel helpers -----------------------------

def _layernorm(x, gamma, beta):
    mu = jnp.mean(x, axis=-1, keepdims=True)
    var = jnp.mean((x - mu) ** 2, axis=-1, keepdims=True)   # biased var (torch)
    return (x - mu) * jax.lax.rsqrt(var + _LN_EPS) * gamma + beta


def _erf(x):
    # Abramowitz & Stegun 7.1.26 (max abs err ~1.5e-7): exp/mul/add/select only,
    # all lower cleanly in Mosaic; matches torch's exact erf-based GELU to ~f32.
    a1, a2, a3, a4, a5 = (0.254829592, -0.284496736, 1.421413741,
                          -1.453152027, 1.061405429)
    p = 0.3275911
    sign = jnp.where(x >= 0.0, 1.0, -1.0)
    ax = jnp.abs(x)
    t = 1.0 / (1.0 + p * ax)
    poly = ((((a5 * t + a4) * t + a3) * t + a2) * t + a1) * t
    return sign * (1.0 - poly * jnp.exp(-ax * ax))


def _gelu_exact(x):
    # F.gelu default: 0.5*x*(1+erf(x/sqrt(2)))
    return 0.5 * x * (1.0 + _erf(x * 0.7071067811865476))


# ------------------------------- sub-layer math -------------------------------

def _attn_sublayer(x, ctx, ln_w, ln_b, bo, wq, wk, wv, wo, *, heads, dim_head):
    """CrossAttention(LayerNorm(x), ctx) + x.
    ctx is None => self-attention (keys/values from the normalized x, matching the
    PyTorch default(context, x) applied to the already-normalized input).
    The softmax scale is pre-folded into wq."""
    cdt = wq.dtype                                        # matmul dtype (bf16)

    xn = _layernorm(x, ln_w, ln_b)                        # f32 elementwise
    xn_c = xn.astype(cdt)
    kv_c = xn_c if ctx is None else ctx.astype(cdt)

    # Single full-lane-width projections (one MXU op each), f32 accumulation.
    q = jnp.dot(xn_c, wq, preferred_element_type=jnp.float32)
    k = jnp.dot(kv_c, wk, preferred_element_type=jnp.float32)
    v = jnp.dot(kv_c, wv, preferred_element_type=jnp.float32)

    # (n, heads*d) -> (heads, n, d): lane-aligned static slices cast straight to bf16
    # (no intermediate f32 head slab), then a leading-axis stack.
    def split_heads(t):
        return jnp.stack(
            [t[:, h * dim_head:(h + 1) * dim_head].astype(cdt) for h in range(heads)],
            axis=0)

    qh, kh, vh = split_heads(q), split_heads(k), split_heads(v)

    # One batched MXU op for all heads' scores, one for all heads' attn @ v.
    sim = jnp.einsum('hnd,hmd->hnm', qh, kh,
                     preferred_element_type=jnp.float32)            # (h, n, m)
    sim = sim - jnp.max(sim, axis=-1, keepdims=True)
    e = jnp.exp(sim)                                                # f32 softmax
    inv = pl.reciprocal(jnp.sum(e, axis=-1, keepdims=True), approx=True)
    o = jnp.einsum('hnm,hmd->hnd', e.astype(cdt), vh,
                   preferred_element_type=jnp.float32)              # (h, n, d)
    o = o * inv                                 # normalization folded after attn@v

    # Concatenate heads along lanes and do ONE to_out matmul with K = inner
    # (fills the 256-deep MXU on v6e/v7x; no per-head slab reduction).
    o_cat = jnp.concatenate([o[h].astype(cdt) for h in range(heads)], axis=-1)
    return jnp.dot(o_cat, wo, preferred_element_type=jnp.float32) + bo + x


def _ff_sublayer(x, ln_w, ln_b, b1a, b1g, b2, w1a, w1g, w2):
    """FeedForward(LayerNorm(x)) + x with GEGLU project-in; w1 pre-split into the
    'a' and 'gate' halves so both matmul outputs are clean lane-aligned slabs."""
    cdt = w1a.dtype
    xn_c = _layernorm(x, ln_w, ln_b).astype(cdt)
    a = jnp.dot(xn_c, w1a, preferred_element_type=jnp.float32) + b1a
    g = jnp.dot(xn_c, w1g, preferred_element_type=jnp.float32) + b1g
    y = (a * _gelu_exact(g)).astype(cdt)        # GEGLU elementwise kept in f32
    return jnp.dot(y, w2, preferred_element_type=jnp.float32) + b2 + x


# --------------------------------- fused kernel -------------------------------
# Packed-vector layout (prepared by prepare_params):
#   vdim (18, dim)  f32 : rows 3i..3i+2  = attn layer i (ln_w, ln_b, bo), i in 0..3
#                         rows 12+3j..   = ff   layer j (ln_w, ln_b, b2), j in 0..1
#   vff  (4, ffi)   f32 : rows 2j, 2j+1  = ff   layer j (b1a, b1g)
# Matrix refs (bf16): 4 x (wq, wk, wv, wo)  then  2 x (w1a, w1g, w2).

def _fused_block_kernel(*refs, heads, dim_head):
    x_ref, ctx_ref, vdim_ref, vff_ref = refs[0], refs[1], refs[2], refs[3]
    mats = refs[4:-2]
    out_x_ref, out_ctx_ref = refs[-2], refs[-1]

    vdim = vdim_ref[...]                       # (18, dim) f32
    vff = vff_ref[...]                         # (4, ff_inner) f32
    kw = dict(heads=heads, dim_head=dim_head)

    def attn(i, xin, ctxin):
        r = 3 * i
        ln_w, ln_b, bo = vdim[r:r + 1, :], vdim[r + 1:r + 2, :], vdim[r + 2:r + 3, :]
        wq, wk, wv, wo = (m[...] for m in mats[4 * i:4 * i + 4])
        return _attn_sublayer(xin, ctxin, ln_w, ln_b, bo, wq, wk, wv, wo, **kw)

    def ff(j, xin):
        r = 12 + 3 * j
        ln_w, ln_b, b2 = vdim[r:r + 1, :], vdim[r + 1:r + 2, :], vdim[r + 2:r + 3, :]
        b1a, b1g = vff[2 * j:2 * j + 1, :], vff[2 * j + 1:2 * j + 2, :]
        w1a, w1g, w2 = (m[...] for m in mats[16 + 3 * j:16 + 3 * j + 3])
        return _ff_sublayer(xin, ln_w, ln_b, b1a, b1g, b2, w1a, w1g, w2)

    x, ctx = x_ref[...], ctx_ref[...]
    x = attn(0, x, None)       # x   = attn1(norm1(x)) + x
    ctx = attn(1, ctx, None)   # ctx = attn_p(norm1p(ctx)) + ctx
    x = attn(2, x, ctx)        # x   = attn2(norm2(x), ctx) + x
    ctx = attn(3, ctx, x)      # ctx = attn2p(norm2p(ctx), x) + ctx
    x = ff(0, x)               # x   = ff(norm3(x)) + x
    ctx = ff(1, ctx)           # ctx = ffp(norm3p(ctx)) + ctx
    out_x_ref[...] = x
    out_ctx_ref[...] = ctx


# ---------------------------------- wrappers -----------------------------------

def prepare_params(params, n_heads, d_head, compute_dtype=jnp.bfloat16):
    """ONE-TIME weight preparation outside the hot path: transpose to (in, out),
    fold the softmax scale into wq, split the GEGLU projection into 'a'/'gate'
    halves, pack all LN / bias vectors into two stacked f32 arrays, cast matmul
    weights to bf16 (LN params and biases stay f32)."""
    scale = float(d_head) ** -0.5
    dim_rows, ff_rows, mats = [], [], []

    for name in ("attn1", "attn_p", "attn2", "attn2p"):
        p = params[name]
        dim_rows += [p["ln_w"], p["ln_b"], p["bo"]]
        mats += [(p["wq"].T * scale).astype(compute_dtype),   # scale folded pre-cast
                 p["wk"].T.astype(compute_dtype),
                 p["wv"].T.astype(compute_dtype),
                 p["wo"].T.astype(compute_dtype)]              # (inner, dim)

    for name in ("ff", "ffp"):
        p = params[name]
        ff_inner = p["w2"].shape[1]
        dim_rows += [p["ln_w"], p["ln_b"], p["b2"]]
        ff_rows += [p["b1"][:ff_inner], p["b1"][ff_inner:]]
        w1t = p["w1"].T                                        # (dim, 2*ff_inner)
        mats += [w1t[:, :ff_inner].astype(compute_dtype),
                 w1t[:, ff_inner:].astype(compute_dtype),
                 p["w2"].T.astype(compute_dtype)]

    vdim = jnp.stack([r.astype(jnp.float32) for r in dim_rows], axis=0)  # (18, dim)
    vff = jnp.stack([r.astype(jnp.float32) for r in ff_rows], axis=0)    # (4, ffi)
    return (vdim, vff) + tuple(mats)


def _vmem_limit_bytes(x, context, flat_params, n_heads, d_head):
    """Size the scoped-VMEM cap from the actual resident set (weights + both token
    streams + the peak attention/FF working set), capped at v7x's 64 MiB physical."""
    f32 = 4
    n = max(x.shape[0], context.shape[0])
    inner = n_heads * d_head
    ff_inner = flat_params[1].shape[1]
    weight_bytes = sum(int(p.size) * p.dtype.itemsize for p in flat_params)
    stream_bytes = 4 * (x.size + context.size) * f32
    attn_bytes = (6 * n * inner + 3 * n_heads * n * n + 2 * n_heads * n * d_head) * f32
    ff_bytes = 4 * n * ff_inner * f32
    est = weight_bytes + stream_bytes + attn_bytes + ff_bytes
    return int(min(max(2 * est, 32 * 1024 * 1024), 64 * 1024 * 1024))


def basic_transformer_block(x, context, flat_params, *, n_heads, d_head):
    """Fused forward of BasicTransformerBlock (context provided, context_mask=None)."""
    # TODO(synk): pad d_head to 128 in prepare_params to support d_head in {40,64,80}
    # without misaligned-lane head slices; assert loudly for now.
    assert d_head % 128 == 0, "d_head must be a multiple of 128 (lane-aligned heads)"
    # TODO(synk): production shapes need a 'parallel' query grid + flash-style KV loop
    # (split the fusion at the two cross-stream sync points into 2-3 pallas_calls) so
    # per-step VMEM stays bounded (v7x: 64 MiB) and both v7x TensorCores are used.
    kernel = functools.partial(_fused_block_kernel, heads=n_heads, dim_head=d_head)
    vmem = functools.partial(pl.BlockSpec, memory_space=pltpu.MemorySpace.VMEM)
    n_in = 2 + len(flat_params)
    return pl.pallas_call(
        kernel,
        out_shape=(jax.ShapeDtypeStruct(x.shape, jnp.float32),
                   jax.ShapeDtypeStruct(context.shape, jnp.float32)),
        in_specs=[vmem() for _ in range(n_in)],
        out_specs=(vmem(), vmem()),
        compiler_params=pltpu.CompilerParams(
            vmem_limit_bytes=_vmem_limit_bytes(x, context, flat_params,
                                               n_heads, d_head)),
    )(x, context, *flat_params)


# ------------------------- pure-JAX reference (f32) ---------------------------

def _ref_layernorm(x, g, b):
    mu = jnp.mean(x, -1, keepdims=True)
    var = jnp.mean((x - mu) ** 2, -1, keepdims=True)
    return (x - mu) / jnp.sqrt(var + _LN_EPS) * g + b


def _ref_attn(x, ctx, p, heads, dim_head):
    xn = _ref_layernorm(x, p["ln_w"], p["ln_b"])
    kv = xn if ctx is None else ctx
    q, k, v = xn @ p["wq"].T, kv @ p["wk"].T, kv @ p["wv"].T
    rs = lambda t: t.reshape(t.shape[0], heads, dim_head).transpose(1, 0, 2)
    qh, kh, vh = rs(q), rs(k), rs(v)
    sim = jnp.einsum('hid,hjd->hij', qh, kh) * dim_head ** -0.5
    attn = jax.nn.softmax(sim, axis=-1)
    o = jnp.einsum('hij,hjd->hid', attn, vh)
    o = o.transpose(1, 0, 2).reshape(x.shape[0], heads * dim_head)
    return o @ p["wo"].T + p["bo"] + x


def _ref_ff(x, p):
    xn = _ref_layernorm(x, p["ln_w"], p["ln_b"])
    h = xn @ p["w1"].T + p["b1"]
    ff_inner = p["w2"].shape[1]
    a, g = h[:, :ff_inner], h[:, ff_inner:]
    y = a * jax.nn.gelu(g, approximate=False)
    return y @ p["w2"].T + p["b2"] + x


def basic_transformer_block_ref(x, context, params, *, n_heads, d_head):
    x = _ref_attn(x, None, params["attn1"], n_heads, d_head)
    context = _ref_attn(context, None, params["attn_p"], n_heads, d_head)
    x = _ref_attn(x, context, params["attn2"], n_heads, d_head)
    context = _ref_attn(context, x, params["attn2p"], n_heads, d_head)
    x = _ref_ff(x, params["ff"])
    context = _ref_ff(context, params["ffp"])
    return x, context


# --------------------------- parameter construction ---------------------------

def init_params(key, dim, n_heads, d_head, ff_mult=4):
    """Synthetic parameters in the PyTorch (out_features, in_features) layout."""
    inner = n_heads * d_head
    ff_inner = dim * ff_mult
    ks = iter(jax.random.split(key, 64))

    def rnd(shape, scale=0.05):
        return jax.random.normal(next(ks), shape, jnp.float32) * scale

    def attn(ctx_dim):
        return dict(ln_w=1.0 + rnd((dim,)), ln_b=rnd((dim,)),
                    wq=rnd((inner, dim)),
                    wk=rnd((inner, ctx_dim)), wv=rnd((inner, ctx_dim)),
                    wo=rnd((dim, inner)), bo=rnd((dim,)))

    def ff():
        return dict(ln_w=1.0 + rnd((dim,)), ln_b=rnd((dim,)),
                    w1=rnd((2 * ff_inner, dim)), b1=rnd((2 * ff_inner,)),
                    w2=rnd((dim, ff_inner)), b2=rnd((dim,)))

    return dict(attn1=attn(dim), attn_p=attn(dim),
                attn2=attn(dim), attn2p=attn(dim),
                ff=ff(), ffp=ff())


# ------------------------------------ main ------------------------------------

if __name__ == "__main__":
    # Small but lane-aligned shapes: dim=128, inner=2*128=256, ff_inner=512.
    dim, n_heads, d_head = 128, 2, 128
    seq_x, seq_ctx = 16, 32

    key = jax.random.PRNGKey(0)
    kx, kc, kp = jax.random.split(key, 3)
    x = jax.random.normal(kx, (seq_x, dim), jnp.float32)
    context = jax.random.normal(kc, (seq_ctx, dim), jnp.float32)
    params = init_params(kp, dim, n_heads, d_head)

    # One-time weight prep (transpose / scale fold / GEGLU split / vector packing /
    # bf16 cast) outside the jitted hot path.
    flat_params = prepare_params(params, n_heads, d_head,
                                 compute_dtype=jnp.bfloat16)

    fwd = jax.jit(functools.partial(basic_transformer_block,
                                    n_heads=n_heads, d_head=d_head))
    out_x, out_ctx = fwd(x, context, flat_params)
    jax.block_until_ready((out_x, out_ctx))

    assert out_x.shape == (seq_x, dim) and out_x.dtype == jnp.float32
    assert out_ctx.shape == (seq_ctx, dim) and out_ctx.dtype == jnp.float32
    assert bool(jnp.all(jnp.isfinite(out_x))) and bool(jnp.all(jnp.isfinite(out_ctx)))

    # f32 pure-JAX reference; loose tolerance for bf16 MXU inputs + approx reciprocal.
    ref_x, ref_ctx = basic_transformer_block_ref(x, context, params,
                                                 n_heads=n_heads, d_head=d_head)
    assert jnp.allclose(out_x, ref_x, rtol=5e-2, atol=5e-2), \
        float(jnp.max(jnp.abs(out_x - ref_x)))
    assert jnp.allclose(out_ctx, ref_ctx, rtol=5e-2, atol=5e-2), \
        float(jnp.max(jnp.abs(out_ctx - ref_ctx)))

    print("KERNEL_OK")
</pallas_src>

<mosaic_0001>
module attributes {stable_mosaic.version = 11 : i64} {
  func.func @_fused_block_kernel(%arg0: memref<16x128xf32, #tpu.memory_space<vmem>>, %arg1: memref<32x128xf32, #tpu.memory_space<vmem>>, %arg2: memref<18x128xf32, #tpu.memory_space<vmem>>, %arg3: memref<4x512xf32, #tpu.memory_space<vmem>>, %arg4: memref<128x256xbf16, #tpu.memory_space<vmem>>, %arg5: memref<128x256xbf16, #tpu.memory_space<vmem>>, %arg6: memref<128x256xbf16, #tpu.memory_space<vmem>>, %arg7: memref<256x128xbf16, #tpu.memory_space<vmem>>, %arg8: memref<128x256xbf16, #tpu.memory_space<vmem>>, %arg9: memref<128x256xbf16, #tpu.memory_space<vmem>>, %arg10: memref<128x256xbf16, #tpu.memory_space<vmem>>, %arg11: memref<256x128xbf16, #tpu.memory_space<vmem>>, %arg12: memref<128x256xbf16, #tpu.memory_space<vmem>>, %arg13: memref<128x256xbf16, #tpu.memory_space<vmem>>, %arg14: memref<128x256xbf16, #tpu.memory_space<vmem>>, %arg15: memref<256x128xbf16, #tpu.memory_space<vmem>>, %arg16: memref<128x256xbf16, #tpu.memory_space<vmem>>, %arg17: memref<128x256xbf16, #tpu.memory_space<vmem>>, %arg18: memref<128x256xbf16, #tpu.memory_space<vmem>>, %arg19: memref<256x128xbf16, #tpu.memory_space<vmem>>, %arg20: memref<128x512xbf16, #tpu.memory_space<vmem>>, %arg21: memref<128x512xbf16, #tpu.memory_space<vmem>>, %arg22: memref<512x128xbf16, #tpu.memory_space<vmem>>, %arg23: memref<128x512xbf16, #tpu.memory_space<vmem>>, %arg24: memref<128x512xbf16, #tpu.memory_space<vmem>>, %arg25: memref<512x128xbf16, #tpu.memory_space<vmem>>, %arg26: memref<16x128xf32, #tpu.memory_space<vmem>>, %arg27: memref<32x128xf32, #tpu.memory_space<vmem>>) attributes {dimension_semantics = [], scalar_prefetch = 0 : i64, scratch_operands = 0 : i64, tpu.core_type = #tpu.core_type<tc>} {
    %c0 = arith.constant 0 : index
    %c0_0 = arith.constant 0 : index
    %0 = vector.load %arg2[%c0, %c0_0] : memref<18x128xf32, #tpu.memory_space<vmem>>, vector<18x128xf32>
    %c0_1 = arith.constant 0 : index
    %c0_2 = arith.constant 0 : index
    %1 = vector.load %arg3[%c0_1, %c0_2] : memref<4x512xf32, #tpu.memory_space<vmem>>, vector<4x512xf32>
    %c0_3 = arith.constant 0 : index
    %c0_4 = arith.constant 0 : index
    %2 = vector.load %arg0[%c0_3, %c0_4] : memref<16x128xf32, #tpu.memory_space<vmem>>, vector<16x128xf32>
    %c0_5 = arith.constant 0 : index
    %c0_6 = arith.constant 0 : index
    %3 = vector.load %arg1[%c0_5, %c0_6] : memref<32x128xf32, #tpu.memory_space<vmem>>, vector<32x128xf32>
    %4 = vector.extract_strided_slice %0 {offsets = [0, 0], sizes = [1, 128], strides = [1, 1]} : vector<18x128xf32> to vector<1x128xf32>
    %5 = vector.extract_strided_slice %0 {offsets = [1, 0], sizes = [1, 128], strides = [1, 1]} : vector<18x128xf32> to vector<1x128xf32>
    %6 = vector.extract_strided_slice %0 {offsets = [2, 0], sizes = [1, 128], strides = [1, 1]} : vector<18x128xf32> to vector<1x128xf32>
    %c0_7 = arith.constant 0 : index
    %c0_8 = arith.constant 0 : index
    %7 = vector.load %arg4[%c0_7, %c0_8] : memref<128x256xbf16, #tpu.memory_space<vmem>>, vector<128x256xbf16>
    %c0_9 = arith.constant 0 : index
    %c0_10 = arith.constant 0 : index
    %8 = vector.load %arg5[%c0_9, %c0_10] : memref<128x256xbf16, #tpu.memory_space<vmem>>, vector<128x256xbf16>
    %c0_11 = arith.constant 0 : index
    %c0_12 = arith.constant 0 : index
    %9 = vector.load %arg6[%c0_11, %c0_12] : memref<128x256xbf16, #tpu.memory_space<vmem>>, vector<128x256xbf16>
    %c0_13 = arith.constant 0 : index
    %c0_14 = arith.constant 0 : index
    %10 = vector.load %arg7[%c0_13, %c0_14] : memref<256x128xbf16, #tpu.memory_space<vmem>>, vector<256x128xbf16>
    %cst = arith.constant dense<0.000000e+00> : vector<16xf32>
    %11 = vector.multi_reduction <add>, %2, %cst [1] : vector<16x128xf32> to vector<16xf32>
    %12 = vector.shape_cast %11 : vector<16xf32> to vector<16x1xf32>
    %cst_15 = arith.constant 1.280000e+02 : f32
    %13 = vector.broadcast %cst_15 : f32 to vector<16x1xf32>
    %14 = arith.divf %12, %13 : vector<16x1xf32>
    %15 = vector.broadcast %14 : vector<16x1xf32> to vector<16x128xf32>
    %16 = arith.subf %2, %15 : vector<16x128xf32>
    %17 = arith.mulf %16, %16 : vector<16x128xf32>
    %cst_16 = arith.constant dense<0.000000e+00> : vector<16xf32>
    %18 = vector.multi_reduction <add>, %17, %cst_16 [1] : vector<16x128xf32> to vector<16xf32>
    %19 = vector.shape_cast %18 : vector<16xf32> to vector<16x1xf32>
    %cst_17 = arith.constant 1.280000e+02 : f32
    %20 = vector.broadcast %cst_17 : f32 to vector<16x1xf32>
    %21 = arith.divf %19, %20 : vector<16x1xf32>
    %22 = vector.broadcast %14 : vector<16x1xf32> to vector<16x128xf32>
    %23 = arith.subf %2, %22 : vector<16x128xf32>
    %cst_18 = arith.constant 9.99999974E-6 : f32
    %24 = vector.broadcast %cst_18 : f32 to vector<16x1xf32>
    %25 = arith.addf %21, %24 : vector<16x1xf32>
    %26 = math.rsqrt %25 : vector<16x1xf32>
    %27 = vector.broadcast %26 : vector<16x1xf32> to vector<16x128xf32>
    %28 = arith.mulf %23, %27 : vector<16x128xf32>
    %29 = vector.broadcast %4 : vector<1x128xf32> to vector<16x128xf32>
    %30 = arith.mulf %28, %29 : vector<16x128xf32>
    %31 = vector.broadcast %5 : vector<1x128xf32> to vector<16x128xf32>
    %32 = arith.addf %30, %31 : vector<16x128xf32>
    %33 = arith.truncf %32 : vector<16x128xf32> to vector<16x128xbf16>
    %cst_19 = arith.constant dense<0.000000e+00> : vector<16x256xf32>
    %34 = tpu.matmul %33, %7, %cst_19 {dimension_numbers = #tpu.dot_dimension_numbers<[1], [0], [0], [1], [0, 0, 1, 1], [], []>} : vector<16x128xbf16>, vector<128x256xbf16>, vector<16x256xf32> -> vector<16x256xf32>
    %cst_20 = arith.constant dense<0.000000e+00> : vector<16x256xf32>
    %35 = tpu.matmul %33, %8, %cst_20 {dimension_numbers = #tpu.dot_dimension_numbers<[1], [0], [0], [1], [0, 0, 1, 1], [], []>} : vector<16x128xbf16>, vector<128x256xbf16>, vector<16x256xf32> -> vector<16x256xf32>
    %cst_21 = arith.constant dense<0.000000e+00> : vector<16x256xf32>
    %36 = tpu.matmul %33, %9, %cst_21 {dimension_numbers = #tpu.dot_dimension_numbers<[1], [0], [0], [1], [0, 0, 1, 1], [], []>} : vector<16x128xbf16>, vector<128x256xbf16>, vector<16x256xf32> -> vector<16x256xf32>
    %37 = vector.extract_strided_slice %34 {offsets = [0, 0], sizes = [16, 128], strides = [1, 1]} : vector<16x256xf32> to vector<16x128xf32>
    %38 = arith.truncf %37 : vector<16x128xf32> to vector<16x128xbf16>
    %39 = vector.extract_strided_slice %34 {offsets = [0, 128], sizes = [16, 128], strides = [1, 1]} : vector<16x256xf32> to vector<16x128xf32>
    %40 = arith.truncf %39 : vector<16x128xf32> to vector<16x128xbf16>
    %41 = vector.shape_cast %38 : vector<16x128xbf16> to vector<1x16x128xbf16>
    %42 = vector.shape_cast %40 : vector<16x128xbf16> to vector<1x16x128xbf16>
    %43 = tpu.concatenate %41, %42 in 0 : vector<1x16x128xbf16>, vector<1x16x128xbf16> -> vector<2x16x128xbf16>
    %44 = vector.extract_strided_slice %35 {offsets = [0, 0], sizes = [16, 128], strides = [1, 1]} : vector<16x256xf32> to vector<16x128xf32>
    %45 = arith.truncf %44 : vector<16x128xf32> to vector<16x128xbf16>
    %46 = vector.extract_strided_slice %35 {offsets = [0, 128], sizes = [16, 128], strides = [1, 1]} : vector<16x256xf32> to vector<16x128xf32>
    %47 = arith.truncf %46 : vector<16x128xf32> to vector<16x128xbf16>
    %48 = vector.shape_cast %45 : vector<16x128xbf16> to vector<1x16x128xbf16>
    %49 = vector.shape_cast %47 : vector<16x128xbf16> to vector<1x16x128xbf16>
    %50 = tpu.concatenate %48, %49 in 0 : vector<1x16x128xbf16>, vector<1x16x128xbf16> -> vector<2x16x128xbf16>
    %51 = vector.extract_strided_slice %36 {offsets = [0, 0], sizes = [16, 128], strides = [1, 1]} : vector<16x256xf32> to vector<16x128xf32>
    %52 = arith.truncf %51 : vector<16x128xf32> to vector<16x128xbf16>
    %53 = vector.extract_strided_slice %36 {offsets = [0, 128], sizes = [16, 128], strides = [1, 1]} : vector<16x256xf32> to vector<16x128xf32>
    %54 = arith.truncf %53 : vector<16x128xf32> to vector<16x128xbf16>
    %55 = vector.shape_cast %52 : vector<16x128xbf16> to vector<1x16x128xbf16>
    %56 = vector.shape_cast %54 : vector<16x128xbf16> to vector<1x16x128xbf16>
    %57 = tpu.concatenate %55, %56 in 0 : vector<1x16x128xbf16>, vector<1x16x128xbf16> -> vector<2x16x128xbf16>
    "tpu.trace_start"() <{level = 10 : i32, message = "hnd,hmd->hnm"}> : () -> ()
    %cst_22 = arith.constant dense<0.000000e+00> : vector<2x16x16xf32>
    %58 = tpu.matmul %43, %50, %cst_22 {dimension_numbers = #tpu.dot_dimension_numbers<[2], [2], [1], [1], [0, 0, 0, 1, 1, 1], [0], [0]>} : vector<2x16x128xbf16>, vector<2x16x128xbf16>, vector<2x16x16xf32> -> vector<2x16x16xf32>
    "tpu.trace_stop"() : () -> ()
    %cst_23 = arith.constant dense<0xFF800000> : vector<2x16xf32>
    %59 = vector.multi_reduction <maximumf>, %58, %cst_23 [2] : vector<2x16x16xf32> to vector<2x16xf32>
    %60 = vector.shape_cast %59 : vector<2x16xf32> to vector<2x16x1xf32>
    %61 = vector.broadcast %60 : vector<2x16x1xf32> to vector<2x16x16xf32>
    %62 = arith.subf %58, %61 : vector<2x16x16xf32>
    %63 = math.exp %62 : vector<2x16x16xf32>
    %cst_24 = arith.constant dense<0.000000e+00> : vector<2x16xf32>
    %64 = vector.multi_reduction <add>, %63, %cst_24 [2] : vector<2x16x16xf32> to vector<2x16xf32>
    %65 = vector.shape_cast %64 : vector<2x16xf32> to vector<2x16x1xf32>
    %66 = tpu.reciprocal %65 {approx = true} : vector<2x16x1xf32> -> vector<2x16x1xf32>
    %67 = arith.truncf %63 : vector<2x16x16xf32> to vector<2x16x16xbf16>
    "tpu.trace_start"() <{level = 10 : i32, message = "hnm,hmd->hnd"}> : () -> ()
    %cst_25 = arith.constant dense<0.000000e+00> : vector<2x16x128xf32>
    %68 = tpu.matmul %67, %57, %cst_25 {dimension_numbers = #tpu.dot_dimension_numbers<[2], [1], [1], [2], [0, 0, 0, 1, 1, 2], [0], [0]>} : vector<2x16x16xbf16>, vector<2x16x128xbf16>, vector<2x16x128xf32> -> vector<2x16x128xf32>
    "tpu.trace_stop"() : () -> ()
    %69 = vector.broadcast %66 : vector<2x16x1xf32> to vector<2x16x128xf32>
    %70 = arith.mulf %68, %69 : vector<2x16x128xf32>
    %71 = vector.extract_strided_slice %70 {offsets = [0, 0, 0], sizes = [1, 16, 128], strides = [1, 1, 1]} : vector<2x16x128xf32> to vector<1x16x128xf32>
    %72 = vector.shape_cast %71 : vector<1x16x128xf32> to vector<16x128xf32>
    %73 = arith.truncf %72 : vector<16x128xf32> to vector<16x128xbf16>
    %74 = vector.extract_strided_slice %70 {offsets = [1, 0, 0], sizes = [1, 16, 128], strides = [1, 1, 1]} : vector<2x16x128xf32> to vector<1x16x128xf32>
    %75 = vector.shape_cast %74 : vector<1x16x128xf32> to vector<16x128xf32>
    %76 = arith.truncf %75 : vector<16x128xf32> to vector<16x128xbf16>
    %77 = tpu.concatenate %73, %76 in 1 : vector<16x128xbf16>, vector<16x128xbf16> -> vector<16x256xbf16>
    %cst_26 = arith.constant dense<0.000000e+00> : vector<16x128xf32>
    %78 = tpu.matmul %77, %10, %cst_26 {dimension_numbers = #tpu.dot_dimension_numbers<[1], [0], [0], [1], [0, 0, 1, 1], [], []>} : vector<16x256xbf16>, vector<256x128xbf16>, vector<16x128xf32> -> vector<16x128xf32>
    %79 = vector.broadcast %6 : vector<1x128xf32> to vector<16x128xf32>
    %80 = arith.addf %78, %79 : vector<16x128xf32>
    %81 = arith.addf %80, %2 : vector<16x128xf32>
    %82 = vector.extract_strided_slice %0 {offsets = [3, 0], sizes = [1, 128], strides = [1, 1]} : vector<18x128xf32> to vector<1x128xf32>
    %83 = vector.extract_strided_slice %0 {offsets = [4, 0], sizes = [1, 128], strides = [1, 1]} : vector<18x128xf32> to vector<1x128xf32>
    %84 = vector.extract_strided_slice %0 {offsets = [5, 0], sizes = [1, 128], strides = [1, 1]} : vector<18x128xf32> to vector<1x128xf32>
    %c0_27 = arith.constant 0 : index
    %c0_28 = arith.constant 0 : index
    %85 = vector.load %arg8[%c0_27, %c0_28] : memref<128x256xbf16, #tpu.memory_space<vmem>>, vector<128x256xbf16>
    %c0_29 = arith.constant 0 : index
    %c0_30 = arith.constant 0 : index
    %86 = vector.load %arg9[%c0_29, %c0_30] : memref<128x256xbf16, #tpu.memory_space<vmem>>, vector<128x256xbf16>
    %c0_31 = arith.constant 0 : index
    %c0_32 = arith.constant 0 : index
    %87 = vector.load %arg10[%c0_31, %c0_32] : memref<128x256xbf16, #tpu.memory_space<vmem>>, vector<128x256xbf16>
    %c0_33 = arith.constant 0 : index
    %c0_34 = arith.constant 0 : index
    %88 = vector.load %arg11[%c0_33, %c0_34] : memref<256x128xbf16, #tpu.memory_space<vmem>>, vector<256x128xbf16>
    %cst_35 = arith.constant dense<0.000000e+00> : vector<32xf32>
    %89 = vector.multi_reduction <add>, %3, %cst_35 [1] : vector<32x128xf32> to vector<32xf32>
    %90 = vector.shape_cast %89 : vector<32xf32> to vector<32x1xf32>
    %cst_36 = arith.constant 1.280000e+02 : f32
    %91 = vector.broadcast %cst_36 : f32 to vector<32x1xf32>
    %92 = arith.divf %90, %91 : vector<32x1xf32>
    %93 = vector.broadcast %92 : vector<32x1xf32> to vector<32x128xf32>
    %94 = arith.subf %3, %93 : vector<32x128xf32>
    %95 = arith.mulf %94, %94 : vector<32x128xf32>
    %cst_37 = arith.constant dense<0.000000e+00> : vector<32xf32>
    %96 = vector.multi_reduction <add>, %95, %cst_37 [1] : vector<32x128xf32> to vector<32xf32>
    %97 = vector.shape_cast %96 : vector<32xf32> to vector<32x1xf32>
    %cst_38 = arith.constant 1.280000e+02 : f32
    %98 = vector.broadcast %cst_38 : f32 to vector<32x1xf32>
    %99 = arith.divf %97, %98 : vector<32x1xf32>
    %100 = vector.broadcast %92 : vector<32x1xf32> to vector<32x128xf32>
    %101 = arith.subf %3, %100 : vector<32x128xf32>
    %cst_39 = arith.constant 9.99999974E-6 : f32
    %102 = vector.broadcast %cst_39 : f32 to vector<32x1xf32>
    %103 = arith.addf %99, %102 : vector<32x1xf32>
    %104 = math.rsqrt %103 : vector<32x1xf32>
    %105 = vector.broadcast %104 : vector<32x1xf32> to vector<32x128xf32>
    %106 = arith.mulf %101, %105 : vector<32x128xf32>
    %107 = vector.broadcast %82 : vector<1x128xf32> to vector<32x128xf32>
    %108 = arith.mulf %106, %107 : vector<32x128xf32>
    %109 = vector.broadcast %83 : vector<1x128xf32> to vector<32x128xf32>
    %110 = arith.addf %108, %109 : vector<32x128xf32>
    %111 = arith.truncf %110 : vector<32x128xf32> to vector<32x128xbf16>
    %cst_40 = arith.constant dense<0.000000e+00> : vector<32x256xf32>
    %112 = tpu.matmul %111, %85, %cst_40 {dimension_numbers = #tpu.dot_dimension_numbers<[1], [0], [0], [1], [0, 0, 1, 1], [], []>} : vector<32x128xbf16>, vector<128x256xbf16>, vector<32x256xf32> -> vector<32x256xf32>
    %cst_41 = arith.constant dense<0.000000e+00> : vector<32x256xf32>
    %113 = tpu.matmul %111, %86, %cst_41 {dimension_numbers = #tpu.dot_dimension_numbers<[1], [0], [0], [1], [0, 0, 1, 1], [], []>} : vector<32x128xbf16>, vector<128x256xbf16>, vector<32x256xf32> -> vector<32x256xf32>
    %cst_42 = arith.constant dense<0.000000e+00> : vector<32x256xf32>
    %114 = tpu.matmul %111, %87, %cst_42 {dimension_numbers = #tpu.dot_dimension_numbers<[1], [0], [0], [1], [0, 0, 1, 1], [], []>} : vector<32x128xbf16>, vector<128x256xbf16>, vector<32x256xf32> -> vector<32x256xf32>
    %115 = vector.extract_strided_slice %112 {offsets = [0, 0], sizes = [32, 128], strides = [1, 1]} : vector<32x256xf32> to vector<32x128xf32>
    %116 = arith.truncf %115 : vector<32x128xf32> to vector<32x128xbf16>
    %117 = vector.extract_strided_slice %112 {offsets = [0, 128], sizes = [32, 128], strides = [1, 1]} : vector<32x256xf32> to vector<32x128xf32>
    %118 = arith.truncf %117 : vector<32x128xf32> to vector<32x128xbf16>
    %119 = vector.shape_cast %116 : vector<32x128xbf16> to vector<1x32x128xbf16>
    %120 = vector.shape_cast %118 : vector<32x128xbf16> to vector<1x32x128xbf16>
    %121 = tpu.concatenate %119, %120 in 0 : vector<1x32x128xbf16>, vector<1x32x128xbf16> -> vector<2x32x128xbf16>
    %122 = vector.extract_strided_slice %113 {offsets = [0, 0], sizes = [32, 128], strides = [1, 1]} : vector<32x256xf32> to vector<32x128xf32>
    %123 = arith.truncf %122 : vector<32x128xf32> to vector<32x128xbf16>
    %124 = vector.extract_strided_slice %113 {offsets = [0, 128], sizes = [32, 128], strides = [1, 1]} : vector<32x256xf32> to vector<32x128xf32>
    %125 = arith.truncf %124 : vector<32x128xf32> to vector<32x128xbf16>
    %126 = vector.shape_cast %123 : vector<32x128xbf16> to vector<1x32x128xbf16>
    %127 = vector.shape_cast %125 : vector<32x128xbf16> to vector<1x32x128xbf16>
    %128 = tpu.concatenate %126, %127 in 0 : vector<1x32x128xbf16>, vector<1x32x128xbf16> -> vector<2x32x128xbf16>
    %129 = vector.extract_strided_slice %114 {offsets = [0, 0], sizes = [32, 128], strides = [1, 1]} : vector<32x256xf32> to vector<32x128xf32>
    %130 = arith.truncf %129 : vector<32x128xf32> to vector<32x128xbf16>
    %131 = vector.extract_strided_slice %114 {offsets = [0, 128], sizes = [32, 128], strides = [1, 1]} : vector<32x256xf32> to vector<32x128xf32>
    %132 = arith.truncf %131 : vector<32x128xf32> to vector<32x128xbf16>
    %133 = vector.shape_cast %130 : vector<32x128xbf16> to vector<1x32x128xbf16>
    %134 = vector.shape_cast %132 : vector<32x128xbf16> to vector<1x32x128xbf16>
    %135 = tpu.concatenate %133, %134 in 0 : vector<1x32x128xbf16>, vector<1x32x128xbf16> -> vector<2x32x128xbf16>
    "tpu.trace_start"() <{level = 10 : i32, message = "hnd,hmd->hnm"}> : () -> ()
    %cst_43 = arith.constant dense<0.000000e+00> : vector<2x32x32xf32>
    %136 = tpu.matmul %121, %128, %cst_43 {dimension_numbers = #tpu.dot_dimension_numbers<[2], [2], [1], [1], [0, 0, 0, 1, 1, 1], [0], [0]>} : vector<2x32x128xbf16>, vector<2x32x128xbf16>, vector<2x32x32xf32> -> vector<2x32x32xf32>
    "tpu.trace_stop"() : () -> ()
    %cst_44 = arith.constant dense<0xFF800000> : vector<2x32xf32>
    %137 = vector.multi_reduction <maximumf>, %136, %cst_44 [2] : vector<2x32x32xf32> to vector<2x32xf32>
    %138 = vector.shape_cast %137 : vector<2x32xf32> to vector<2x32x1xf32>
    %139 = vector.broadcast %138 : vector<2x32x1xf32> to vector<2x32x32xf32>
    %140 = arith.subf %136, %139 : vector<2x32x32xf32>
    %141 = math.exp %140 : vector<2x32x32xf32>
    %cst_45 = arith.constant dense<0.000000e+00> : vector<2x32xf32>
    %142 = vector.multi_reduction <add>, %141, %cst_45 [2] : vector<2x32x32xf32> to vector<2x32xf32>
    %143 = vector.shape_cast %142 : vector<2x32xf32> to vector<2x32x1xf32>
    %144 = tpu.reciprocal %143 {approx = true} : vector<2x32x1xf32> -> vector<2x32x1xf32>
    %145 = arith.truncf %141 : vector<2x32x32xf32> to vector<2x32x32xbf16>
    "tpu.trace_start"() <{level = 10 : i32, message = "hnm,hmd->hnd"}> : () -> ()
    %cst_46 = arith.constant dense<0.000000e+00> : vector<2x32x128xf32>
    %146 = tpu.matmul %145, %135, %cst_46 {dimension_numbers = #tpu.dot_dimension_numbers<[2], [1], [1], [2], [0, 0, 0, 1, 1, 2], [0], [0]>} : vector<2x32x32xbf16>, vector<2x32x128xbf16>, vector<2x32x128xf32> -> vector<2x32x128xf32>
    "tpu.trace_stop"() : () -> ()
    %147 = vector.broadcast %144 : vector<2x32x1xf32> to vector<2x32x128xf32>
    %148 = arith.mulf %146, %147 : vector<2x32x128xf32>
    %149 = vector.extract_strided_slice %148 {offsets = [0, 0, 0], sizes = [1, 32, 128], strides = [1, 1, 1]} : vector<2x32x128xf32> to vector<1x32x128xf32>
    %150 = vector.shape_cast %149 : vector<1x32x128xf32> to vector<32x128xf32>
    %151 = arith.truncf %150 : vector<32x128xf32> to vector<32x128xbf16>
    %152 = vector.extract_strided_slice %148 {offsets = [1, 0, 0], sizes = [1, 32, 128], strides = [1, 1, 1]} : vector<2x32x128xf32> to vector<1x32x128xf32>
    %153 = vector.shape_cast %152 : vector<1x32x128xf32> to vector<32x128xf32>
    %154 = arith.truncf %153 : vector<32x128xf32> to vector<32x128xbf16>
    %155 = tpu.concatenate %151, %154 in 1 : vector<32x128xbf16>, vector<32x128xbf16> -> vector<32x256xbf16>
    %cst_47 = arith.constant dense<0.000000e+00> : vector<32x128xf32>
    %156 = tpu.matmul %155, %88, %cst_47 {dimension_numbers = #tpu.dot_dimension_numbers<[1], [0], [0], [1], [0, 0, 1, 1], [], []>} : vector<32x256xbf16>, vector<256x128xbf16>, vector<32x128xf32> -> vector<32x128xf32>
    %157 = vector.broadcast %84 : vector<1x128xf32> to vector<32x128xf32>
    %158 = arith.addf %156, %157 : vector<32x128xf32>
    %159 = arith.addf %158, %3 : vector<32x128xf32>
    %160 = vector.extract_strided_slice %0 {offsets = [6, 0], sizes = [1, 128], strides = [1, 1]} : vector<18x128xf32> to vector<1x128xf32>
    %161 = vector.extract_strided_slice %0 {offsets = [7, 0], sizes = [1, 128], strides = [1, 1]} : vector<18x128xf32> to vector<1x128xf32>
    %162 = vector.extract_strided_slice %0 {offsets = [8, 0], sizes = [1, 128], strides = [1, 1]} : vector<18x128xf32> to vector<1x128xf32>
    %c0_48 = arith.constant 0 : index
    %c0_49 = arith.constant 0 : index
    %163 = vector.load %arg12[%c0_48, %c0_49] : memref<128x256xbf16, #tpu.memory_space<vmem>>, vector<128x256xbf16>
    %c0_50 = arith.constant 0 : index
    %c0_51 = arith.constant 0 : index
    %164 = vector.load %arg13[%c0_50, %c0_51] : memref<128x256xbf16, #tpu.memory_space<vmem>>, vector<128x256xbf16>
    %c0_52 = arith.constant 0 : index
    %c0_53 = arith.constant 0 : index
    %165 = vector.load %arg14[%c0_52, %c0_53] : memref<128x256xbf16, #tpu.memory_space<vmem>>, vector<128x256xbf16>
    %c0_54 = arith.constant 0 : index
    %c0_55 = arith.constant 0 : index
    %166 = vector.load %arg15[%c0_54, %c0_55] : memref<256x128xbf16, #tpu.memory_space<vmem>>, vector<256x128xbf16>
    %cst_56 = arith.constant dense<0.000000e+00> : vector<16xf32>
    %167 = vector.multi_reduction <add>, %81, %cst_56 [1] : vector<16x128xf32> to vector<16xf32>
    %168 = vector.shape_cast %167 : vector<16xf32> to vector<16x1xf32>
    %cst_57 = arith.constant 1.280000e+02 : f32
    %169 = vector.broadcast %cst_57 : f32 to vector<16x1xf32>
    %170 = arith.divf %168, %169 : vector<16x1xf32>
    %171 = vector.broadcast %170 : vector<16x1xf32> to vector<16x128xf32>
    %172 = arith.subf %81, %171 : vector<16x128xf32>
    %173 = arith.mulf %172, %172 : vector<16x128xf32>
    %cst_58 = arith.constant dense<0.000000e+00> : vector<16xf32>
    %174 = vector.multi_reduction <add>, %173, %cst_58 [1] : vector<16x128xf32> to vector<16xf32>
    %175 = vector.shape_cast %174 : vector<16xf32> to vector<16x1xf32>
    %cst_59 = arith.constant 1.280000e+02 : f32
    %176 = vector.broadcast %cst_59 : f32 to vector<16x1xf32>
    %177 = arith.divf %175, %176 : vector<16x1xf32>
    %178 = vector.broadcast %170 : vector<16x1xf32> to vector<16x128xf32>
    %179 = arith.subf %81, %178 : vector<16x128xf32>
    %cst_60 = arith.constant 9.99999974E-6 : f32
    %180 = vector.broadcast %cst_60 : f32 to vector<16x1xf32>
    %181 = arith.addf %177, %180 : vector<16x1xf32>
    %182 = math.rsqrt %181 : vector<16x1xf32>
    %183 = vector.broadcast %182 : vector<16x1xf32> to vector<16x128xf32>
    %184 = arith.mulf %179, %183 : vector<16x128xf32>
    %185 = vector.broadcast %160 : vector<1x128xf32> to vector<16x128xf32>
    %186 = arith.mulf %184, %185 : vector<16x128xf32>
    %187 = vector.broadcast %161 : vector<1x128xf32> to vector<16x128xf32>
    %188 = arith.addf %186, %187 : vector<16x128xf32>
    %189 = arith.truncf %188 : vector<16x128xf32> to vector<16x128xbf16>
    %190 = arith.truncf %159 : vector<32x128xf32> to vector<32x128xbf16>
    %cst_61 = arith.constant dense<0.000000e+00> : vector<16x256xf32>
    %191 = tpu.matmul %189, %163, %cst_61 {dimension_numbers = #tpu.dot_dimension_numbers<[1], [0], [0], [1], [0, 0, 1, 1], [], []>} : vector<16x128xbf16>, vector<128x256xbf16>, vector<16x256xf32> -> vector<16x256xf32>
    %cst_62 = arith.constant dense<0.000000e+00> : vector<32x256xf32>
    %192 = tpu.matmul %190, %164, %cst_62 {dimension_numbers = #tpu.dot_dimension_numbers<[1], [0], [0], [1], [0, 0, 1, 1], [], []>} : vector<32x128xbf16>, vector<128x256xbf16>, vector<32x256xf32> -> vector<32x256xf32>
    %cst_63 = arith.constant dense<0.000000e+00> : vector<32x256xf32>
    %193 = tpu.matmul %190, %165, %cst_63 {dimension_numbers = #tpu.dot_dimension_numbers<[1], [0], [0], [1], [0, 0, 1, 1], [], []>} : vector<32x128xbf16>, vector<128x256xbf16>, vector<32x256xf32> -> vector<32x256xf32>
    %194 = vector.extract_strided_slice %191 {offsets = [0, 0], sizes = [16, 128], strides = [1, 1]} : vector<16x256xf32> to vector<16x128xf32>
    %195 = arith.truncf %194 : vector<16x128xf32> to vector<16x128xbf16>
    %196 = vector.extract_strided_slice %191 {offsets = [0, 128], sizes = [16, 128], strides = [1, 1]} : vector<16x256xf32> to vector<16x128xf32>
    %197 = arith.truncf %196 : vector<16x128xf32> to vector<16x128xbf16>
    %198 = vector.shape_cast %195 : vector<16x128xbf16> to vector<1x16x128xbf16>
    %199 = vector.shape_cast %197 : vector<16x128xbf16> to vector<1x16x128xbf16>
    %200 = tpu.concatenate %198, %199 in 0 : vector<1x16x128xbf16>, vector<1x16x128xbf16> -> vector<2x16x128xbf16>
    %201 = vector.extract_strided_slice %192 {offsets = [0, 0], sizes = [32, 128], strides = [1, 1]} : vector<32x256xf32> to vector<32x128xf32>
    %202 = arith.truncf %201 : vector<32x128xf32> to vector<32x128xbf16>
    %203 = vector.extract_strided_slice %192 {offsets = [0, 128], sizes = [32, 128], strides = [1, 1]} : vector<32x256xf32> to vector<32x128xf32>
    %204 = arith.truncf %203 : vector<32x128xf32> to vector<32x128xbf16>
    %205 = vector.shape_cast %202 : vector<32x128xbf16> to vector<1x32x128xbf16>
    %206 = vector.shape_cast %204 : vector<32x128xbf16> to vector<1x32x128xbf16>
    %207 = tpu.concatenate %205, %206 in 0 : vector<1x32x128xbf16>, vector<1x32x128xbf16> -> vector<2x32x128xbf16>
    %208 = vector.extract_strided_slice %193 {offsets = [0, 0], sizes = [32, 128], strides = [1, 1]} : vector<32x256xf32> to vector<32x128xf32>
    %209 = arith.truncf %208 : vector<32x128xf32> to vector<32x128xbf16>
    %210 = vector.extract_strided_slice %193 {offsets = [0, 128], sizes = [32, 128], strides = [1, 1]} : vector<32x256xf32> to vector<32x128xf32>
    %211 = arith.truncf %210 : vector<32x128xf32> to vector<32x128xbf16>
    %212 = vector.shape_cast %209 : vector<32x128xbf16> to vector<1x32x128xbf16>
    %213 = vector.shape_cast %211 : vector<32x128xbf16> to vector<1x32x128xbf16>
    %214 = tpu.concatenate %212, %213 in 0 : vector<1x32x128xbf16>, vector<1x32x128xbf16> -> vector<2x32x128xbf16>
    "tpu.trace_start"() <{level = 10 : i32, message = "hnd,hmd->hnm"}> : () -> ()
    %cst_64 = arith.constant dense<0.000000e+00> : vector<2x16x32xf32>
    %215 = tpu.matmul %200, %207, %cst_64 {dimension_numbers = #tpu.dot_dimension_numbers<[2], [2], [1], [1], [0, 0, 0, 1, 1, 1], [0], [0]>} : vector<2x16x128xbf16>, vector<2x32x128xbf16>, vector<2x16x32xf32> -> vector<2x16x32xf32>
    "tpu.trace_stop"() : () -> ()
    %cst_65 = arith.constant dense<0xFF800000> : vector<2x16xf32>
    %216 = vector.multi_reduction <maximumf>, %215, %cst_65 [2] : vector<2x16x32xf32> to vector<2x16xf32>
    %217 = vector.shape_cast %216 : vector<2x16xf32> to vector<2x16x1xf32>
    %218 = vector.broadcast %217 : vector<2x16x1xf32> to vector<2x16x32xf32>
    %219 = arith.subf %215, %218 : vector<2x16x32xf32>
    %220 = math.exp %219 : vector<2x16x32xf32>
    %cst_66 = arith.constant dense<0.000000e+00> : vector<2x16xf32>
    %221 = vector.multi_reduction <add>, %220, %cst_66 [2] : vector<2x16x32xf32> to vector<2x16xf32>
    %222 = vector.shape_cast %221 : vector<2x16xf32> to vector<2x16x1xf32>
    %223 = tpu.reciprocal %222 {approx = true} : vector<2x16x1xf32> -> vector<2x16x1xf32>
    %224 = arith.truncf %220 : vector<2x16x32xf32> to vector<2x16x32xbf16>
    "tpu.trace_start"() <{level = 10 : i32, message = "hnm,hmd->hnd"}> : () -> ()
    %cst_67 = arith.constant dense<0.000000e+00> : vector<2x16x128xf32>
    %225 = tpu.matmul %224, %214, %cst_67 {dimension_numbers = #tpu.dot_dimension_numbers<[2], [1], [1], [2], [0, 0, 0, 1, 1, 2], [0], [0]>} : vector<2x16x32xbf16>, vector<2x32x128xbf16>, vector<2x16x128xf32> -> vector<2x16x128xf32>
    "tpu.trace_stop"() : () -> ()
    %226 = vector.broadcast %223 : vector<2x16x1xf32> to vector<2x16x128xf32>
    %227 = arith.mulf %225, %226 : vector<2x16x128xf32>
    %228 = vector.extract_strided_slice %227 {offsets = [0, 0, 0], sizes = [1, 16, 128], strides = [1, 1, 1]} : vector<2x16x128xf32> to vector<1x16x128xf32>
    %229 = vector.shape_cast %228 : vector<1x16x128xf32> to vector<16x128xf32>
    %230 = arith.truncf %229 : vector<16x128xf32> to vector<16x128xbf16>
    %231 = vector.extract_strided_slice %227 {offsets = [1, 0, 0], sizes = [1, 16, 128], strides = [1, 1, 1]} : vector<2x16x128xf32> to vector<1x16x128xf32>
    %232 = vector.shape_cast %231 : vector<1x16x128xf32> to vector<16x128xf32>
    %233 = arith.truncf %232 : vector<16x128xf32> to vector<16x128xbf16>
    %234 = tpu.concatenate %230, %233 in 1 : vector<16x128xbf16>, vector<16x128xbf16> -> vector<16x256xbf16>
    %cst_68 = arith.constant dense<0.000000e+00> : vector<16x128xf32>
    %235 = tpu.matmul %234, %166, %cst_68 {dimension_numbers = #tpu.dot_dimension_numbers<[1], [0], [0], [1], [0, 0, 1, 1], [], []>} : vector<16x256xbf16>, vector<256x128xbf16>, vector<16x128xf32> -> vector<16x128xf32>
    %236 = vector.broadcast %162 : vector<1x128xf32> to vector<16x128xf32>
    %237 = arith.addf %235, %236 : vector<16x128xf32>
    %238 = arith.addf %237, %81 : vector<16x128xf32>
    %239 = vector.extract_strided_slice %0 {offsets = [9, 0], sizes = [1, 128], strides = [1, 1]} : vector<18x128xf32> to vector<1x128xf32>
    %240 = vector.extract_strided_slice %0 {offsets = [10, 0], sizes = [1, 128], strides = [1, 1]} : vector<18x128xf32> to vector<1x128xf32>
    %241 = vector.extract_strided_slice %0 {offsets = [11, 0], sizes = [1, 128], strides = [1, 1]} : vector<18x128xf32> to vector<1x128xf32>
    %c0_69 = arith.constant 0 : index
    %c0_70 = arith.constant 0 : index
    %242 = vector.load %arg16[%c0_69, %c0_70] : memref<128x256xbf16, #tpu.memory_space<vmem>>, vector<128x256xbf16>
    %c0_71 = arith.constant 0 : index
    %c0_72 = arith.constant 0 : index
    %243 = vector.load %arg17[%c0_71, %c0_72] : memref<128x256xbf16, #tpu.memory_space<vmem>>, vector<128x256xbf16>
    %c0_73 = arith.constant 0 : index
    %c0_74 = arith.constant 0 : index
    %244 = vector.load %arg18[%c0_73, %c0_74] : memref<128x256xbf16, #tpu.memory_space<vmem>>, vector<128x256xbf16>
    %c0_75 = arith.constant 0 : index
    %c0_76 = arith.constant 0 : index
    %245 = vector.load %arg19[%c0_75, %c0_76] : memref<256x128xbf16, #tpu.memory_space<vmem>>, vector<256x128xbf16>
    %cst_77 = arith.constant dense<0.000000e+00> : vector<32xf32>
    %246 = vector.multi_reduction <add>, %159, %cst_77 [1] : vector<32x128xf32> to vector<32xf32>
    %247 = vector.shape_cast %246 : vector<32xf32> to vector<32x1xf32>
    %cst_78 = arith.constant 1.280000e+02 : f32
    %248 = vector.broadcast %cst_78 : f32 to vector<32x1xf32>
    %249 = arith.divf %247, %248 : vector<32x1xf32>
    %250 = vector.broadcast %249 : vector<32x1xf32> to vector<32x128xf32>
    %251 = arith.subf %159, %250 : vector<32x128xf32>
    %252 = arith.mulf %251, %251 : vector<32x128xf32>
    %cst_79 = arith.constant dense<0.000000e+00> : vector<32xf32>
    %253 = vector.multi_reduction <add>, %252, %cst_79 [1] : vector<32x128xf32> to vector<32xf32>
    %254 = vector.shape_cast %253 : vector<32xf32> to vector<32x1xf32>
    %cst_80 = arith.constant 1.280000e+02 : f32
    %255 = vector.broadcast %cst_80 : f32 to vector<32x1xf32>
    %256 = arith.divf %254, %255 : vector<32x1xf32>
    %257 = vector.broadcast %249 : vector<32x1xf32> to vector<32x128xf32>
    %258 = arith.subf %159, %257 : vector<32x128xf32>
    %cst_81 = arith.constant 9.99999974E-6 : f32
    %259 = vector.broadcast %cst_81 : f32 to vector<32x1xf32>
    %260 = arith.addf %256, %259 : vector<32x1xf32>
    %261 = math.rsqrt %260 : vector<32x1xf32>
    %262 = vector.broadcast %261 : vector<32x1xf32> to vector<32x128xf32>
    %263 = arith.mulf %258, %262 : vector<32x128xf32>
    %264 = vector.broadcast %239 : vector<1x128xf32> to vector<32x128xf32>
    %265 = arith.mulf %263, %264 : vector<32x128xf32>
    %266 = vector.broadcast %240 : vector<1x128xf32> to vector<32x128xf32>
    %267 = arith.addf %265, %266 : vector<32x128xf32>
    %268 = arith.truncf %267 : vector<32x128xf32> to vector<32x128xbf16>
    %269 = arith.truncf %238 : vector<16x128xf32> to vector<16x128xbf16>
    %cst_82 = arith.constant dense<0.000000e+00> : vector<32x256xf32>
    %270 = tpu.matmul %268, %242, %cst_82 {dimension_numbers = #tpu.dot_dimension_numbers<[1], [0], [0], [1], [0, 0, 1, 1], [], []>} : vector<32x128xbf16>, vector<128x256xbf16>, vector<32x256xf32> -> vector<32x256xf32>
    %cst_83 = arith.constant dense<0.000000e+00> : vector<16x256xf32>
    %271 = tpu.matmul %269, %243, %cst_83 {dimension_numbers = #tpu.dot_dimension_numbers<[1], [0], [0], [1], [0, 0, 1, 1], [], []>} : vector<16x128xbf16>, vector<128x256xbf16>, vector<16x256xf32> -> vector<16x256xf32>
    %cst_84 = arith.constant dense<0.000000e+00> : vector<16x256xf32>
    %272 = tpu.matmul %269, %244, %cst_84 {dimension_numbers = #tpu.dot_dimension_numbers<[1], [0], [0], [1], [0, 0, 1, 1], [], []>} : vector<16x128xbf16>, vector<128x256xbf16>, vector<16x256xf32> -> vector<16x256xf32>
    %273 = vector.extract_strided_slice %270 {offsets = [0, 0], sizes = [32, 128], strides = [1, 1]} : vector<32x256xf32> to vector<32x128xf32>
    %274 = arith.truncf %273 : vector<32x128xf32> to vector<32x128xbf16>
    %275 = vector.extract_strided_slice %270 {offsets = [0, 128], sizes = [32, 128], strides = [1, 1]} : vector<32x256xf32> to vector<32x128xf32>
    %276 = arith.truncf %275 : vector<32x128xf32> to vector<32x128xbf16>
    %277 = vector.shape_cast %274 : vector<32x128xbf16> to vector<1x32x128xbf16>
    %278 = vector.shape_cast %276 : vector<32x128xbf16> to vector<1x32x128xbf16>
    %279 = tpu.concatenate %277, %278 in 0 : vector<1x32x128xbf16>, vector<1x32x128xbf16> -> vector<2x32x128xbf16>
    %280 = vector.extract_strided_slice %271 {offsets = [0, 0], sizes = [16, 128], strides = [1, 1]} : vector<16x256xf32> to vector<16x128xf32>
    %281 = arith.truncf %280 : vector<16x128xf32> to vector<16x128xbf16>
    %282 = vector.extract_strided_slice %271 {offsets = [0, 128], sizes = [16, 128], strides = [1, 1]} : vector<16x256xf32> to vector<16x128xf32>
    %283 = arith.truncf %282 : vector<16x128xf32> to vector<16x128xbf16>
    %284 = vector.shape_cast %281 : vector<16x128xbf16> to vector<1x16x128xbf16>
    %285 = vector.shape_cast %283 : vector<16x128xbf16> to vector<1x16x128xbf16>
    %286 = tpu.concatenate %284, %285 in 0 : vector<1x16x128xbf16>, vector<1x16x128xbf16> -> vector<2x16x128xbf16>
    %287 = vector.extract_strided_slice %272 {offsets = [0, 0], sizes = [16, 128], strides = [1, 1]} : vector<16x256xf32> to vector<16x128xf32>
    %288 = arith.truncf %287 : vector<16x128xf32> to vector<16x128xbf16>
    %289 = vector.extract_strided_slice %272 {offsets = [0, 128], sizes = [16, 128], strides = [1, 1]} : vector<16x256xf32> to vector<16x128xf32>
    %290 = arith.truncf %289 : vector<16x128xf32> to vector<16x128xbf16>
    %291 = vector.shape_cast %288 : vector<16x128xbf16> to vector<1x16x128xbf16>
    %292 = vector.shape_cast %290 : vector<16x128xbf16> to vector<1x16x128xbf16>
    %293 = tpu.concatenate %291, %292 in 0 : vector<1x16x128xbf16>, vector<1x16x128xbf16> -> vector<2x16x128xbf16>
    "tpu.trace_start"() <{level = 10 : i32, message = "hnd,hmd->hnm"}> : () -> ()
    %cst_85 = arith.constant dense<0.000000e+00> : vector<2x32x16xf32>
    %294 = tpu.matmul %279, %286, %cst_85 {dimension_numbers = #tpu.dot_dimension_numbers<[2], [2], [1], [1], [0, 0, 0, 1, 1, 1], [0], [0]>} : vector<2x32x128xbf16>, vector<2x16x128xbf16>, vector<2x32x16xf32> -> vector<2x32x16xf32>
    "tpu.trace_stop"() : () -> ()
    %cst_86 = arith.constant dense<0xFF800000> : vector<2x32xf32>
    %295 = vector.multi_reduction <maximumf>, %294, %cst_86 [2] : vector<2x32x16xf32> to vector<2x32xf32>
    %296 = vector.shape_cast %295 : vector<2x32xf32> to vector<2x32x1xf32>
    %297 = vector.broadcast %296 : vector<2x32x1xf32> to vector<2x32x16xf32>
    %298 = arith.subf %294, %297 : vector<2x32x16xf32>
    %299 = math.exp %298 : vector<2x32x16xf32>
    %cst_87 = arith.constant dense<0.000000e+00> : vector<2x32xf32>
    %300 = vector.multi_reduction <add>, %299, %cst_87 [2] : vector<2x32x16xf32> to vector<2x32xf32>
    %301 = vector.shape_cast %300 : vector<2x32xf32> to vector<2x32x1xf32>
    %302 = tpu.reciprocal %301 {approx = true} : vector<2x32x1xf32> -> vector<2x32x1xf32>
    %303 = arith.truncf %299 : vector<2x32x16xf32> to vector<2x32x16xbf16>
    "tpu.trace_start"() <{level = 10 : i32, message = "hnm,hmd->hnd"}> : () -> ()
    %cst_88 = arith.constant dense<0.000000e+00> : vector<2x32x128xf32>
    %304 = tpu.matmul %303, %293, %cst_88 {dimension_numbers = #tpu.dot_dimension_numbers<[2], [1], [1], [2], [0, 0, 0, 1, 1, 2], [0], [0]>} : vector<2x32x16xbf16>, vector<2x16x128xbf16>, vector<2x32x128xf32> -> vector<2x32x128xf32>
    "tpu.trace_stop"() : () -> ()
    %305 = vector.broadcast %302 : vector<2x32x1xf32> to vector<2x32x128xf32>
    %306 = arith.mulf %304, %305 : vector<2x32x128xf32>
    %307 = vector.extract_strided_slice %306 {offsets = [0, 0, 0], sizes = [1, 32, 128], strides = [1, 1, 1]} : vector<2x32x128xf32> to vector<1x32x128xf32>
    %308 = vector.shape_cast %307 : vector<1x32x128xf32> to vector<32x128xf32>
    %309 = arith.truncf %308 : vector<32x128xf32> to vector<32x128xbf16>
    %310 = vector.extract_strided_slice %306 {offsets = [1, 0, 0], sizes = [1, 32, 128], strides = [1, 1, 1]} : vector<2x32x128xf32> to vector<1x32x128xf32>
    %311 = vector.shape_cast %310 : vector<1x32x128xf32> to vector<32x128xf32>
    %312 = arith.truncf %311 : vector<32x128xf32> to vector<32x128xbf16>
    %313 = tpu.concatenate %309, %312 in 1 : vector<32x128xbf16>, vector<32x128xbf16> -> vector<32x256xbf16>
    %cst_89 = arith.constant dense<0.000000e+00> : vector<32x128xf32>
    %314 = tpu.matmul %313, %245, %cst_89 {dimension_numbers = #tpu.dot_dimension_numbers<[1], [0], [0], [1], [0, 0, 1, 1], [], []>} : vector<32x256xbf16>, vector<256x128xbf16>, vector<32x128xf32> -> vector<32x128xf32>
    %315 = vector.broadcast %241 : vector<1x128xf32> to vector<32x128xf32>
    %316 = arith.addf %314, %315 : vector<32x128xf32>
    %317 = arith.addf %316, %159 : vector<32x128xf32>
    %318 = vector.extract_strided_slice %0 {offsets = [12, 0], sizes = [1, 128], strides = [1, 1]} : vector<18x128xf32> to vector<1x128xf32>
    %319 = vector.extract_strided_slice %0 {offsets = [13, 0], sizes = [1, 128], strides = [1, 1]} : vector<18x128xf32> to vector<1x128xf32>
    %320 = vector.extract_strided_slice %0 {offsets = [14, 0], sizes = [1, 128], strides = [1, 1]} : vector<18x128xf32> to vector<1x128xf32>
    %321 = vector.extract_strided_slice %1 {offsets = [0, 0], sizes = [1, 512], strides = [1, 1]} : vector<4x512xf32> to vector<1x512xf32>
    %322 = vector.extract_strided_slice %1 {offsets = [1, 0], sizes = [1, 512], strides = [1, 1]} : vector<4x512xf32> to vector<1x512xf32>
    %c0_90 = arith.constant 0 : index
    %c0_91 = arith.constant 0 : index
    %323 = vector.load %arg20[%c0_90, %c0_91] : memref<128x512xbf16, #tpu.memory_space<vmem>>, vector<128x512xbf16>
    %c0_92 = arith.constant 0 : index
    %c0_93 = arith.constant 0 : index
    %324 = vector.load %arg21[%c0_92, %c0_93] : memref<128x512xbf16, #tpu.memory_space<vmem>>, vector<128x512xbf16>
    %c0_94 = arith.constant 0 : index
    %c0_95 = arith.constant 0 : index
    %325 = vector.load %arg22[%c0_94, %c0_95] : memref<512x128xbf16, #tpu.memory_space<vmem>>, vector<512x128xbf16>
    %cst_96 = arith.constant dense<0.000000e+00> : vector<16xf32>
    %326 = vector.multi_reduction <add>, %238, %cst_96 [1] : vector<16x128xf32> to vector<16xf32>
    %327 = vector.shape_cast %326 : vector<16xf32> to vector<16x1xf32>
    %cst_97 = arith.constant 1.280000e+02 : f32
    %328 = vector.broadcast %cst_97 : f32 to vector<16x1xf32>
    %329 = arith.divf %327, %328 : vector<16x1xf32>
    %330 = vector.broadcast %329 : vector<16x1xf32> to vector<16x128xf32>
    %331 = arith.subf %238, %330 : vector<16x128xf32>
    %332 = arith.mulf %331, %331 : vector<16x128xf32>
    %cst_98 = arith.constant dense<0.000000e+00> : vector<16xf32>
    %333 = vector.multi_reduction <add>, %332, %cst_98 [1] : vector<16x128xf32> to vector<16xf32>
    %334 = vector.shape_cast %333 : vector<16xf32> to vector<16x1xf32>
    %cst_99 = arith.constant 1.280000e+02 : f32
    %335 = vector.broadcast %cst_99 : f32 to vector<16x1xf32>
    %336 = arith.divf %334, %335 : vector<16x1xf32>
    %337 = vector.broadcast %329 : vector<16x1xf32> to vector<16x128xf32>
    %338 = arith.subf %238, %337 : vector<16x128xf32>
    %cst_100 = arith.constant 9.99999974E-6 : f32
    %339 = vector.broadcast %cst_100 : f32 to vector<16x1xf32>
    %340 = arith.addf %336, %339 : vector<16x1xf32>
    %341 = math.rsqrt %340 : vector<16x1xf32>
    %342 = vector.broadcast %341 : vector<16x1xf32> to vector<16x128xf32>
    %343 = arith.mulf %338, %342 : vector<16x128xf32>
    %344 = vector.broadcast %318 : vector<1x128xf32> to vector<16x128xf32>
    %345 = arith.mulf %343, %344 : vector<16x128xf32>
    %346 = vector.broadcast %319 : vector<1x128xf32> to vector<16x128xf32>
    %347 = arith.addf %345, %346 : vector<16x128xf32>
    %348 = arith.truncf %347 : vector<16x128xf32> to vector<16x128xbf16>
    %cst_101 = arith.constant dense<0.000000e+00> : vector<16x512xf32>
    %349 = tpu.matmul %348, %323, %cst_101 {dimension_numbers = #tpu.dot_dimension_numbers<[1], [0], [0], [1], [0, 0, 1, 1], [], []>} : vector<16x128xbf16>, vector<128x512xbf16>, vector<16x512xf32> -> vector<16x512xf32>
    %350 = vector.broadcast %321 : vector<1x512xf32> to vector<16x512xf32>
    %351 = arith.addf %349, %350 : vector<16x512xf32>
    %cst_102 = arith.constant dense<0.000000e+00> : vector<16x512xf32>
    %352 = tpu.matmul %348, %324, %cst_102 {dimension_numbers = #tpu.dot_dimension_numbers<[1], [0], [0], [1], [0, 0, 1, 1], [], []>} : vector<16x128xbf16>, vector<128x512xbf16>, vector<16x512xf32> -> vector<16x512xf32>
    %353 = vector.broadcast %322 : vector<1x512xf32> to vector<16x512xf32>
    %354 = arith.addf %352, %353 : vector<16x512xf32>
    %cst_103 = arith.constant 5.000000e-01 : f32
    %355 = vector.broadcast %cst_103 : f32 to vector<16x512xf32>
    %356 = arith.mulf %355, %354 : vector<16x512xf32>
    %cst_104 = arith.constant 0.707106769 : f32
    %357 = vector.broadcast %cst_104 : f32 to vector<16x512xf32>
    %358 = arith.mulf %354, %357 : vector<16x512xf32>
    %cst_105 = arith.constant 0.000000e+00 : f32
    %359 = vector.broadcast %cst_105 : f32 to vector<16x512xf32>
    %360 = arith.cmpf oge, %358, %359 : vector<16x512xf32>
    %cst_106 = arith.constant 1.000000e+00 : f32
    %cst_107 = arith.constant -1.000000e+00 : f32
    %361 = vector.broadcast %cst_106 : f32 to vector<16x512xf32>
    %362 = vector.broadcast %cst_107 : f32 to vector<16x512xf32>
    %363 = arith.select %360, %361, %362 : vector<16x512xi1>, vector<16x512xf32>
    %364 = math.absf %358 : vector<16x512xf32>
    %cst_108 = arith.constant 0.327591091 : f32
    %365 = vector.broadcast %cst_108 : f32 to vector<16x512xf32>
    %366 = arith.mulf %365, %364 : vector<16x512xf32>
    %cst_109 = arith.constant 1.000000e+00 : f32
    %367 = vector.broadcast %cst_109 : f32 to vector<16x512xf32>
    %368 = arith.addf %367, %366 : vector<16x512xf32>
    %cst_110 = arith.constant 1.000000e+00 : f32
    %369 = vector.broadcast %cst_110 : f32 to vector<16x512xf32>
    %370 = arith.divf %369, %368 : vector<16x512xf32>
    %cst_111 = arith.constant 1.06140542 : f32
    %371 = vector.broadcast %cst_111 : f32 to vector<16x512xf32>
    %372 = arith.mulf %371, %370 : vector<16x512xf32>
    %cst_112 = arith.constant -1.45315206 : f32
    %373 = vector.broadcast %cst_112 : f32 to vector<16x512xf32>
    %374 = arith.addf %372, %373 : vector<16x512xf32>
    %375 = arith.mulf %374, %370 : vector<16x512xf32>
    %cst_113 = arith.constant 1.42141378 : f32
    %376 = vector.broadcast %cst_113 : f32 to vector<16x512xf32>
    %377 = arith.addf %375, %376 : vector<16x512xf32>
    %378 = arith.mulf %377, %370 : vector<16x512xf32>
    %cst_114 = arith.constant -0.284496725 : f32
    %379 = vector.broadcast %cst_114 : f32 to vector<16x512xf32>
    %380 = arith.addf %378, %379 : vector<16x512xf32>
    %381 = arith.mulf %380, %370 : vector<16x512xf32>
    %cst_115 = arith.constant 0.254829586 : f32
    %382 = vector.broadcast %cst_115 : f32 to vector<16x512xf32>
    %383 = arith.addf %381, %382 : vector<16x512xf32>
    %384 = arith.mulf %383, %370 : vector<16x512xf32>
    %cst_116 = arith.constant 0.000000e+00 : f32
    %385 = vector.broadcast %cst_116 : f32 to vector<16x512xf32>
    %386 = arith.subf %385, %364 : vector<16x512xf32>
    %387 = arith.mulf %386, %364 : vector<16x512xf32>
    %388 = math.exp %387 : vector<16x512xf32>
    %389 = arith.mulf %384, %388 : vector<16x512xf32>
    %cst_117 = arith.constant 1.000000e+00 : f32
    %390 = vector.broadcast %cst_117 : f32 to vector<16x512xf32>
    %391 = arith.subf %390, %389 : vector<16x512xf32>
    %392 = arith.mulf %363, %391 : vector<16x512xf32>
    %cst_118 = arith.constant 1.000000e+00 : f32
    %393 = vector.broadcast %cst_118 : f32 to vector<16x512xf32>
    %394 = arith.addf %393, %392 : vector<16x512xf32>
    %395 = arith.mulf %356, %394 : vector<16x512xf32>
    %396 = arith.mulf %351, %395 : vector<16x512xf32>
    %397 = arith.truncf %396 : vector<16x512xf32> to vector<16x512xbf16>
    %cst_119 = arith.constant dense<0.000000e+00> : vector<16x128xf32>
    %398 = tpu.matmul %397, %325, %cst_119 {dimension_numbers = #tpu.dot_dimension_numbers<[1], [0], [0], [1], [0, 0, 1, 1], [], []>} : vector<16x512xbf16>, vector<512x128xbf16>, vector<16x128xf32> -> vector<16x128xf32>
    %399 = vector.broadcast %320 : vector<1x128xf32> to vector<16x128xf32>
    %400 = arith.addf %398, %399 : vector<16x128xf32>
    %401 = arith.addf %400, %238 : vector<16x128xf32>
    %402 = vector.extract_strided_slice %0 {offsets = [15, 0], sizes = [1, 128], strides = [1, 1]} : vector<18x128xf32> to vector<1x128xf32>
    %403 = vector.extract_strided_slice %0 {offsets = [16, 0], sizes = [1, 128], strides = [1, 1]} : vector<18x128xf32> to vector<1x128xf32>
    %404 = vector.extract_strided_slice %0 {offsets = [17, 0], sizes = [1, 128], strides = [1, 1]} : vector<18x128xf32> to vector<1x128xf32>
    %405 = vector.extract_strided_slice %1 {offsets = [2, 0], sizes = [1, 512], strides = [1, 1]} : vector<4x512xf32> to vector<1x512xf32>
    %406 = vector.extract_strided_slice %1 {offsets = [3, 0], sizes = [1, 512], strides = [1, 1]} : vector<4x512xf32> to vector<1x512xf32>
    %c0_120 = arith.constant 0 : index
    %c0_121 = arith.constant 0 : index
    %407 = vector.load %arg23[%c0_120, %c0_121] : memref<128x512xbf16, #tpu.memory_space<vmem>>, vector<128x512xbf16>
    %c0_122 = arith.constant 0 : index
    %c0_123 = arith.constant 0 : index
    %408 = vector.load %arg24[%c0_122, %c0_123] : memref<128x512xbf16, #tpu.memory_space<vmem>>, vector<128x512xbf16>
    %c0_124 = arith.constant 0 : index
    %c0_125 = arith.constant 0 : index
    %409 = vector.load %arg25[%c0_124, %c0_125] : memref<512x128xbf16, #tpu.memory_space<vmem>>, vector<512x128xbf16>
    %cst_126 = arith.constant dense<0.000000e+00> : vector<32xf32>
    %410 = vector.multi_reduction <add>, %317, %cst_126 [1] : vector<32x128xf32> to vector<32xf32>
    %411 = vector.shape_cast %410 : vector<32xf32> to vector<32x1xf32>
    %cst_127 = arith.constant 1.280000e+02 : f32
    %412 = vector.broadcast %cst_127 : f32 to vector<32x1xf32>
    %413 = arith.divf %411, %412 : vector<32x1xf32>
    %414 = vector.broadcast %413 : vector<32x1xf32> to vector<32x128xf32>
    %415 = arith.subf %317, %414 : vector<32x128xf32>
    %416 = arith.mulf %415, %415 : vector<32x128xf32>
    %cst_128 = arith.constant dense<0.000000e+00> : vector<32xf32>
    %417 = vector.multi_reduction <add>, %416, %cst_128 [1] : vector<32x128xf32> to vector<32xf32>
    %418 = vector.shape_cast %417 : vector<32xf32> to vector<32x1xf32>
    %cst_129 = arith.constant 1.280000e+02 : f32
    %419 = vector.broadcast %cst_129 : f32 to vector<32x1xf32>
    %420 = arith.divf %418, %419 : vector<32x1xf32>
    %421 = vector.broadcast %413 : vector<32x1xf32> to vector<32x128xf32>
    %422 = arith.subf %317, %421 : vector<32x128xf32>
    %cst_130 = arith.constant 9.99999974E-6 : f32
    %423 = vector.broadcast %cst_130 : f32 to vector<32x1xf32>
    %424 = arith.addf %420, %423 : vector<32x1xf32>
    %425 = math.rsqrt %424 : vector<32x1xf32>
    %426 = vector.broadcast %425 : vector<32x1xf32> to vector<32x128xf32>
    %427 = arith.mulf %422, %426 : vector<32x128xf32>
    %428 = vector.broadcast %402 : vector<1x128xf32> to vector<32x128xf32>
    %429 = arith.mulf %427, %428 : vector<32x128xf32>
    %430 = vector.broadcast %403 : vector<1x128xf32> to vector<32x128xf32>
    %431 = arith.addf %429, %430 : vector<32x128xf32>
    %432 = arith.truncf %431 : vector<32x128xf32> to vector<32x128xbf16>
    %cst_131 = arith.constant dense<0.000000e+00> : vector<32x512xf32>
    %433 = tpu.matmul %432, %407, %cst_131 {dimension_numbers = #tpu.dot_dimension_numbers<[1], [0], [0], [1], [0, 0, 1, 1], [], []>} : vector<32x128xbf16>, vector<128x512xbf16>, vector<32x512xf32> -> vector<32x512xf32>
    %434 = vector.broadcast %405 : vector<1x512xf32> to vector<32x512xf32>
    %435 = arith.addf %433, %434 : vector<32x512xf32>
    %cst_132 = arith.constant dense<0.000000e+00> : vector<32x512xf32>
    %436 = tpu.matmul %432, %408, %cst_132 {dimension_numbers = #tpu.dot_dimension_numbers<[1], [0], [0], [1], [0, 0, 1, 1], [], []>} : vector<32x128xbf16>, vector<128x512xbf16>, vector<32x512xf32> -> vector<32x512xf32>
    %437 = vector.broadcast %406 : vector<1x512xf32> to vector<32x512xf32>
    %438 = arith.addf %436, %437 : vector<32x512xf32>
    %cst_133 = arith.constant 5.000000e-01 : f32
    %439 = vector.broadcast %cst_133 : f32 to vector<32x512xf32>
    %440 = arith.mulf %439, %438 : vector<32x512xf32>
    %cst_134 = arith.constant 0.707106769 : f32
    %441 = vector.broadcast %cst_134 : f32 to vector<32x512xf32>
    %442 = arith.mulf %438, %441 : vector<32x512xf32>
    %cst_135 = arith.constant 0.000000e+00 : f32
    %443 = vector.broadcast %cst_135 : f32 to vector<32x512xf32>
    %444 = arith.cmpf oge, %442, %443 : vector<32x512xf32>
    %cst_136 = arith.constant 1.000000e+00 : f32
    %cst_137 = arith.constant -1.000000e+00 : f32
    %445 = vector.broadcast %cst_136 : f32 to vector<32x512xf32>
    %446 = vector.broadcast %cst_137 : f32 to vector<32x512xf32>
    %447 = arith.select %444, %445, %446 : vector<32x512xi1>, vector<32x512xf32>
    %448 = math.absf %442 : vector<32x512xf32>
    %cst_138 = arith.constant 0.327591091 : f32
    %449 = vector.broadcast %cst_138 : f32 to vector<32x512xf32>
    %450 = arith.mulf %449, %448 : vector<32x512xf32>
    %cst_139 = arith.constant 1.000000e+00 : f32
    %451 = vector.broadcast %cst_139 : f32 to vector<32x512xf32>
    %452 = arith.addf %451, %450 : vector<32x512xf32>
    %cst_140 = arith.constant 1.000000e+00 : f32
    %453 = vector.broadcast %cst_140 : f32 to vector<32x512xf32>
    %454 = arith.divf %453, %452 : vector<32x512xf32>
    %cst_141 = arith.constant 1.06140542 : f32
    %455 = vector.broadcast %cst_141 : f32 to vector<32x512xf32>
    %456 = arith.mulf %455, %454 : vector<32x512xf32>
    %cst_142 = arith.constant -1.45315206 : f32
    %457 = vector.broadcast %cst_142 : f32 to vector<32x512xf32>
    %458 = arith.addf %456, %457 : vector<32x512xf32>
    %459 = arith.mulf %458, %454 : vector<32x512xf32>
    %cst_143 = arith.constant 1.42141378 : f32
    %460 = vector.broadcast %cst_143 : f32 to vector<32x512xf32>
    %461 = arith.addf %459, %460 : vector<32x512xf32>
    %462 = arith.mulf %461, %454 : vector<32x512xf32>
    %cst_144 = arith.constant -0.284496725 : f32
    %463 = vector.broadcast %cst_144 : f32 to vector<32x512xf32>
    %464 = arith.addf %462, %463 : vector<32x512xf32>
    %465 = arith.mulf %464, %454 : vector<32x512xf32>
    %cst_145 = arith.constant 0.254829586 : f32
    %466 = vector.broadcast %cst_145 : f32 to vector<32x512xf32>
    %467 = arith.addf %465, %466 : vector<32x512xf32>
    %468 = arith.mulf %467, %454 : vector<32x512xf32>
    %cst_146 = arith.constant 0.000000e+00 : f32
    %469 = vector.broadcast %cst_146 : f32 to vector<32x512xf32>
    %470 = arith.subf %469, %448 : vector<32x512xf32>
    %471 = arith.mulf %470, %448 : vector<32x512xf32>
    %472 = math.exp %471 : vector<32x512xf32>
    %473 = arith.mulf %468, %472 : vector<32x512xf32>
    %cst_147 = arith.constant 1.000000e+00 : f32
    %474 = vector.broadcast %cst_147 : f32 to vector<32x512xf32>
    %475 = arith.subf %474, %473 : vector<32x512xf32>
    %476 = arith.mulf %447, %475 : vector<32x512xf32>
    %cst_148 = arith.constant 1.000000e+00 : f32
    %477 = vector.broadcast %cst_148 : f32 to vector<32x512xf32>
    %478 = arith.addf %477, %476 : vector<32x512xf32>
    %479 = arith.mulf %440, %478 : vector<32x512xf32>
    %480 = arith.mulf %435, %479 : vector<32x512xf32>
    %481 = arith.truncf %480 : vector<32x512xf32> to vector<32x512xbf16>
    %cst_149 = arith.constant dense<0.000000e+00> : vector<32x128xf32>
    %482 = tpu.matmul %481, %409, %cst_149 {dimension_numbers = #tpu.dot_dimension_numbers<[1], [0], [0], [1], [0, 0, 1, 1], [], []>} : vector<32x512xbf16>, vector<512x128xbf16>, vector<32x128xf32> -> vector<32x128xf32>
    %483 = vector.broadcast %404 : vector<1x128xf32> to vector<32x128xf32>
    %484 = arith.addf %482, %483 : vector<32x128xf32>
    %485 = arith.addf %484, %317 : vector<32x128xf32>
    %c0_150 = arith.constant 0 : index
    %c0_151 = arith.constant 0 : index
    %486 = vector.load %arg26[%c0_150, %c0_151] : memref<16x128xf32, #tpu.memory_space<vmem>>, vector<16x128xf32>
    tpu.vector_store %arg26[%c0_150, %c0_151], %401 {strides = array<i32>} : memref<16x128xf32, #tpu.memory_space<vmem>>, vector<16x128xf32>,
    %c0_152 = arith.constant 0 : index
    %c0_153 = arith.constant 0 : index
    %487 = vector.load %arg27[%c0_152, %c0_153] : memref<32x128xf32, #tpu.memory_space<vmem>>, vector<32x128xf32>
    tpu.vector_store %arg27[%c0_152, %c0_153], %485 {strides = array<i32>} : memref<32x128xf32, #tpu.memory_space<vmem>>, vector<32x128xf32>,
    return
  }
}

</mosaic_0001>

<bundles_post_ra>
// kernel: basic_transformer_block.1
= control target key start
LH: loop header
LB: loop body
LE: loop exit
PB: predicated region body
PF: predicated region fallthrough
CT: control target
= control target key end

     0   :  { %s10652_s0 = inlined_call_operand.hbm [shape: f32[16,128], index: 0, kind: input, shape index: {}]   ;;  %s10653_s1 = inlined_call_operand.hbm [shape: f32[32,128], index: 1, kind: input, shape index: {}]   ;;  %s10654_s2 = inlined_call_operand.hbm [shape: f32[18,128], index: 2, kind: input, shape index: {}]   ;;  %s10655_s3 = inlined_call_operand.hbm [shape: f32[4,512], index: 3, kind: input, shape index: {}]   ;;  %s10656_s4 = inlined_call_operand.hbm [shape: bf16[128,256], index: 4, kind: input, shape index: {}]   ;;  %s10657_s5 = inlined_call_operand.hbm [shape: bf16[128,256], index: 5, kind: input, shape index: {}]   ;;  %s10658_s6 = inlined_call_operand.hbm [shape: bf16[128,256], index: 6, kind: input, shape index: {}]   ;;  %s10659_s7 = inlined_call_operand.hbm [shape: bf16[256,128], index: 7, kind: input, shape index: {}]   ;;  %s10660_s8 = inlined_call_operand.hbm [shape: bf16[128,256], index: 8, kind: input, shape index: {}]   ;;  %s10661_s9 = inlined_call_operand.hbm [shape: bf16[128,256], index: 9, kind: input, shape index: {}]   ;;  %s10662_s10 = inlined_call_operand.hbm [shape: bf16[128,256], index: 10, kind: input, shape index: {}]   ;;  %s10663_s11 = inlined_call_operand.hbm [shape: bf16[256,128], index: 11, kind: input, shape index: {}]   ;;  %s10664_s12 = inlined_call_operand.hbm [shape: bf16[128,256], index: 12, kind: input, shape index: {}]   ;;  %s10665_s13 = inlined_call_operand.hbm [shape: bf16[128,256], index: 13, kind: input, shape index: {}]   ;;  %s10666_s14 = inlined_call_operand.hbm [shape: bf16[128,256], index: 14, kind: input, shape index: {}]   ;;  %s10667_s15 = inlined_call_operand.hbm [shape: bf16[256,128], index: 15, kind: input, shape index: {}]   ;;  %s10668_s16 = inlined_call_operand.hbm [shape: bf16[128,256], index: 16, kind: input, shape index: {}]   ;;  %s10669_s17 = inlined_call_operand.hbm [shape: bf16[128,256], index: 17, kind: input, shape index: {}]   ;;  %s10670_s18 = inlined_call_operand.hbm [shape: bf16[128,256], index: 18, kind: input, shape index: {}]   ;;  %s10671_s19 = inlined_call_operand.hbm [shape: bf16[256,128], index: 19, kind: input, shape index: {}]   ;;  %s10672_s20 = inlined_call_operand.hbm [shape: bf16[128,512], index: 20, kind: input, shape index: {}]   ;;  %s10673_s21 = inlined_call_operand.hbm [shape: bf16[128,512], index: 21, kind: input, shape index: {}]   ;;  %s10674_s22 = inlined_call_operand.hbm [shape: bf16[512,128], index: 22, kind: input, shape index: {}]   ;;  %s10675_s23 = inlined_call_operand.hbm [shape: bf16[128,512], index: 23, kind: input, shape index: {}]   ;;  %s10676_s24 = inlined_call_operand.hbm [shape: bf16[128,512], index: 24, kind: input, shape index: {}]   ;;  %s10677_s25 = inlined_call_operand.hbm [shape: bf16[512,128], index: 25, kind: input, shape index: {}]   ;;  %s10678_s26 = inlined_call_operand.hbm [shape: f32[16,128], index: 26, kind: output, shape index: {0}]   ;;  %s10679_s27 = inlined_call_operand.hbm [shape: f32[32,128], index: 27, kind: output, shape index: {1}]  }
   0x1   :  { %10692 = sst [smem:[#allocation80_spill]] %s10652_s0 }
   0x2   :  { %10693 = sst [smem:[#allocation81_spill]] %s10653_s1 }
   0x3   :  { %10694 = sst [smem:[#allocation82_spill]] %s10654_s2 }
   0x4   :  { %10695 = sst [smem:[#allocation83_spill]] %s10655_s3 }
   0x5   :  { %10696 = sst [smem:[#allocation84_spill]] %s10656_s4 }
   0x6   :  { %10697 = sst [smem:[#allocation85_spill]] %s10657_s5 }
   0x7   :  { %10698 = sst [smem:[#allocation86_spill]] %s10658_s6 }
   0x8   :  { %10699 = sst [smem:[#allocation87_spill]] %s10659_s7 }
   0x9   :  { %10700 = sst [smem:[#allocation88_spill]] %s10660_s8 }
   0xa   :  { %10701 = sst [smem:[#allocation89_spill]] %s10661_s9 }
   0xb   :  { %10702 = sst [smem:[#allocation90_spill]] %s10662_s10 }
   0xc   :  { %10703 = sst [smem:[#allocation91_spill]] %s10663_s11 }
   0xd   :  { %10704 = sst [smem:[#allocation92_spill]] %s10678_s26 }
   0xe   :  { %10705 = sst [smem:[#allocation93_spill]] %s10679_s27 }
   0xf   :  { %33 = vsyncpa [#allocation3], 0 }
  0x10   :  { %34 = vsyncpa [#allocation6], 0 }
  0x11   :  { %35 = vsyncpa [#allocation9], 0 }
  0x12   :  { %36 = vsyncpa [#allocation12], 0 }
  0x13   :  { %37 = vsyncpa [#allocation15], 0 }
  0x14   :  { %38 = vsyncpa [#allocation18], 0 }
  0x15   :  { %39 = vsyncpa [#allocation21], 0 }
  0x16   :  { %40 = vsyncpa [#allocation24], 0 }
  0x17   :  { %41 = vsyncpa [#allocation27], 0 }
  0x18   :  { %42 = vsyncpa [#allocation30], 0 }
  0x19   :  { %43 = vsyncpa [#allocation33], 0 }
  0x1a   :  { %44 = vsyncpa [#allocation36], 0 }
  0x1b   :  { %45 = vsyncpa [#allocation39], 0 }
  0x1c   :  { %46 = vsyncpa [#allocation42], 0 }
  0x1d   :  { %47 = vsyncpa [#allocation4], 0 }
  0x1e   :  { %48 = vsyncpa [#allocation45], 0  ;;  %s9311_s7 = smov [#allocation5]   ;;  %s9312_s8 = smov [#allocation8]  }
  0x1f   :  { %s66_s4 = sshll.u32 %s9311_s7, 4  ;;  %s91_s30 = sshll.u32 %s9312_s8, 4  ;;  %s67_s4 = int_to_ptr.vmem [resolvable:$true] %s66_s4  ;;  %s92_s30 = int_to_ptr.vmem [resolvable:$true] %s91_s30 }
  0x20   :  { %s8727_s9 = scalar_lea.vmem %s67_s4, 512  ;;  %p8732_p1 = scmp.lt.s32.totalorder %s67_s4, %s67_s4 }
  0x21   :  { %p8728_p0 = scmp.ne.s32.totalorder %s67_s4, %s8727_s9  ;;  %p8733_p2 = scmp.lt.s32.totalorder %s8727_s9, %s8727_s9 }
  0x23   :  { %p8734_p3 = por %p8733_p2, %p8732_p1 }
  0x25   :  { %p8735_p4 = pnand %p8734_p3, %p8728_p0 }
  0x27   :  { %8738 = shalt.err (!%p8735_p4)
}
  0x28   :  { %s9313_s5 = smov 128   ;;  %s9314_s28 = smov 8  }
  0x29   :  { %s10706_s29 = sld [smem:[#allocation81_spill]]  ;;  %s8747_s1 = scalar_lea.vmem %s92_s30, 256 }
  0x2a   :  { %p8748_p5 = scmp.ne.s32.totalorder %s92_s30, %s8747_s1  ;;  %p8752_p6 = scmp.lt.s32.totalorder %s92_s30, %s92_s30 }
  0x2b   :  { %p8753_p7 = scmp.lt.s32.totalorder %s8747_s1, %s8747_s1 }
  0x2d   :  { %p8754_p8 = por %p8753_p7, %p8752_p6 }
  0x2f   :  { %72 = dma.hbm_to_vmem [thread:$0]  %s10706_s29, 512, %s67_s4, [#allocation6], %s9313_s5, %s9313_s5, %s9314_s28  }
  0x30   :  { %p8755_p9 = pnand %p8754_p8, %p8748_p5 }
  0x32   :  { %8758 = shalt.err (!%p8755_p9)
}
  0x33   :  { %s10707_s2 = sld [smem:[#allocation83_spill]]  ;;  %s9315_s3 = smov [#allocation11]  }
  0x34   :  { %s112_s7 = sshll.u32 %s9315_s3, 4  ;;  %s9316_s8 = smov [#allocation14]   ;;  %s113_s7 = int_to_ptr.vmem [resolvable:$true] %s112_s7 }
  0x35   :  { %s136_s9 = sshll.u32 %s9316_s8, 4  ;;  %s8767_s27 = scalar_lea.vmem %s113_s7, 2048  ;;  %s137_s9 = int_to_ptr.vmem [resolvable:$true] %s136_s9 }
  0x36   :  { %p8768_p10 = scmp.ne.s32.totalorder %s113_s7, %s8767_s27  ;;  %p8772_p11 = scmp.lt.s32.totalorder %s113_s7, %s113_s7 }
  0x37   :  { %p8773_p12 = scmp.lt.s32.totalorder %s8767_s27, %s8767_s27 }
  0x39   :  { %94 = dma.hbm_to_vmem [thread:$0]  %s10707_s2, 256, %s92_s30, [#allocation9]  }
  0x3a   :  { %p8774_p13 = por %p8773_p12, %p8772_p11 }
  0x3c   :  { %p8775_p0 = pnand %p8774_p13, %p8768_p10 }
  0x3e   :  { %8778 = shalt.err (!%p8775_p0)
}
  0x3f   :  { %s10708_s10 = sld [smem:[#allocation85_spill]]  ;;  %s8787_s30 = scalar_lea.vmem %s137_s9, 2048 }
  0x40   :  { %p8788_p1 = scmp.ne.s32.totalorder %s137_s9, %s8787_s30  ;;  %p8792_p2 = scmp.lt.s32.totalorder %s137_s9, %s137_s9 }
  0x41   :  { %p8793_p3 = scmp.lt.s32.totalorder %s8787_s30, %s8787_s30 }
  0x43   :  { %p8794_p4 = por %p8793_p3, %p8792_p2 }
  0x45   :  { %118 = dma.hbm_to_vmem [thread:$0]  %s10708_s10, 2048, %s113_s7, [#allocation12], %s9313_s5, %s9313_s5, %s9314_s28  }
  0x46   :  { %p8795_p5 = pnand %p8794_p4, %p8788_p1 }
  0x48   :  { %8798 = shalt.err (!%p8795_p5)
}
  0x49   :  { %s9317_s29 = smov 64   ;;  %s9318_s1 = smov 4  }
  0x4a   :  { %s10709_s11 = sld [smem:[#allocation87_spill]]  ;;  %s9319_s2 = smov [#allocation17]  }
  0x4b   :  { %s160_s3 = sshll.u32 %s9319_s2, 4  ;;  %s9320_s8 = smov [#allocation20]   ;;  %s161_s3 = int_to_ptr.vmem [resolvable:$true] %s160_s3 }
  0x4c   :  { %s184_s7 = sshll.u32 %s9320_s8, 4  ;;  %s8807_s4 = scalar_lea.vmem %s161_s3, 2048  ;;  %s185_s7 = int_to_ptr.vmem [resolvable:$true] %s184_s7 }
  0x4d   :  { %p8808_p6 = scmp.ne.s32.totalorder %s161_s3, %s8807_s4  ;;  %p8812_p7 = scmp.lt.s32.totalorder %s161_s3, %s161_s3 }
  0x4e   :  { %p8813_p8 = scmp.lt.s32.totalorder %s8807_s4, %s8807_s4 }
  0x50   :  { %142 = dma.hbm_to_vmem [thread:$0]  %s10709_s11, 2048, %s137_s9, [#allocation15], %s9317_s29, %s9317_s29, %s9318_s1  }
  0x51   :  { %p8814_p9 = por %p8813_p8, %p8812_p7 }
  0x53   :  { %p8815_p10 = pnand %p8814_p9, %p8808_p6 }
  0x55   :  { %8818 = shalt.err (!%p8815_p10)
}
  0x56   :  { %s10710_s30 = sld [smem:[#allocation89_spill]]  ;;  %s8827_s9 = scalar_lea.vmem %s185_s7, 2048 }
  0x57   :  { %p8828_p11 = scmp.ne.s32.totalorder %s185_s7, %s8827_s9  ;;  %p8832_p12 = scmp.lt.s32.totalorder %s185_s7, %s185_s7 }
  0x58   :  { %p8833_p13 = scmp.lt.s32.totalorder %s8827_s9, %s8827_s9 }
  0x5a   :  { %p8834_p0 = por %p8833_p13, %p8832_p12 }
  0x5c   :  { %166 = dma.hbm_to_vmem [thread:$0]  %s10710_s30, 2048, %s161_s3, [#allocation18], %s9313_s5, %s9313_s5, %s9314_s28  }
  0x5d   :  { %p8835_p1 = pnand %p8834_p0, %p8828_p11 }
  0x5f   :  { %8838 = shalt.err (!%p8835_p1)
}
  0x60   :  { %s10711_s11 = sld [smem:[#allocation91_spill]]  ;;  %s9321_s2 = smov [#allocation23]  }
  0x61   :  { %s208_s8 = sshll.u32 %s9321_s2, 4  ;;  %s9322_s4 = smov [#allocation26]   ;;  %s209_s8 = int_to_ptr.vmem [resolvable:$true] %s208_s8 }
  0x62   :  { %s232_s26 = sshll.u32 %s9322_s4, 4  ;;  %s8847_s3 = scalar_lea.vmem %s209_s8, 2048  ;;  %s233_s26 = int_to_ptr.vmem [resolvable:$true] %s232_s26 }
  0x63   :  { %p8848_p2 = scmp.ne.s32.totalorder %s209_s8, %s8847_s3  ;;  %p8852_p3 = scmp.lt.s32.totalorder %s209_s8, %s209_s8 }
  0x64   :  { %p8853_p4 = scmp.lt.s32.totalorder %s8847_s3, %s8847_s3 }
  0x66   :  { %190 = dma.hbm_to_vmem [thread:$0]  %s10711_s11, 2048, %s185_s7, [#allocation21], %s9317_s29, %s9317_s29, %s9318_s1  }
  0x67   :  { %p8854_p5 = por %p8853_p4, %p8852_p3 }
  0x69   :  { %p8855_p6 = pnand %p8854_p5, %p8848_p2 }
  0x6b   :  { %8858 = shalt.err (!%p8855_p6)
}
  0x6c   :  { %214 = dma.hbm_to_vmem [thread:$0]  %s10665_s13, 2048, %s209_s8, [#allocation24], %s9313_s5, %s9313_s5, %s9314_s28  }
  0x6d   :  { %s8867_s7 = scalar_lea.vmem %s233_s26, 2048  ;;  %p8872_p8 = scmp.lt.s32.totalorder %s233_s26, %s233_s26 }
  0x6e   :  { %p8868_p7 = scmp.ne.s32.totalorder %s233_s26, %s8867_s7  ;;  %p8873_p9 = scmp.lt.s32.totalorder %s8867_s7, %s8867_s7 }
  0x70   :  { %p8874_p10 = por %p8873_p9, %p8872_p8 }
  0x72   :  { %p8875_p11 = pnand %p8874_p10, %p8868_p7 }
  0x74   :  { %8878 = shalt.err (!%p8875_p11)
}
  0x75   :  { %238 = dma.hbm_to_vmem [thread:$0]  %s10667_s15, 2048, %s233_s26, [#allocation27], %s9317_s29, %s9317_s29, %s9318_s1  }
  0x76   :  { %s9323_s27 = smov [#allocation29]   ;;  %s9324_s11 = smov [#allocation32]  }
  0x77   :  { %s256_s6 = sshll.u32 %s9323_s27, 4  ;;  %s280_s2 = sshll.u32 %s9324_s11, 4  ;;  %s257_s6 = int_to_ptr.vmem [resolvable:$true] %s256_s6  ;;  %s281_s2 = int_to_ptr.vmem [resolvable:$true] %s280_s2 }
  0x78   :  { %s8887_s13 = scalar_lea.vmem %s257_s6, 2048  ;;  %p8892_p13 = scmp.lt.s32.totalorder %s257_s6, %s257_s6 }
  0x79   :  { %p8888_p12 = scmp.ne.s32.totalorder %s257_s6, %s8887_s13  ;;  %p8893_p0 = scmp.lt.s32.totalorder %s8887_s13, %s8887_s13 }
  0x7b   :  { %p8894_p1 = por %p8893_p0, %p8892_p13 }
  0x7d   :  { %p8895_p2 = pnand %p8894_p1, %p8888_p12 }
  0x7f   :  { %8898 = shalt.err (!%p8895_p2)
}
  0x80   :  { %262 = dma.hbm_to_vmem [thread:$0]  %s10669_s17, 2048, %s257_s6, [#allocation30], %s9313_s5, %s9313_s5, %s9314_s28  }
  0x81   :  { %s8907_s15 = scalar_lea.vmem %s281_s2, 2048  ;;  %p8912_p4 = scmp.lt.s32.totalorder %s281_s2, %s281_s2 }
  0x82   :  { %p8908_p3 = scmp.ne.s32.totalorder %s281_s2, %s8907_s15  ;;  %p8913_p5 = scmp.lt.s32.totalorder %s8907_s15, %s8907_s15 }
  0x84   :  { %p8914_p6 = por %p8913_p5, %p8912_p4 }
  0x86   :  { %p8915_p7 = pnand %p8914_p6, %p8908_p3 }
  0x88   :  { %8918 = shalt.err (!%p8915_p7)
}
  0x89   :  { %286 = dma.hbm_to_vmem [thread:$0]  %s10671_s19, 2048, %s281_s2, [#allocation33], %s9317_s29, %s9317_s29, %s9318_s1  }
  0x8a   :  { %s9325_s0 = smov [#allocation35]   ;;  %s9326_s7 = smov [#allocation38]  }
  0x8b   :  { %s304_s10 = sshll.u32 %s9325_s0, 4  ;;  %s328_s30 = sshll.u32 %s9326_s7, 4  ;;  %s305_s10 = int_to_ptr.vmem [resolvable:$true] %s304_s10  ;;  %s329_s30 = int_to_ptr.vmem [resolvable:$true] %s328_s30 }
  0x8c   :  { %s8927_s17 = scalar_lea.vmem %s305_s10, 4096  ;;  %p8932_p9 = scmp.lt.s32.totalorder %s305_s10, %s305_s10 }
  0x8d   :  { %p8928_p8 = scmp.ne.s32.totalorder %s305_s10, %s8927_s17  ;;  %p8933_p10 = scmp.lt.s32.totalorder %s8927_s17, %s8927_s17 }
  0x8f   :  { %p8934_p11 = por %p8933_p10, %p8932_p9 }
  0x91   :  { %p8935_p12 = pnand %p8934_p11, %p8928_p8 }
  0x93   :  { %8938 = shalt.err (!%p8935_p12)
}
  0x94   :  { %s9327_s9 = smov 256   ;;  %s9328_s27 = smov 16  }
  0x95   :  { %310 = dma.hbm_to_vmem [thread:$0]  %s10673_s21, 4096, %s305_s10, [#allocation36], %s9327_s9, %s9327_s9, %s9328_s27  }
  0x96   :  { %s8947_s11 = scalar_lea.vmem %s329_s30, 4096  ;;  %p8952_p0 = scmp.lt.s32.totalorder %s329_s30, %s329_s30 }
  0x97   :  { %p8948_p13 = scmp.ne.s32.totalorder %s329_s30, %s8947_s11  ;;  %p8953_p1 = scmp.lt.s32.totalorder %s8947_s11, %s8947_s11 }
  0x99   :  { %p8954_p2 = por %p8953_p1, %p8952_p0 }
  0x9b   :  { %p8955_p3 = pnand %p8954_p2, %p8948_p13 }
  0x9d   :  { %8958 = shalt.err (!%p8955_p3)
}
  0x9e   :  { %334 = dma.hbm_to_vmem [thread:$0]  %s10675_s23, 4096, %s329_s30, [#allocation39], %s9327_s9, %s9327_s9, %s9328_s27  }
  0x9f   :  { %s9329_s8 = smov [#allocation2]   ;;  %s9330_s15 = smov [#allocation7]  }
  0xa0   :  { %s54_s4 = sshll.u32 %s9329_s8, 4  ;;  %s78_s26 = sshll.u32 %s9330_s15, 4  ;;  %s55_s4 = int_to_ptr.vmem [resolvable:$true] %s54_s4  ;;  %s79_s26 = int_to_ptr.vmem [resolvable:$true] %s78_s26 }
  0xa1   :  { %s8967_s21 = scalar_lea.vmem %s55_s4, 256  ;;  %p8972_p5 = scmp.lt.s32.totalorder %s55_s4, %s55_s4 }
  0xa2   :  { %p8968_p4 = scmp.ne.s32.totalorder %s55_s4, %s8967_s21  ;;  %p8973_p6 = scmp.lt.s32.totalorder %s8967_s21, %s8967_s21 }
  0xa4   :  { %p8974_p7 = por %p8973_p6, %p8972_p5 }
  0xa6   :  { %p8975_p8 = pnand %p8974_p7, %p8968_p4 }
  0xa8   :  { %8978 = shalt.err (!%p8975_p8)
}
  0xa9   :  { %s10712_s10 = sld [smem:[#allocation80_spill]]  ;;  %s8987_s23 = scalar_lea.vmem %s79_s26, 384 }
  0xaa   :  { %p8988_p9 = scmp.ne.s32.totalorder %s79_s26, %s8987_s23  ;;  %p8992_p10 = scmp.lt.s32.totalorder %s79_s26, %s79_s26 }
  0xab   :  { %p8993_p11 = scmp.lt.s32.totalorder %s8987_s23, %s8987_s23 }
  0xad   :  { %p8994_p12 = por %p8993_p11, %p8992_p10 }
  0xaf   :  { %60 = dma.hbm_to_vmem [thread:$0]  %s10712_s10, 256, %s55_s4, [#allocation3], %s9313_s5, %s9313_s5, %s9314_s28  }
  0xb0   :  { %p8995_p13 = pnand %p8994_p12, %p8988_p9 }
  0xb2   :  { %8998 = shalt.err (!%p8995_p13)
}
  0xb3   :  { %s10713_s17 = sld [smem:[#allocation82_spill]]  ;;  %s9331_s6 = smov [#allocation10]  }
  0xb4   :  { %s100_s19 = sshll.u32 %s9331_s6, 4  ;;  %s9332_s11 = smov [#allocation13]   ;;  %s101_s19 = int_to_ptr.vmem [resolvable:$true] %s100_s19 }
  0xb5   :  { %s124_s2 = sshll.u32 %s9332_s11, 4  ;;  %s9007_s13 = scalar_lea.vmem %s101_s19, 2048  ;;  %s125_s2 = int_to_ptr.vmem [resolvable:$true] %s124_s2 }
  0xb6   :  { %p9008_p0 = scmp.ne.s32.totalorder %s101_s19, %s9007_s13  ;;  %p9012_p1 = scmp.lt.s32.totalorder %s101_s19, %s101_s19 }
  0xb7   :  { %p9013_p2 = scmp.lt.s32.totalorder %s9007_s13, %s9007_s13 }
  0xb9   :  { %84 = dma.hbm_to_vmem [thread:$0]  %s10713_s17, 384, %s79_s26, [#allocation6], %s9313_s5, %s9313_s5, %s9314_s28  }
  0xba   :  { %p9014_p3 = por %p9013_p2, %p9012_p1 }
  0xbc   :  { %p9015_p4 = pnand %p9014_p3, %p9008_p0 }
  0xbe   :  { %9018 = shalt.err (!%p9015_p4)
}
  0xbf   :  { %s10714_s15 = sld [smem:[#allocation84_spill]]  ;;  %s9027_s26 = scalar_lea.vmem %s125_s2, 2048 }
  0xc0   :  { %p9028_p5 = scmp.ne.s32.totalorder %s125_s2, %s9027_s26  ;;  %p9032_p6 = scmp.lt.s32.totalorder %s125_s2, %s125_s2 }
  0xc1   :  { %p9033_p7 = scmp.lt.s32.totalorder %s9027_s26, %s9027_s26 }
  0xc3   :  { %p9034_p8 = por %p9033_p7, %p9032_p6 }
  0xc5   :  { %106 = dma.hbm_to_vmem [thread:$0]  %s10714_s15, 2048, %s101_s19, [#allocation9], %s9313_s5, %s9313_s5, %s9314_s28  }
  0xc6   :  { %p9035_p9 = pnand %p9034_p8, %p9028_p5 }
  0xc8   :  { %9038 = shalt.err (!%p9035_p9)
}
  0xc9   :  { %s10715_s0 = sld [smem:[#allocation86_spill]]  ;;  %s9333_s10 = smov [#allocation16]  }
  0xca   :  { %s148_s23 = sshll.u32 %s9333_s10, 4  ;;  %s9334_s7 = smov [#allocation19]   ;;  %s149_s23 = int_to_ptr.vmem [resolvable:$true] %s148_s23 }
  0xcb   :  { %s172_s30 = sshll.u32 %s9334_s7, 4  ;;  %s9047_s17 = scalar_lea.vmem %s149_s23, 2048  ;;  %s173_s30 = int_to_ptr.vmem [resolvable:$true] %s172_s30 }
  0xcc   :  { %p9048_p10 = scmp.ne.s32.totalorder %s149_s23, %s9047_s17  ;;  %p9052_p11 = scmp.lt.s32.totalorder %s149_s23, %s149_s23 }
  0xcd   :  { %p9053_p12 = scmp.lt.s32.totalorder %s9047_s17, %s9047_s17 }
  0xcf   :  { %130 = dma.hbm_to_vmem [thread:$0]  %s10715_s0, 2048, %s125_s2, [#allocation12], %s9313_s5, %s9313_s5, %s9314_s28  }
  0xd0   :  { %p9054_p13 = por %p9053_p12, %p9052_p11 }
  0xd2   :  { %p9055_p0 = pnand %p9054_p13, %p9048_p10 }
  0xd4   :  { %9058 = shalt.err (!%p9055_p0)
}
  0xd5   :  { %s10716_s11 = sld [smem:[#allocation88_spill]]  ;;  %s9067_s2 = scalar_lea.vmem %s173_s30, 2048 }
  0xd6   :  { %p9068_p1 = scmp.ne.s32.totalorder %s173_s30, %s9067_s2  ;;  %p9072_p2 = scmp.lt.s32.totalorder %s173_s30, %s173_s30 }
  0xd7   :  { %p9073_p3 = scmp.lt.s32.totalorder %s9067_s2, %s9067_s2 }
  0xd9   :  { %p9074_p4 = por %p9073_p3, %p9072_p2 }
  0xdb   :  { %154 = dma.hbm_to_vmem [thread:$0]  %s10716_s11, 2048, %s149_s23, [#allocation15], %s9313_s5, %s9313_s5, %s9314_s28  }
  0xdc   :  { %p9075_p5 = pnand %p9074_p4, %p9068_p1 }
  0xde   :  { %9078 = shalt.err (!%p9075_p5)
}
  0xdf   :  { %s10717_s4 = sld [smem:[#allocation90_spill]]  ;;  %s9335_s15 = smov [#allocation22]  }
  0xe0   :  { %s196_s26 = sshll.u32 %s9335_s15, 4  ;;  %s9336_s21 = smov [#allocation25]   ;;  %s197_s26 = int_to_ptr.vmem [resolvable:$true] %s196_s26 }
  0xe1   :  { %s220_s3 = sshll.u32 %s9336_s21, 4  ;;  %s9087_s0 = scalar_lea.vmem %s197_s26, 2048  ;;  %s221_s3 = int_to_ptr.vmem [resolvable:$true] %s220_s3 }
  0xe2   :  { %p9088_p6 = scmp.ne.s32.totalorder %s197_s26, %s9087_s0  ;;  %p9092_p7 = scmp.lt.s32.totalorder %s197_s26, %s197_s26 }
  0xe3   :  { %p9093_p8 = scmp.lt.s32.totalorder %s9087_s0, %s9087_s0 }
  0xe5   :  { %178 = dma.hbm_to_vmem [thread:$0]  %s10717_s4, 2048, %s173_s30, [#allocation18], %s9313_s5, %s9313_s5, %s9314_s28  }
  0xe6   :  { %p9094_p9 = por %p9093_p8, %p9092_p7 }
  0xe8   :  { %p9095_p10 = pnand %p9094_p9, %p9088_p6 }
  0xea   :  { %9098 = shalt.err (!%p9095_p10)
}
  0xeb   :  { %202 = dma.hbm_to_vmem [thread:$0]  %s10664_s12, 2048, %s197_s26, [#allocation21], %s9313_s5, %s9313_s5, %s9314_s28  }
  0xec   :  { %s9107_s7 = scalar_lea.vmem %s221_s3, 2048  ;;  %p9112_p12 = scmp.lt.s32.totalorder %s221_s3, %s221_s3 }
  0xed   :  { %p9108_p11 = scmp.ne.s32.totalorder %s221_s3, %s9107_s7  ;;  %p9113_p13 = scmp.lt.s32.totalorder %s9107_s7, %s9107_s7 }
  0xef   :  { %p9114_p0 = por %p9113_p13, %p9112_p12 }
  0xf1   :  { %p9115_p1 = pnand %p9114_p0, %p9108_p11 }
  0xf3   :  { %9118 = shalt.err (!%p9115_p1)
}
  0xf4   :  { %226 = dma.hbm_to_vmem [thread:$0]  %s10666_s14, 2048, %s221_s3, [#allocation24], %s9313_s5, %s9313_s5, %s9314_s28  }
  0xf5   :  { %s9337_s6 = smov [#allocation28]   ;;  %s9338_s11 = smov [#allocation31]  }
  0xf6   :  { %s244_s19 = sshll.u32 %s9337_s6, 4  ;;  %s268_s2 = sshll.u32 %s9338_s11, 4  ;;  %s245_s19 = int_to_ptr.vmem [resolvable:$true] %s244_s19  ;;  %s269_s2 = int_to_ptr.vmem [resolvable:$true] %s268_s2 }
  0xf7   :  { %s9127_s12 = scalar_lea.vmem %s245_s19, 2048  ;;  %p9132_p3 = scmp.lt.s32.totalorder %s245_s19, %s245_s19 }
  0xf8   :  { %p9128_p2 = scmp.ne.s32.totalorder %s245_s19, %s9127_s12  ;;  %p9133_p4 = scmp.lt.s32.totalorder %s9127_s12, %s9127_s12 }
  0xfa   :  { %p9134_p5 = por %p9133_p4, %p9132_p3 }
  0xfc   :  { %p9135_p6 = pnand %p9134_p5, %p9128_p2 }
  0xfe   :  { %9138 = shalt.err (!%p9135_p6)
}
  0xff   :  { %250 = dma.hbm_to_vmem [thread:$0]  %s10668_s16, 2048, %s245_s19, [#allocation27], %s9313_s5, %s9313_s5, %s9314_s28  }
 0x100   :  { %s9147_s14 = scalar_lea.vmem %s269_s2, 2048  ;;  %p9152_p8 = scmp.lt.s32.totalorder %s269_s2, %s269_s2 }
 0x101   :  { %p9148_p7 = scmp.ne.s32.totalorder %s269_s2, %s9147_s14  ;;  %p9153_p9 = scmp.lt.s32.totalorder %s9147_s14, %s9147_s14 }
 0x103   :  { %p9154_p10 = por %p9153_p9, %p9152_p8 }
 0x105   :  { %p9155_p11 = pnand %p9154_p10, %p9148_p7 }
 0x107   :  { %9158 = shalt.err (!%p9155_p11)
}
 0x108   :  { %274 = dma.hbm_to_vmem [thread:$0]  %s10670_s18, 2048, %s269_s2, [#allocation30], %s9313_s5, %s9313_s5, %s9314_s28  }
 0x109   :  { %s9339_s26 = smov [#allocation34]   ;;  %s9340_s3 = smov [#allocation37]  }
 0x10a   :  { %s292_s21 = sshll.u32 %s9339_s26, 4  ;;  %s316_s0 = sshll.u32 %s9340_s3, 4  ;;  %s293_s21 = int_to_ptr.vmem [resolvable:$true] %s292_s21  ;;  %s317_s0 = int_to_ptr.vmem [resolvable:$true] %s316_s0 }
 0x10b   :  { %s9167_s16 = scalar_lea.vmem %s293_s21, 4096  ;;  %p9172_p13 = scmp.lt.s32.totalorder %s293_s21, %s293_s21 }
 0x10c   :  { %p9168_p12 = scmp.ne.s32.totalorder %s293_s21, %s9167_s16  ;;  %p9173_p0 = scmp.lt.s32.totalorder %s9167_s16, %s9167_s16 }
 0x10e   :  { %p9174_p1 = por %p9173_p0, %p9172_p13 }
 0x110   :  { %p9175_p2 = pnand %p9174_p1, %p9168_p12 }
 0x112   :  { %9178 = shalt.err (!%p9175_p2)
}
 0x113   :  { %298 = dma.hbm_to_vmem [thread:$0]  %s10672_s20, 4096, %s293_s21, [#allocation33], %s9327_s9, %s9327_s9, %s9328_s27  }
 0x114   :  { %s9187_s18 = scalar_lea.vmem %s317_s0, 4096  ;;  %p9192_p4 = scmp.lt.s32.totalorder %s317_s0, %s317_s0 }
 0x115   :  { %p9188_p3 = scmp.ne.s32.totalorder %s317_s0, %s9187_s18  ;;  %p9193_p5 = scmp.lt.s32.totalorder %s9187_s18, %s9187_s18 }
 0x117   :  { %p9194_p6 = por %p9193_p5, %p9192_p4 }
 0x119   :  { %p9195_p7 = pnand %p9194_p6, %p9188_p3 }
 0x11b   :  { %9198 = shalt.err (!%p9195_p7)
}
 0x11c   :  { %322 = dma.hbm_to_vmem [thread:$0]  %s10674_s22, 4096, %s317_s0, [#allocation36], %s9317_s29, %s9317_s29, %s9318_s1  }
 0x11d   :  { %s9341_s17 = smov [#allocation40]   ;;  %s9342_s19 = smov [#allocation41]  }
 0x11e   :  { %s340_s6 = sshll.u32 %s9341_s17, 4  ;;  %s352_s11 = sshll.u32 %s9342_s19, 4  ;;  %s341_s6 = int_to_ptr.vmem [resolvable:$true] %s340_s6  ;;  %s353_s11 = int_to_ptr.vmem [resolvable:$true] %s352_s11 }
 0x11f   :  { %s9207_s20 = scalar_lea.vmem %s341_s6, 4096  ;;  %p9212_p9 = scmp.lt.s32.totalorder %s341_s6, %s341_s6 }
 0x120   :  { %p9208_p8 = scmp.ne.s32.totalorder %s341_s6, %s9207_s20  ;;  %p9213_p10 = scmp.lt.s32.totalorder %s9207_s20, %s9207_s20 }
 0x122   :  { %p9214_p11 = por %p9213_p10, %p9212_p9 }
 0x124   :  { %p9215_p12 = pnand %p9214_p11, %p9208_p8 }
 0x126   :  { %9218 = shalt.err (!%p9215_p12)
}
 0x127   :  { %346 = dma.hbm_to_vmem [thread:$0]  %s10676_s24, 4096, %s341_s6, [#allocation39], %s9327_s9, %s9327_s9, %s9328_s27  }
 0x128   :  { %s9227_s22 = scalar_lea.vmem %s353_s11, 4096  ;;  %p9232_p0 = scmp.lt.s32.totalorder %s353_s11, %s353_s11 }
 0x129   :  { %p9228_p13 = scmp.ne.s32.totalorder %s353_s11, %s9227_s22  ;;  %p9233_p1 = scmp.lt.s32.totalorder %s9227_s22, %s9227_s22 }
 0x12b   :  { %p9234_p2 = por %p9233_p1, %p9232_p0 }
 0x12d   :  { %p9235_p3 = pnand %p9234_p2, %p9228_p13 }
 0x12f   :  { %9238 = shalt.err (!%p9235_p3)
}
 0x130   :  { %358 = dma.hbm_to_vmem [thread:$0]  %s10677_s25, 4096, %s353_s11, [#allocation42], %s9317_s29, %s9317_s29, %s9318_s1  }
 0x131   :  { %9279 = dma.done.wait [#allocation3], 256  }
 0x132   :  { %9280 = vsyncadd [#allocation3], 4294967040 }
 0x133   :  { %9281 = dma.done.wait [#allocation6], 896  }
 0x134   :  { %9282 = vsyncadd [#allocation6], 4294966400 }
 0x135   :  { %9283 = dma.done.wait [#allocation9], 2304  }
 0x136   :  { %9284 = vsyncadd [#allocation9], 4294964992 }
 0x137   :  { %9285 = dma.done.wait [#allocation12], 4096  }
 0x138   :  { %9286 = vsyncadd [#allocation12], 4294963200 }
 0x139   :  { %9287 = dma.done.wait [#allocation15], 4096  }
 0x13a   :  { %9288 = vsyncadd [#allocation15], 4294963200 }
 0x13b   :  { %9289 = dma.done.wait [#allocation18], 4096  }
 0x13c   :  { %9290 = vsyncadd [#allocation18], 4294963200 }
 0x13d   :  { %9291 = dma.done.wait [#allocation21], 4096  }
 0x13e   :  { %9292 = vsyncadd [#allocation21], 4294963200 }
 0x13f   :  { %9293 = dma.done.wait [#allocation24], 4096  }
 0x140   :  { %9294 = vsyncadd [#allocation24], 4294963200 }
 0x141   :  { %9295 = dma.done.wait [#allocation27], 4096  }
 0x142   :  { %9296 = vsyncadd [#allocation27], 4294963200 }
 0x143   :  { %9297 = dma.done.wait [#allocation30], 4096  }
 0x144   :  { %9298 = vsyncadd [#allocation30], 4294963200 }
 0x145   :  { %9299 = dma.done.wait [#allocation33], 6144  }
 0x146   :  { %9300 = vsyncadd [#allocation33], 4294961152 }
 0x147   :  { %9301 = dma.done.wait [#allocation36], 8192  }
 0x148   :  { %9302 = vsyncadd [#allocation36], 4294959104 }
 0x149   :  { %9303 = dma.done.wait [#allocation39], 8192  }
 0x14a   :  { %9304 = vsyncadd [#allocation39], 4294959104 }
 0x14b   :  { %9305 = dma.done.wait [#allocation42], 4096  }
 0x14c   :  { %9306 = vsyncadd [#allocation42], 4294963200  ;;  %v443_v0 = vld [vmem:[#allocation2] sm:$0xff]  ;;  %v444_v1 = vld [vmem:[#allocation2 + $0x8] sm:$0xff]  ;;  %v9343_v37 = vmov 0   ;;  %v552_v50 = vlaneseq  ;;  %vm9345_vm0 = vmmov 0  }
 0x14d   :  { %529 = vadd.xlane.f32.xlu0 %v443_v0  ;;  %v7872_v2 = vld [vmem:[#allocation10 + $0x74] ss:$8 sps:$4 sm:$0xff]   ;;  %v7874_v3 = vld [vmem:[#allocation10 + $0x70] ss:$8 sps:$4 sm:$0xff]   ;;  %v7878_v14 = vld [vmem:[#allocation10 + $0x64] ss:$8 sps:$4 sm:$0xff]   ;;  %677 = vmatprep.mubr.bf16.mxu0 %v9343_v37 }
 0x14e   :  { %v7875_v4 = vld [vmem:[#allocation11 + $0x74] ss:$8 sps:$4 sm:$0xff]   ;;  %v7877_v5 = vld [vmem:[#allocation11 + $0x70] ss:$8 sps:$4 sm:$0xff]   ;;  %645 = vmatprep.subr.bf16.mxu0 %v7872_v2  ;;  %v7880_v15 = vld [vmem:[#allocation10 + $0x60] ss:$8 sps:$4 sm:$0xff]   ;;  %800 = vmatprep.mubr.bf16.mxu1 %v9343_v37 }
 0x14f   :  { %768 = vmatprep.subr.bf16.mxu1 %v7875_v4  ;;  %646 = vmatpush1.bf16.msra.mxu0 %v7874_v3  ;;  %v7881_v16 = vld [vmem:[#allocation11 + $0x64] ss:$8 sps:$4 sm:$0xff]   ;;  %v7883_v17 = vld [vmem:[#allocation11 + $0x60] ss:$8 sps:$4 sm:$0xff]   ;;  %v7884_v18 = vld [vmem:[#allocation10 + $0x54] ss:$8 sps:$4 sm:$0xff]  }
 0x150   :  { %769 = vmatpush1.bf16.msra.mxu1 %v7877_v5  ;;  %647 = vmatprep.subr.bf16.mxu0 %v7878_v14  ;;  %v7886_v19 = vld [vmem:[#allocation10 + $0x50] ss:$8 sps:$4 sm:$0xff]   ;;  %v7887_v20 = vld [vmem:[#allocation11 + $0x54] ss:$8 sps:$4 sm:$0xff]   ;;  %v7890_v22 = vld [vmem:[#allocation10 + $0x44] ss:$8 sps:$4 sm:$0xff]  }
 0x151   :  { %531 = vadd.xlane.f32.xlu0 %v444_v1  ;;  %770 = vmatprep.subr.bf16.mxu1 %v7881_v16  ;;  %v7889_v21 = vld [vmem:[#allocation11 + $0x50] ss:$8 sps:$4 sm:$0xff]   ;;  %v7892_v23 = vld [vmem:[#allocation10 + $0x40] ss:$8 sps:$4 sm:$0xff]   ;;  %v7893_v24 = vld [vmem:[#allocation11 + $0x44] ss:$8 sps:$4 sm:$0xff]  }
 0x152   :  { %v7895_v25 = vld [vmem:[#allocation11 + $0x40] ss:$8 sps:$4 sm:$0xff]   ;;  %v7896_v26 = vld [vmem:[#allocation10 + $0x34] ss:$8 sps:$4 sm:$0xff]   ;;  %v7898_v28 = vld [vmem:[#allocation10 + $0x30] ss:$8 sps:$4 sm:$0xff]  }
 0x153   :  { %648 = vmatpush1.bf16.msra.mxu0 %v7880_v15  ;;  %v7899_v27 = vld [vmem:[#allocation11 + $0x34] ss:$8 sps:$4 sm:$0xff]   ;;  %v7901_v29 = vld [vmem:[#allocation11 + $0x30] ss:$8 sps:$4 sm:$0xff]   ;;  %v7902_v30 = vld [vmem:[#allocation10 + $0x24] ss:$8 sps:$4 sm:$0xff]  }
 0x154   :  { %771 = vmatpush1.bf16.msra.mxu1 %v7883_v17  ;;  %649 = vmatprep.subr.bf16.mxu0 %v7884_v18  ;;  %v7905_v31 = vld [vmem:[#allocation11 + $0x24] ss:$8 sps:$4 sm:$0xff]   ;;  %v7904_v32 = vld [vmem:[#allocation10 + $0x20] ss:$8 sps:$4 sm:$0xff]   ;;  %v7908_v34 = vld [vmem:[#allocation10 + $0x14] ss:$8 sps:$4 sm:$0xff]  }
 0x155   :  { %772 = vmatprep.subr.bf16.mxu1 %v7887_v20  ;;  %v7907_v33 = vld [vmem:[#allocation11 + $0x20] ss:$8 sps:$4 sm:$0xff]   ;;  %v7911_v35 = vld [vmem:[#allocation11 + $0x14] ss:$8 sps:$4 sm:$0xff]   ;;  %v7910_v36 = vld [vmem:[#allocation10 + $0x10] ss:$8 sps:$4 sm:$0xff]  }
 0x156   :  { %v7913_v38 = vld [vmem:[#allocation11 + $0x10] ss:$8 sps:$4 sm:$0xff]   ;;  %v7914_v39 = vld [vmem:[#allocation10 + $0x4] ss:$8 sps:$4 sm:$0xff]   ;;  %v7916_v41 = vld [vmem:[#allocation10] ss:$8 sps:$4 sm:$0xff]  }
 0x157   :  { %650 = vmatpush1.bf16.msra.mxu0 %v7886_v19  ;;  %v7917_v40 = vld [vmem:[#allocation11 + $0x4] ss:$8 sps:$4 sm:$0xff]   ;;  %v7919_v42 = vld [vmem:[#allocation11] ss:$8 sps:$4 sm:$0xff]   ;;  %v7922_v43 = vld [vmem:[#allocation13 + $0x74] ss:$8 sps:$4 sm:$0xff]  }
 0x158   :  { %773 = vmatpush1.bf16.msra.mxu1 %v7889_v21  ;;  %651 = vmatprep.subr.bf16.mxu0 %v7890_v22  ;;  %v9652_v51 = vshrl.u32 %v552_v50, 7  ;;  %v9657_v53 = vld [vmem:[#allocation7] sm:$0xff]  ;;  %v7925_v3 = vld [vmem:[#allocation13 + $0x64] ss:$8 sps:$4 sm:$0xff]   ;;  %v7923_v4 = vld [vmem:[#allocation13 + $0x60] ss:$8 sps:$4 sm:$0xff]  }
 0x159   :  { %774 = vmatprep.subr.bf16.mxu1 %v7893_v24  ;;  %v7928_v5 = vld [vmem:[#allocation13 + $0x54] ss:$8 sps:$4 sm:$0xff]   ;;  %v7938_v14 = vld [vmem:[#allocation13 + $0x10] ss:$8 sps:$4 sm:$0xff]   ;;  %v7943_v15 = vld [vmem:[#allocation13 + $0x4] ss:$8 sps:$4 sm:$0xff]  }
 0x15a   :  { %v9655_v52 = vsub.s32 0, %v9652_v51  ;;  %v9663_v57 = vsub.s32 1, %v9652_v51  ;;  %v7941_v16 = vld [vmem:[#allocation13] ss:$8 sps:$4 sm:$0xff]   ;;  %v9344_v17 = vmov 0.0   ;;  %vm1022_vm1 = vcmask 130048  }
 0x15b   :  { %652 = vmatpush1.bf16.msra.mxu0 %v7892_v23  ;;  %v448_v50 = vld [vmem:[#allocation5 + $0x18] sm:$0xff]  ;;  %vm1953_vm2 = vcmask 261120   ;;  %s9347_s24 = smov [#allocation43]  }
 0x15c   :  { %775 = vmatpush1.bf16.msra.mxu1 %v7895_v25  ;;  %653 = vmatprep.subr.bf16.mxu0 %v7896_v26  ;;  %v555_v56 = vrot.slane %v9657_v53, %v9655_v52  ;;  %10718 = vst [vmem:[#allocation62_spill] sm:$0xff] %v9663_v57  ;;  %v561_v61 = vrot.slane %v9657_v53, %v9663_v57  ;;  %s6973_s25 = sshll.u32 %s9347_s24, 4  ;;  %s6974_s25 = int_to_ptr.vmem [resolvable:$true] %s6973_s25 }
 0x15d   :  { %776 = vmatprep.subr.bf16.mxu1 %v7899_v27  ;;  %s9239_s29 = scalar_lea.vmem %s6974_s25, 256  ;;  %p9244_p5 = scmp.lt.s32.totalorder %s6974_s25, %s6974_s25 }
 0x15e   :  { %p9240_p4 = scmp.ne.s32.totalorder %s6974_s25, %s9239_s29  ;;  %p9245_p6 = scmp.lt.s32.totalorder %s9239_s29, %s9239_s29 }
 0x15f   :  { %654 = vmatpush1.bf16.msra.mxu0 %v7898_v28 }
 0x160   :  { %777 = vmatpush1.bf16.msra.mxu1 %v7901_v29  ;;  %655 = vmatprep.subr.bf16.mxu0 %v7902_v30  ;;  %p9246_p7 = por %p9245_p6, %p9244_p5 }
 0x161   :  { %778 = vmatprep.subr.bf16.mxu1 %v7905_v31 }
 0x162   :  { %p9247_p8 = pnand %p9246_p7, %p9240_p4 }
 0x163   :  { %656 = vmatpush1.bf16.msra.mxu0 %v7904_v32 }
 0x164   :  { %779 = vmatpush1.bf16.msra.mxu1 %v7907_v33  ;;  %657 = vmatprep.subr.bf16.mxu0 %v7908_v34 }
 0x165   :  { %780 = vmatprep.subr.bf16.mxu1 %v7911_v35 }
 0x167   :  { %658 = vmatpush1.bf16.msra.mxu0 %v7910_v36 }
 0x168   :  { %781 = vmatpush1.bf16.msra.mxu1 %v7913_v38  ;;  %659 = vmatprep.subr.bf16.mxu0 %v7914_v39 }
 0x169   :  { %782 = vmatprep.subr.bf16.mxu1 %v7917_v40 }
 0x16b   :  { %660 = vmatpush1.bf16.msra.mxu0 %v7916_v41 }
 0x16c   :  { %783 = vmatpush1.bf16.msra.mxu1 %v7919_v42  ;;  %891 = vmatprep.subr.bf16.mxu0 %v7922_v43 }
 0x16d   :  { %7722 = vmatprep.subr.bf16.mxu1 %v9344_v17 }
 0x1d6   :  { %v530_v6 = vpop.xlane.xlu0 %529 }
 0x1d7   :  { %v534_v7 = vmul.f32 0.0078125, %v530_v6  ;;  %v7926_v6 = vld [vmem:[#allocation13 + $0x50] ss:$8 sps:$4 sm:$0xff]  }
 0x1d9   :  { %v9642_v8 = vsub.f32 %v443_v0, %v534_v7  ;;  %v7931_v7 = vld [vmem:[#allocation13 + $0x44] ss:$8 sps:$4 sm:$0xff]  }
 0x1da   :  { %v532_v9 = vpop.xlane.xlu0 %531 }
 0x1db   :  { %v535_v10 = vmul.f32 0.0078125, %v532_v9  ;;  %v538_v11 = vmul.f32 %v9642_v8, %v9642_v8  ;;  %v7934_v9 = vld [vmem:[#allocation13 + $0x34] ss:$8 sps:$4 sm:$0xff]  }
 0x1dd   :  { %v9646_v12 = vsub.f32 %v444_v1, %v535_v10  ;;  %540 = vadd.xlane.f32.xlu1 %v538_v11  ;;  %v7920_v1 = vld [vmem:[#allocation13 + $0x70] ss:$8 sps:$4 sm:$0xff]   ;;  %v7937_v11 = vld [vmem:[#allocation13 + $0x24] ss:$8 sps:$4 sm:$0xff]  }
 0x1de   :  { %v7932_v10 = vld [vmem:[#allocation13 + $0x30] ss:$8 sps:$4 sm:$0xff]  }
 0x1df   :  { %v539_v13 = vmul.f32 %v9646_v12, %v9646_v12 }
 0x1e1   :  { %542 = vadd.xlane.f32.xlu1 %v539_v13  ;;  %v7940_v13 = vld [vmem:[#allocation13 + $0x14] ss:$8 sps:$4 sm:$0xff]  }
 0x266   :  { %v541_v44 = vpop.xlane.xlu1 %540 }
 0x267   :  { %v544_v45 = vmul.f32 0.0078125, %v541_v44  ;;  %v445_v44 = vld [vmem:[#allocation5] sm:$0xff] }
 0x269   :  { %v546_v46 = vadd.f32 1e-05, %v544_v45 }
 0x26a   :  { %v543_v47 = vpop.xlane.xlu1 %542 }
 0x26b   :  { %8480 = vrsqrt.f32 %v546_v46  ;;  %v545_v48 = vmul.f32 0.0078125, %v543_v47 }
 0x26d   :  { %v547_v49 = vadd.f32 1e-05, %v545_v48  ;;  %v447_v48 = vld [vmem:[#allocation5 + $0x10] sm:$0xff] }
 0x26f   :  { %8482 = vrsqrt.f32 %v547_v49  ;;  %v446_v49 = vld [vmem:[#allocation5 + $0x8] sm:$0xff] }
 0x278   :  { %v8481_v54 = vpop.eup %8480 }
 0x279   :  { %v550_v55 = vmul.f32 %v8481_v54, %v9642_v8  ;;  %v7929_v8 = vld [vmem:[#allocation13 + $0x40] ss:$8 sps:$4 sm:$0xff]  }
 0x27b   :  { %v556_v60 = vmul.f32 %v555_v56, %v550_v55 }
 0x27c   :  { %v8483_v58 = vpop.eup %8482 }
 0x27d   :  { %v551_v59 = vmul.f32 %v8483_v58, %v9646_v12  ;;  %v562_v63 = vadd.f32 %v561_v61, %v556_v60  ;;  %v7935_v12 = vld [vmem:[#allocation13 + $0x20] ss:$8 sps:$4 sm:$0xff]  }
 0x27f   :  { %v557_v62 = vmul.f32 %v555_v56, %v551_v59 }
 0x281   :  { %v563_v0 = vadd.f32 %v561_v61, %v557_v62 }
 0x283   :  { %v564_v2 = vpack.c.bf16 %v563_v0, %v562_v63 }
 0x285   :  { %678 = vmatmul.mubr.bf16.vlgmr.msra.gmra.mxu0 %v564_v2  ;;  %801 = vmatmul.mubr.bf16.vlgmr.msra.gmra.mxu1 %v564_v2 }
 0x286   :  { %892 = vmatpush1.bf16.msra.mxu0 %v7920_v1  ;;  %923 = vmatprep.mubr.bf16.mxu0 %v9343_v37 }
 0x287   :  { %893 = vmatprep.subr.bf16.mxu0 %v7925_v3  ;;  %7724 = vmatprep.mubr.msk.bf16.mxu1 %vm9345_vm0, %v9344_v17 }
 0x28a   :  { %894 = vmatpush1.bf16.msra.mxu0 %v7923_v4 }
 0x28b   :  { %895 = vmatprep.subr.bf16.mxu0 %v7928_v5 }
 0x28e   :  { %896 = vmatpush1.bf16.msra.mxu0 %v7926_v6 }
 0x28f   :  { %897 = vmatprep.subr.bf16.mxu0 %v7931_v7 }
 0x292   :  { %898 = vmatpush1.bf16.msra.mxu0 %v7929_v8 }
 0x293   :  { %899 = vmatprep.subr.bf16.mxu0 %v7934_v9 }
 0x296   :  { %900 = vmatpush1.bf16.msra.mxu0 %v7932_v10 }
 0x297   :  { %901 = vmatprep.subr.bf16.mxu0 %v7937_v11 }
 0x29a   :  { %902 = vmatpush1.bf16.msra.mxu0 %v7935_v12 }
 0x29b   :  { %903 = vmatprep.subr.bf16.mxu0 %v7940_v13 }
 0x29e   :  { %904 = vmatpush1.bf16.msra.mxu0 %v7938_v14 }
 0x29f   :  { %905 = vmatprep.subr.bf16.mxu0 %v7943_v15 }
 0x2a2   :  { %906 = vmatpush1.bf16.msra.mxu0 %v7941_v16 }
 0x2a5   :  { %924 = vmatmul.mubr.bf16.vlgmr.msra.gmra.mxu0 %v564_v2 }
 0x345   :  { %v802_v18 = vpop.f32.mrf.mxu1  ;;  %v679_v19 = vpop.f32.mrf.mxu0 }
 0x347   :  { %v804_v20 = vpop.f32.mrf.mxu1  ;;  %v681_v22 = vpop.f32.mrf.mxu0 }
 0x349   :  { %v806_v21 = vpop.f32.mrf.mxu1  ;;  %v683_v24 = vpop.f32.mrf.mxu0 }
 0x34a   :  { %v936_v23 = vpack.c.bf16 %v806_v21, %v802_v18  ;;  %v934_v26 = vpack.c.bf16 %v683_v24, %v679_v19 }
 0x34b   :  { %v808_v25 = vpop.f32.mrf.mxu1  ;;  %v685_v28 = vpop.f32.mrf.mxu0 }
 0x34c   :  { %7723 = vmatpush3.bf16.xpose.msra.mxu1 %v936_v23  ;;  %v937_v27 = vpack.c.bf16 %v808_v25, %v804_v20  ;;  %v935_v29 = vpack.c.bf16 %v685_v28, %v681_v22 }
 0x34d   :  { %7728 = vmatprep.subr.bf16.mxu1 %v9344_v17 }
 0x353   :  { %7725 = vmatmul.mubr.bf16.vlgmr.msra.gmra.mxu1 %v934_v26 }
 0x354   :  { %7729 = vmatpush3.bf16.xpose.msra.mxu1 %v937_v27  ;;  %7730 = vmatprep.mubr.msk.bf16.mxu1 %vm9345_vm0, %v9344_v17 }
 0x355   :  { %7734 = vmatprep.subr.bf16.mxu1 %v9344_v17 }
 0x35b   :  { %7731 = vmatmul.mubr.bf16.vlgmr.msra.gmra.mxu1 %v935_v29 }
 0x35c   :  { %7736 = vmatprep.mubr.msk.bf16.mxu1 %vm9345_vm0, %v9344_v17 }
 0x365   :  { %v925_v30 = vpop.f32.mrf.mxu0 }
 0x367   :  { %v927_v31 = vpop.f32.mrf.mxu0 }
 0x369   :  { %v929_v32 = vpop.f32.mrf.mxu0 }
 0x36a   :  { %v938_v33 = vpack.c.bf16 %v929_v32, %v925_v30  ;;  %v7946_v32 = vld [vmem:[#allocation16 + $0x74] ss:$8 sps:$4 sm:$0xff]  }
 0x36b   :  { %v931_v5 = vpop.f32.mrf.mxu0 }
 0x36c   :  { %7735 = vmatpush3.bf16.msra.mxu1 %v938_v33  ;;  %v939_v9 = vpack.c.bf16 %v931_v5, %v927_v31  ;;  %v7944_v33 = vld [vmem:[#allocation16 + $0x70] ss:$8 sps:$4 sm:$0xff]   ;;  %v8004_v5 = vld [vmem:[#allocation14] sm:$0xff]  }
 0x36d   :  { %7740 = vmatprep.subr.bf16.mxu1 %v9344_v17 }
 0x413   :  { %v974_v34 = vpop.f32.mrf.mxu1 }
 0x414   :  { %v1023_v35 = vsel %vm1022_vm1, %v974_v34, -inf }
 0x415   :  { %1024 = vmax.xlane.f32.xlu0 %v1023_v35  ;;  %v7726_v36 = vpop.f32.mrf.mxu1  ;;  %v7947_v35 = vld [vmem:[#allocation16 + $0x60] ss:$8 sps:$4 sm:$0xff]  }
 0x416   :  { %v7952_v36 = vld [vmem:[#allocation16 + $0x54] ss:$8 sps:$4 sm:$0xff]  }
 0x417   :  { %v977_v38 = vpop.f32.mrf.mxu1 }
 0x418   :  { %v1026_v39 = vsel %vm1022_vm1, %v977_v38, -inf }
 0x419   :  { %1027 = vmax.xlane.f32.xlu1 %v1026_v39  ;;  %v7727_v40 = vpop.f32.mrf.mxu1  ;;  %v7955_v39 = vld [vmem:[#allocation16 + $0x44] ss:$8 sps:$4 sm:$0xff]  }
 0x41a   :  { %v7953_v40 = vld [vmem:[#allocation16 + $0x40] ss:$8 sps:$4 sm:$0xff]  }
 0x41b   :  { %v1015_v41 = vpop.f32.mrf.mxu1 }
 0x41c   :  { %v1029_v42 = vsel %vm1022_vm1, %v1015_v41, -inf }
 0x41d   :  { %1030 = vmax.xlane.f32.xlu0 %v1029_v42  ;;  %v7732_v43 = vpop.f32.mrf.mxu1  ;;  %v7958_v42 = vld [vmem:[#allocation16 + $0x34] ss:$8 sps:$4 sm:$0xff]  }
 0x41e   :  { %v7961_v43 = vld [vmem:[#allocation16 + $0x24] ss:$8 sps:$4 sm:$0xff]  }
 0x41f   :  { %v1018_v45 = vpop.f32.mrf.mxu1 }
 0x420   :  { %v1032_v46 = vsel %vm1022_vm1, %v1018_v45, -inf }
 0x421   :  { %1033 = vmax.xlane.f32.xlu1 %v1032_v46  ;;  %v7733_v47 = vpop.f32.mrf.mxu1  ;;  %1382 = vadd.xlane.f32.xlu0 %v445_v44  ;;  %v7969_v46 = vld [vmem:[#allocation14 + $0x38] sm:$0xff]  }
 0x422   :  { %v7964_v47 = vld [vmem:[#allocation16 + $0x14] ss:$8 sps:$4 sm:$0xff]  }
 0x425   :  { %1386 = vadd.xlane.f32.xlu0 %v447_v48  ;;  %1384 = vadd.xlane.f32.xlu1 %v446_v49 }
 0x429   :  { %1388 = vadd.xlane.f32.xlu1 %v448_v50 }
 0x49e   :  { %v1025_v54 = vpop.xlane.xlu0 %1024 }
 0x49f   :  { %v1035_v55 = vsub.f32 %v974_v34, %v1025_v54  ;;  %v7949_v34 = vld [vmem:[#allocation16 + $0x64] ss:$8 sps:$4 sm:$0xff]   ;;  %v7972_v54 = vld [vmem:[#allocation19 + $0x74] ss:$8 sps:$4 sm:$0xff]  }
 0x4a1   :  { %v1039_v56 = vmul.f32 1.442695, %v1035_v55  ;;  %v7973_v55 = vld [vmem:[#allocation14 + $0x70] sm:$0xff]  }
 0x4a2   :  { %v1028_v58 = vpop.xlane.xlu1 %1027 }
 0x4a3   :  { %v1036_v59 = vsub.f32 %v977_v38, %v1028_v58  ;;  %8484 = vpow2.f32 %v1039_v56  ;;  %v7950_v38 = vld [vmem:[#allocation16 + $0x50] ss:$8 sps:$4 sm:$0xff]   ;;  %v7978_v58 = vld [vmem:[#allocation14 + $0x68] sm:$0xff]  }
 0x4a4   :  { %v7974_v56 = vld [vmem:[#allocation14 + $0x30] sm:$0xff]  }
 0x4a5   :  { %v1041_v60 = vmul.f32 1.442695, %v1036_v59  ;;  %v7979_v59 = vld [vmem:[#allocation14 + $0x28] sm:$0xff]  }
 0x4a6   :  { %v1031_v61 = vpop.xlane.xlu0 %1030 }
 0x4a7   :  { %8486 = vpow2.f32 %v1041_v60  ;;  %v1037_v62 = vsub.f32 %v1015_v41, %v1031_v61  ;;  %v7956_v41 = vld [vmem:[#allocation16 + $0x30] ss:$8 sps:$4 sm:$0xff]   ;;  %v7983_v60 = vld [vmem:[#allocation14 + $0x60] sm:$0xff]  }
 0x4a8   :  { %v7984_v61 = vld [vmem:[#allocation14 + $0x20] sm:$0xff]  }
 0x4a9   :  { %v1043_v63 = vmul.f32 1.442695, %v1037_v62  ;;  %v7988_v62 = vld [vmem:[#allocation14 + $0x58] sm:$0xff]  }
 0x4aa   :  { %v1034_v0 = vpop.xlane.xlu1 %1033  ;;  %v1383_v3 = vpop.xlane.xlu0 %1382 }
 0x4ab   :  { %8488 = vpow2.f32 %v1043_v63  ;;  %v1038_v1 = vsub.f32 %v1018_v45, %v1034_v0  ;;  %v1390_v10 = vmul.f32 0.0078125, %v1383_v3  ;;  %v7959_v45 = vld [vmem:[#allocation16 + $0x20] ss:$8 sps:$4 sm:$0xff]   ;;  %v7989_v63 = vld [vmem:[#allocation14 + $0x18] sm:$0xff]   ;;  %v7993_v0 = vld [vmem:[#allocation14 + $0x50] sm:$0xff]  }
 0x4ac   :  { %v7999_v3 = vld [vmem:[#allocation14 + $0x8] sm:$0xff]  }
 0x4ad   :  { %v1045_v2 = vmul.f32 1.442695, %v1038_v1  ;;  %v9687_v14 = vsub.f32 %v445_v44, %v1390_v10  ;;  %v7968_v44 = vld [vmem:[#allocation14 + $0x78] sm:$0xff]   ;;  %v7994_v1 = vld [vmem:[#allocation14 + $0x10] sm:$0xff]  }
 0x4ae   :  { %v1385_v8 = vpop.xlane.xlu1 %1384  ;;  %v1387_v11 = vpop.xlane.xlu0 %1386  ;;  %7482 = vmatprep.subr.bf16.mxu0 %v7968_v44  ;;  %v7970_v44 = vld [vmem:[#allocation19 + $0x70] ss:$8 sps:$4 sm:$0xff]  }
 0x4af   :  { %8490 = vpow2.f32 %v1045_v2  ;;  %v1392_v15 = vmul.f32 0.0078125, %v1387_v11  ;;  %v1391_v16 = vmul.f32 0.0078125, %v1385_v8  ;;  %v1398_v25 = vmul.f32 %v9687_v14, %v9687_v14  ;;  %7483 = vmatpush3.bf16.msra.mxu0 %v7969_v46  ;;  %v7998_v2 = vld [vmem:[#allocation14 + $0x48] sm:$0xff]  }
 0x4b0   :  { %v8485_v4 = vpop.eup %8484  ;;  %7484 = vmatprep.subr.bf16.mxu0 %v7973_v55  ;;  %v7977_v46 = vld [vmem:[#allocation19 + $0x64] ss:$8 sps:$4 sm:$0xff]  }
 0x4b1   :  { %v1047_v20 = vsel %vm1022_vm1, %v8485_v4, 0.0  ;;  %v9691_v23 = vsub.f32 %v447_v48, %v1392_v15  ;;  %v9693_v24 = vsub.f32 %v446_v49, %v1391_v16  ;;  %v7962_v48 = vld [vmem:[#allocation16 + $0x10] ss:$8 sps:$4 sm:$0xff]   ;;  %v7967_v49 = vld [vmem:[#allocation16 + $0x4] ss:$8 sps:$4 sm:$0xff]  }
 0x4b2   :  { %v1389_v18 = vpop.xlane.xlu1 %1388  ;;  %v7987_v55 = vld [vmem:[#allocation19 + $0x44] ss:$8 sps:$4 sm:$0xff]  }
 0x4b3   :  { %v1393_v26 = vmul.f32 0.0078125, %v1389_v18  ;;  %v1400_v29 = vmul.f32 %v9691_v23, %v9691_v23  ;;  %v1399_v30 = vmul.f32 %v9693_v24, %v9693_v24  ;;  %7485 = vmatpush3.bf16.msra.mxu0 %v7974_v56  ;;  %v7985_v56 = vld [vmem:[#allocation19 + $0x40] ss:$8 sps:$4 sm:$0xff]  }
 0x4b4   :  { %v8487_v6 = vpop.eup %8486  ;;  %7486 = vmatprep.subr.bf16.mxu0 %v7978_v58  ;;  %v7992_v58 = vld [vmem:[#allocation19 + $0x34] ss:$8 sps:$4 sm:$0xff]  }
 0x4b5   :  { %v1063_v7 = vpack.c.bf16 %v8487_v6, %v8485_v4  ;;  %v1050_v27 = vsel %vm1022_vm1, %v8487_v6, 0.0  ;;  %v9700_v28 = vsub.f32 %v448_v50, %v1393_v26  ;;  %v7965_v50 = vld [vmem:[#allocation16] ss:$8 sps:$4 sm:$0xff]   ;;  %v8010_v6 = vld [vmem:[#allocation17 + $0x74] ss:$8 sps:$4 sm:$0xff]  }
 0x4b6   :  { %v8003_v4 = vld [vmem:[#allocation14 + $0x40] sm:$0xff]  }
 0x4b7   :  { %7737 = vmatmul.mubr.msk.bf16.vlgmr.msra.gmra.mxu1 %vm1022_vm1, %v1063_v7  ;;  %v1401_v31 = vmul.f32 %v9700_v28, %v9700_v28  ;;  %7487 = vmatpush3.bf16.msra.mxu0 %v7979_v59 }
 0x4b8   :  { %v8489_v12 = vpop.eup %8488  ;;  %7741 = vmatpush3.bf16.msra.mxu1 %v939_v9  ;;  %7742 = vmatprep.mubr.msk.bf16.mxu1 %vm9345_vm0, %v9344_v17 }
 0x4b9   :  { %v1053_v13 = vsel %vm1022_vm1, %v8489_v12, 0.0  ;;  %1524 = vmatprep.subr.bf16.mxu1 %v7946_v32  ;;  %7488 = vmatprep.subr.bf16.mxu0 %v7983_v60  ;;  %v9715_v32 = vsub.s32 4, %v9652_v51  ;;  %v7990_v60 = vld [vmem:[#allocation19 + $0x30] ss:$8 sps:$4 sm:$0xff]  }
 0x4ba   :  { %1054 = vadd.xlane.f32.xlu0 %v1053_v13 }
 0x4bb   :  { %7489 = vmatpush3.bf16.msra.mxu0 %v7984_v61 }
 0x4bc   :  { %v8491_v19 = vpop.eup %8490  ;;  %7490 = vmatprep.subr.bf16.mxu0 %v7988_v62  ;;  %v7997_v62 = vld [vmem:[#allocation19 + $0x24] ss:$8 sps:$4 sm:$0xff]  }
 0x4bd   :  { %v1056_v21 = vsel %vm1022_vm1, %v8491_v19, 0.0  ;;  %v1064_v22 = vpack.c.bf16 %v8491_v19, %v8489_v12 }
 0x4be   :  { %1048 = vadd.xlane.f32.xlu0 %v1047_v20  ;;  %1057 = vadd.xlane.f32.xlu1 %v1056_v21 }
 0x4bf   :  { %7743 = vmatmul.mubr.msk.bf16.vlgmr.msra.gmra.mxu1 %vm1022_vm1, %v1064_v22  ;;  %7491 = vmatpush3.bf16.msra.mxu0 %v7989_v63 }
 0x4c0   :  { %1556 = vmatprep.mubr.bf16.mxu1 %v9343_v37  ;;  %1525 = vmatpush1.bf16.msra.mxu1 %v7944_v33 }
 0x4c1   :  { %1526 = vmatprep.subr.bf16.mxu1 %v7949_v34  ;;  %7492 = vmatprep.subr.bf16.mxu0 %v7993_v0  ;;  %v7995_v0 = vld [vmem:[#allocation19 + $0x20] ss:$8 sps:$4 sm:$0xff]  }
 0x4c2   :  { %1402 = vadd.xlane.f32.xlu0 %v1398_v25  ;;  %1051 = vadd.xlane.f32.xlu1 %v1050_v27  ;;  %v9709_v27 = vsub.s32 3, %v9652_v51 }
 0x4c3   :  { %7493 = vmatpush3.bf16.msra.mxu0 %v7994_v1 }
 0x4c4   :  { %1527 = vmatpush1.bf16.msra.mxu1 %v7947_v35  ;;  %7494 = vmatprep.subr.bf16.mxu0 %v7998_v2  ;;  %v8002_v2 = vld [vmem:[#allocation19 + $0x14] ss:$8 sps:$4 sm:$0xff]  }
 0x4c5   :  { %1528 = vmatprep.subr.bf16.mxu1 %v7952_v36  ;;  %v1437_v36 = vrot.slane %v9657_v53, %v9715_v32 }
 0x4c6   :  { %1406 = vadd.xlane.f32.xlu0 %v1400_v29  ;;  %1404 = vadd.xlane.f32.xlu1 %v1399_v30 }
 0x4c7   :  { %7495 = vmatpush3.bf16.msra.mxu0 %v7999_v3 }
 0x4c8   :  { %1529 = vmatpush1.bf16.msra.mxu1 %v7950_v38  ;;  %7496 = vmatprep.subr.bf16.mxu0 %v8003_v4  ;;  %v8000_v4 = vld [vmem:[#allocation19 + $0x10] ss:$8 sps:$4 sm:$0xff]  }
 0x4c9   :  { %1530 = vmatprep.subr.bf16.mxu1 %v7955_v39 }
 0x4ca   :  { %1408 = vadd.xlane.f32.xlu1 %v1401_v31  ;;  %v1429_v31 = vrot.slane %v9657_v53, %v9709_v27 }
 0x4cb   :  { %7497 = vmatpush3.bf16.msra.mxu0 %v8004_v5 }
 0x4cc   :  { %1531 = vmatpush1.bf16.msra.mxu1 %v7953_v40  ;;  %1657 = vmatprep.subr.bf16.mxu0 %v8010_v6 }
 0x4cd   :  { %1532 = vmatprep.subr.bf16.mxu1 %v7958_v42 }
 0x4d0   :  { %1533 = vmatpush1.bf16.msra.mxu1 %v7956_v41 }
 0x4d1   :  { %1534 = vmatprep.subr.bf16.mxu1 %v7961_v43 }
 0x4d4   :  { %1535 = vmatpush1.bf16.msra.mxu1 %v7959_v45 }
 0x4d5   :  { %1536 = vmatprep.subr.bf16.mxu1 %v7964_v47 }
 0x4d8   :  { %1537 = vmatpush1.bf16.msra.mxu1 %v7962_v48  ;;  %v7975_v48 = vld [vmem:[#allocation19 + $0x60] ss:$8 sps:$4 sm:$0xff]  }
 0x4d9   :  { %1538 = vmatprep.subr.bf16.mxu1 %v7967_v49  ;;  %v7982_v49 = vld [vmem:[#allocation19 + $0x54] ss:$8 sps:$4 sm:$0xff]  }
 0x4dc   :  { %1539 = vmatpush1.bf16.msra.mxu1 %v7965_v50 }
 0x4dd   :  { %1790 = vmatprep.subr.bf16.mxu1 %v7972_v54  ;;  %v7980_v54 = vld [vmem:[#allocation19 + $0x50] ss:$8 sps:$4 sm:$0xff]  }
 0x543   :  { %v1055_v7 = vpop.xlane.xlu0 %1054 }
 0x547   :  { %v1049_v8 = vpop.xlane.xlu0 %1048  ;;  %v1058_v9 = vpop.xlane.xlu1 %1057 }
 0x54b   :  { %v1403_v10 = vpop.xlane.xlu0 %1402  ;;  %v1052_v11 = vpop.xlane.xlu1 %1051 }
 0x54c   :  { %v1410_v12 = vmul.f32 0.0078125, %v1403_v10 }
 0x54e   :  { %v1414_v13 = vadd.f32 1e-05, %v1410_v12 }
 0x54f   :  { %v1407_v15 = vpop.xlane.xlu0 %1406  ;;  %v1405_v16 = vpop.xlane.xlu1 %1404 }
 0x550   :  { %8492 = vrsqrt.f32 %v1414_v13  ;;  %v1412_v18 = vmul.f32 0.0078125, %v1407_v15  ;;  %v1411_v19 = vmul.f32 0.0078125, %v1405_v16  ;;  %v8005_v16 = vld [vmem:[#allocation19] ss:$8 sps:$4 sm:$0xff]  }
 0x552   :  { %v1415_v20 = vadd.f32 1e-05, %v1411_v19  ;;  %v1416_v21 = vadd.f32 1e-05, %v1412_v18 }
 0x553   :  { %v1409_v22 = vpop.xlane.xlu1 %1408 }
 0x554   :  { %v1413_v25 = vmul.f32 0.0078125, %v1409_v22  ;;  %8494 = vrsqrt.f32 %v1415_v20 }
 0x555   :  { %8496 = vrsqrt.f32 %v1416_v21  ;;  %v8008_v21 = vld [vmem:[#allocation17 + $0x70] ss:$8 sps:$4 sm:$0xff]  }
 0x556   :  { %v1417_v26 = vadd.f32 1e-05, %v1413_v25  ;;  %v8013_v25 = vld [vmem:[#allocation17 + $0x64] ss:$8 sps:$4 sm:$0xff]  }
 0x558   :  { %8498 = vrsqrt.f32 %v1417_v26  ;;  %v8011_v26 = vld [vmem:[#allocation17 + $0x60] ss:$8 sps:$4 sm:$0xff]  }
 0x559   :  { %8500 = vrcp.f32 %v1055_v7  ;;  %v8007_v7 = vld [vmem:[#allocation19 + $0x4] ss:$8 sps:$4 sm:$0xff]  }
 0x55a   :  { %8502 = vrcp.f32 %v1052_v11 }
 0x55b   :  { %8504 = vrcp.f32 %v1058_v9 }
 0x55c   :  { %8506 = vrcp.f32 %v1049_v8 }
 0x55d   :  { %v8493_v29 = vpop.eup %8492 }
 0x55e   :  { %v1422_v30 = vmul.f32 %v8493_v29, %v9687_v14  ;;  %v8016_v29 = vld [vmem:[#allocation17 + $0x54] ss:$8 sps:$4 sm:$0xff]  }
 0x560   :  { %v1430_v35 = vmul.f32 %v1429_v31, %v1422_v30  ;;  %v8014_v30 = vld [vmem:[#allocation17 + $0x50] ss:$8 sps:$4 sm:$0xff]  }
 0x561   :  { %v8495_v33 = vpop.eup %8494 }
 0x562   :  { %v1423_v34 = vmul.f32 %v8495_v33, %v9693_v24  ;;  %v8497_v38 = vpop.eup %8496  ;;  %v1438_v42 = vadd.f32 %v1437_v36, %v1430_v35  ;;  %v8017_v33 = vld [vmem:[#allocation17 + $0x40] ss:$8 sps:$4 sm:$0xff]   ;;  %v8020_v35 = vld [vmem:[#allocation17 + $0x30] ss:$8 sps:$4 sm:$0xff]  }
 0x563   :  { %v1424_v43 = vmul.f32 %v8497_v38, %v9691_v23  ;;  %v8023_v38 = vld [vmem:[#allocation17 + $0x20] ss:$8 sps:$4 sm:$0xff]  }
 0x564   :  { %v1431_v40 = vmul.f32 %v1429_v31, %v1423_v34  ;;  %v8022_v34 = vld [vmem:[#allocation17 + $0x34] ss:$8 sps:$4 sm:$0xff]  }
 0x565   :  { %v8499_v39 = vpop.eup %8498  ;;  %v1432_v24 = vmul.f32 %v1429_v31, %v1424_v43 }
 0x566   :  { %v1425_v41 = vmul.f32 %v8499_v39, %v9700_v28  ;;  %v1439_v14 = vadd.f32 %v1437_v36, %v1431_v40  ;;  %v8501_v5 = vpop.eup %8500  ;;  %v8028_v39 = vld [vmem:[#allocation17 + $0x14] ss:$8 sps:$4 sm:$0xff]   ;;  %v8026_v40 = vld [vmem:[#allocation17 + $0x10] ss:$8 sps:$4 sm:$0xff]  }
 0x567   :  { %v1440_v28 = vadd.f32 %v1437_v36, %v1432_v24  ;;  %v8503_v8 = vpop.eup %8502 }
 0x568   :  { %v9722_v45 = vpack.c.bf16 %v1439_v14, %v1438_v42  ;;  %v1433_v47 = vmul.f32 %v1429_v31, %v1425_v41  ;;  %v8505_v9 = vpop.eup %8504  ;;  %v8019_v31 = vld [vmem:[#allocation17 + $0x44] ss:$8 sps:$4 sm:$0xff]   ;;  %v8029_v42 = vld [vmem:[#allocation17] ss:$8 sps:$4 sm:$0xff]  }
 0x569   :  { %v8507_v12 = vpop.eup %8506  ;;  %v8031_v41 = vld [vmem:[#allocation17 + $0x4] ss:$8 sps:$4 sm:$0xff]  }
 0x56a   :  { %1557 = vmatmul.mubr.bf16.vlgmr.msra.gmra.mxu1 %v9722_v45  ;;  %v1441_v50 = vadd.f32 %v1437_v36, %v1433_v47  ;;  %v8025_v36 = vld [vmem:[#allocation17 + $0x24] ss:$8 sps:$4 sm:$0xff]  }
 0x56b   :  { %1791 = vmatpush1.bf16.msra.mxu1 %v7970_v44  ;;  %1566 = vmatprep.mubr.bf16.mxu1 %v9343_v37 }
 0x56c   :  { %1792 = vmatprep.subr.bf16.mxu1 %v7977_v46  ;;  %v9726_v23 = vpack.c.bf16 %v1441_v50, %v1440_v28 }
 0x56f   :  { %1793 = vmatpush1.bf16.msra.mxu1 %v7975_v48 }
 0x570   :  { %1794 = vmatprep.subr.bf16.mxu1 %v7982_v49 }
 0x572   :  { %1567 = vmatmul.mubr.bf16.gmra.mxu1 %v9726_v23 }
 0x573   :  { %1795 = vmatpush1.bf16.msra.mxu1 %v7980_v54  ;;  %1822 = vmatprep.mubr.bf16.mxu1 %v9343_v37 }
 0x574   :  { %1796 = vmatprep.subr.bf16.mxu1 %v7987_v55 }
 0x577   :  { %v1102_v59 = vpop.f32.mrf.mxu1  ;;  %1797 = vmatpush1.bf16.msra.mxu1 %v7985_v56 }
 0x578   :  { %1798 = vmatprep.subr.bf16.mxu1 %v7992_v58  ;;  %v1153_v18 = vmul.f32 %v8507_v12, %v1102_v59 }
 0x579   :  { %v7738_v61 = vpop.f32.mrf.mxu1 }
 0x57b   :  { %v1105_v63 = vpop.f32.mrf.mxu1  ;;  %1799 = vmatpush1.bf16.msra.mxu1 %v7990_v60 }
 0x57c   :  { %1800 = vmatprep.subr.bf16.mxu1 %v7997_v62  ;;  %v1154_v10 = vmul.f32 %v8503_v8, %v1105_v63 }
 0x57d   :  { %v7739_v1 = vpop.f32.mrf.mxu1 }
 0x57e   :  { %v1157_v22 = vpack.c.bf16 %v1154_v10, %v1153_v18 }
 0x57f   :  { %v1146_v3 = vpop.f32.mrf.mxu1  ;;  %1801 = vmatpush1.bf16.msra.mxu1 %v7995_v0 }
 0x580   :  { %1802 = vmatprep.subr.bf16.mxu1 %v8002_v2  ;;  %v1155_v13 = vmul.f32 %v8501_v5, %v1146_v3 }
 0x581   :  { %v7744_v6 = vpop.f32.mrf.mxu1 }
 0x583   :  { %v1149_v11 = vpop.f32.mrf.mxu1  ;;  %1803 = vmatpush1.bf16.msra.mxu1 %v8000_v4 }
 0x584   :  { %v1156_v15 = vmul.f32 %v8505_v9, %v1149_v11  ;;  %1804 = vmatprep.subr.bf16.mxu1 %v8007_v7 }
 0x585   :  { %v7745_v19 = vpop.f32.mrf.mxu1 }
 0x586   :  { %v1158_v20 = vpack.c.bf16 %v1156_v15, %v1155_v13 }
 0x587   :  { %1805 = vmatpush1.bf16.msra.mxu1 %v8005_v16 }
 0x588   :  { %1291 = vmatprep.mubr.bf16.mxu0 %v1158_v20 }
 0x589   :  { %1292 = vmatmul.mubr.bf16.vlgmr.msra.gmra.mxu0 %v1157_v22 }
 0x58a   :  { %1658 = vmatpush1.bf16.msra.mxu0 %v8008_v21  ;;  %1689 = vmatprep.mubr.bf16.mxu0 %v9343_v37 }
 0x58b   :  { %1823 = vmatmul.mubr.bf16.vlgmr.msra.gmra.mxu1 %v9722_v45  ;;  %1659 = vmatprep.subr.bf16.mxu0 %v8013_v25 }
 0x58c   :  { %1832 = vmatprep.mubr.bf16.mxu1 %v9343_v37 }
 0x58e   :  { %1660 = vmatpush1.bf16.msra.mxu0 %v8011_v26 }
 0x58f   :  { %1661 = vmatprep.subr.bf16.mxu0 %v8016_v29 }
 0x592   :  { %1662 = vmatpush1.bf16.msra.mxu0 %v8014_v30 }
 0x593   :  { %1833 = vmatmul.mubr.bf16.gmra.mxu1 %v9726_v23  ;;  %1663 = vmatprep.subr.bf16.mxu0 %v8019_v31 }
 0x596   :  { %1664 = vmatpush1.bf16.msra.mxu0 %v8017_v33 }
 0x597   :  { %1665 = vmatprep.subr.bf16.mxu0 %v8022_v34 }
 0x59a   :  { %1666 = vmatpush1.bf16.msra.mxu0 %v8020_v35 }
 0x59b   :  { %1667 = vmatprep.subr.bf16.mxu0 %v8025_v36 }
 0x59e   :  { %1668 = vmatpush1.bf16.msra.mxu0 %v8023_v38 }
 0x59f   :  { %1669 = vmatprep.subr.bf16.mxu0 %v8028_v39 }
 0x5a2   :  { %1670 = vmatpush1.bf16.msra.mxu0 %v8026_v40 }
 0x5a3   :  { %1671 = vmatprep.subr.bf16.mxu0 %v8031_v41 }
 0x5a6   :  { %1672 = vmatpush1.bf16.msra.mxu0 %v8029_v42 }
 0x5a9   :  { %1690 = vmatmul.mubr.bf16.vlgmr.msra.gmra.mxu0 %v9722_v45 }
 0x5aa   :  { %1699 = vmatprep.mubr.bf16.mxu0 %v9343_v37 }
 0x5b1   :  { %1700 = vmatmul.mubr.bf16.gmra.mxu0 %v9726_v23 }
 0x62a   :  { %v1558_v14 = vpop.f32.mrf.mxu1 }
 0x62c   :  { %v1560_v43 = vpop.f32.mrf.mxu1 }
 0x62e   :  { %v1562_v44 = vpop.f32.mrf.mxu1 }
 0x62f   :  { %v1843_v46 = vpack.c.bf16 %v1562_v44, %v1558_v14 }
 0x630   :  { %v1564_v47 = vpop.f32.mrf.mxu1 }
 0x631   :  { %v1845_v24 = vpack.c.bf16 %v1564_v47, %v1560_v43  ;;  %7750 = vmatprep.mubr.bf16.mxu1 %v1843_v46 }
 0x632   :  { %v1568_v48 = vpop.f32.mrf.mxu1 }
 0x634   :  { %v1570_v49 = vpop.f32.mrf.mxu1 }
 0x636   :  { %v1572_v50 = vpop.f32.mrf.mxu1 }
 0x637   :  { %v1844_v19 = vpack.c.bf16 %v1572_v50, %v1568_v48 }
 0x638   :  { %v1574_v28 = vpop.f32.mrf.mxu1 }
 0x639   :  { %v1846_v54 = vpack.c.bf16 %v1574_v28, %v1570_v49 }
 0x649   :  { %v7498_v55 = vpop.f32.mrf.mxu0 }
 0x64b   :  { %v1824_v56 = vpop.f32.mrf.mxu1  ;;  %v7499_v58 = vpop.f32.mrf.mxu0 }
 0x64c   :  { %v9737_v45 = vadd.f32 %v7499_v58, %v7498_v55 }
 0x64d   :  { %v1826_v59 = vpop.f32.mrf.mxu1  ;;  %v7501_v60 = vpop.f32.mrf.mxu0 }
 0x64f   :  { %v1828_v23 = vpop.f32.mrf.mxu1  ;;  %v7502_v61 = vpop.f32.mrf.mxu0 }
 0x650   :  { %v9739_v62 = vadd.f32 %v7502_v61, %v7501_v60  ;;  %v1851_v5 = vpack.c.bf16 %v1828_v23, %v1824_v56 }
 0x651   :  { %v1830_v63 = vpop.f32.mrf.mxu1 }
 0x652   :  { %v1853_v0 = vpack.c.bf16 %v1830_v63, %v1826_v59 }
 0x653   :  { %v1834_v1 = vpop.f32.mrf.mxu1 }
 0x655   :  { %v1836_v2 = vpop.f32.mrf.mxu1 }
 0x657   :  { %v1838_v3 = vpop.f32.mrf.mxu1 }
 0x658   :  { %v1852_v4 = vpack.c.bf16 %v1838_v3, %v1834_v1 }
 0x659   :  { %v1840_v21 = vpop.f32.mrf.mxu1 }
 0x65a   :  { %7762 = vmatprep.subr.bf16.mxu0 %v1852_v4  ;;  %v1854_v22 = vpack.c.bf16 %v1840_v21, %v1836_v2 }
 0x65b   :  { %7763 = vmatpush3.bf16.msra.mxu0 %v1852_v4 }
 0x65c   :  { %7764 = vmatprep.subr.bf16.mxu0 %v1851_v5 }
 0x65f   :  { %7765 = vmatpush3.bf16.msra.mxu0 %v1851_v5 }
 0x669   :  { %v1691_v6 = vpop.f32.mrf.mxu0 }
 0x66b   :  { %v1693_v7 = vpop.f32.mrf.mxu0 }
 0x66d   :  { %v1695_v8 = vpop.f32.mrf.mxu0 }
 0x66e   :  { %v1847_v15 = vpack.c.bf16 %v1695_v8, %v1691_v6 }
 0x66f   :  { %v1697_v9 = vpop.f32.mrf.mxu0 }
 0x670   :  { %v1849_v20 = vpack.c.bf16 %v1697_v9, %v1693_v7 }
 0x671   :  { %v1701_v10 = vpop.f32.mrf.mxu0 }
 0x673   :  { %v1703_v11 = vpop.f32.mrf.mxu0 }
 0x675   :  { %v1705_v12 = vpop.f32.mrf.mxu0 }
 0x676   :  { %v1848_v13 = vpack.c.bf16 %v1705_v12, %v1701_v10 }
 0x677   :  { %v1707_v16 = vpop.f32.mrf.mxu0 }
 0x678   :  { %7746 = vmatprep.subr.bf16.mxu1 %v1848_v13  ;;  %v1850_v18 = vpack.c.bf16 %v1707_v16, %v1703_v11 }
 0x679   :  { %7747 = vmatpush3.bf16.xpose.msra.mxu1 %v1848_v13  ;;  %v9752_v13 = vsub.s32 2, %v9652_v51 }
 0x67a   :  { %7748 = vmatprep.subr.bf16.mxu1 %v1847_v15 }
 0x681   :  { %7749 = vmatpush3.bf16.xpose.msra.mxu1 %v1847_v15 }
 0x682   :  { %7754 = vmatprep.subr.bf16.mxu1 %v1850_v18 }
 0x688   :  { %7751 = vmatmul.mubr.bf16.vlgmr.msra.gmra.mxu1 %v1844_v19 }
 0x689   :  { %7755 = vmatpush3.bf16.xpose.msra.mxu1 %v1850_v18  ;;  %7758 = vmatprep.mubr.bf16.mxu1 %v1845_v24 }
 0x68a   :  { %7756 = vmatprep.subr.bf16.mxu1 %v1849_v20 }
 0x691   :  { %7757 = vmatpush3.bf16.xpose.msra.mxu1 %v1849_v20 }
 0x692   :  { %7770 = vmatprep.subr.bf16.mxu1 %v1854_v22 }
 0x698   :  { %7759 = vmatmul.mubr.bf16.vlgmr.msra.gmra.mxu1 %v1846_v54 }
 0x699   :  { %7771 = vmatpush3.bf16.msra.mxu1 %v1854_v22 }
 0x69a   :  { %7772 = vmatprep.subr.bf16.mxu1 %v1853_v0 }
 0x69d   :  { %7773 = vmatpush3.bf16.msra.mxu1 %v1853_v0 }
 0x748   :  { %v7752_v25 = vpop.f32.mrf.mxu1 }
 0x749   :  { %v1960_v42 = vsel %vm1953_vm2, %v7752_v25, -inf }
 0x74a   :  { %v1889_v26 = vpop.f32.mrf.mxu1 }
 0x74b   :  { %v1954_v29 = vsel %vm1953_vm2, %v1889_v26, -inf }
 0x74c   :  { %1955 = vmax.xlane.f32.xlu0 %v1954_v29  ;;  %v7753_v30 = vpop.f32.mrf.mxu1 }
 0x74d   :  { %v1963_v43 = vsel %vm1953_vm2, %v7753_v30, -inf }
 0x74e   :  { %v1892_v31 = vpop.f32.mrf.mxu1 }
 0x74f   :  { %v1957_v33 = vsel %vm1953_vm2, %v1892_v31, -inf }
 0x750   :  { %1958 = vmax.xlane.f32.xlu1 %v1957_v33 }
 0x758   :  { %v7760_v34 = vpop.f32.mrf.mxu1 }
 0x759   :  { %v1972_v35 = vsel %vm1953_vm2, %v7760_v34, -inf }
 0x75a   :  { %1973 = vmax.xlane.f32.xlu0 %v1972_v35  ;;  %v1938_v36 = vpop.f32.mrf.mxu1  ;;  %v8708_v35 = vld [vmem:[#allocation2] sm:$0xff] }
 0x75b   :  { %v1966_v39 = vsel %vm1953_vm2, %v1938_v36, -inf }
 0x75c   :  { %v7761_v38 = vpop.f32.mrf.mxu1 }
 0x75d   :  { %v1975_v40 = vsel %vm1953_vm2, %v7761_v38, -inf }
 0x75e   :  { %1967 = vmax.xlane.f32.xlu0 %v1966_v39  ;;  %1976 = vmax.xlane.f32.xlu1 %v1975_v40  ;;  %v1941_v41 = vpop.f32.mrf.mxu1  ;;  %v8709_v40 = vld [vmem:[#allocation2 + $0x8] sm:$0xff] }
 0x75f   :  { %v1969_v14 = vsel %vm1953_vm2, %v1941_v41, -inf }
 0x762   :  { %1961 = vmax.xlane.f32.xlu0 %v1960_v42  ;;  %1970 = vmax.xlane.f32.xlu1 %v1969_v14  ;;  %v8033_v42 = vld [vmem:[#allocation20 + $0x38] sm:$0xff]   ;;  %v8034_v14 = vld [vmem:[#allocation20 + $0x70] sm:$0xff]  }
 0x766   :  { %1964 = vmax.xlane.f32.xlu1 %v1963_v43  ;;  %v8035_v43 = vld [vmem:[#allocation20 + $0x30] sm:$0xff]  }
 0x7d5   :  { %v1956_v44 = vpop.xlane.xlu0 %1955 }
 0x7d6   :  { %v1978_v46 = vsub.f32 %v1889_v26, %v1956_v44  ;;  %v1162_v26 = vrot.slane %v9657_v53, %v9752_v13  ;;  %v8036_v44 = vld [vmem:[#allocation20 + $0x68] sm:$0xff]  }
 0x7d8   :  { %v1986_v47 = vmul.f32 1.442695, %v1978_v46  ;;  %v1294_v33 = vadd.f32 %v9737_v45, %v1162_v26  ;;  %v8032_v45 = vld [vmem:[#allocation20 + $0x78] sm:$0xff]   ;;  %v8038_v46 = vld [vmem:[#allocation20 + $0x60] sm:$0xff]  }
 0x7d9   :  { %v1959_v24 = vpop.xlane.xlu1 %1958  ;;  %7520 = vmatprep.subr.bf16.mxu0 %v8032_v45 }
 0x7da   :  { %v1979_v48 = vsub.f32 %v1892_v31, %v1959_v24  ;;  %8508 = vpow2.f32 %v1986_v47  ;;  %v8039_v47 = vld [vmem:[#allocation20 + $0x20] sm:$0xff]   ;;  %v8040_v24 = vld [vmem:[#allocation20 + $0x58] sm:$0xff]  }
 0x7dc   :  { %v1988_v49 = vmul.f32 1.442695, %v1979_v48  ;;  %v8041_v48 = vld [vmem:[#allocation20 + $0x18] sm:$0xff]  }
 0x7de   :  { %8510 = vpow2.f32 %v1988_v49  ;;  %v8042_v49 = vld [vmem:[#allocation20 + $0x50] sm:$0xff]  }
 0x7e3   :  { %v1974_v50 = vpop.xlane.xlu0 %1973 }
 0x7e4   :  { %v1984_v59 = vsub.f32 %v7760_v34, %v1974_v50  ;;  %v8043_v50 = vld [vmem:[#allocation20 + $0x10] sm:$0xff]  }
 0x7e6   :  { %v1998_v4 = vmul.f32 1.442695, %v1984_v59  ;;  %v8050_v59 = vld [vmem:[#allocation22 + $0x74] ss:$8 sps:$4 sm:$0xff]  }
 0x7e7   :  { %v1968_v28 = vpop.xlane.xlu0 %1967  ;;  %v1977_v54 = vpop.xlane.xlu1 %1976  ;;  %2510 = vmatprep.subr.bf16.mxu1 %v8050_v59  ;;  %v8072_v59 = vld [vmem:[#allocation23 + $0x70] ss:$8 sps:$4 sm:$0xff]  }
 0x7e8   :  { %v1982_v55 = vsub.f32 %v1938_v36, %v1968_v28  ;;  %v1985_v56 = vsub.f32 %v7761_v38, %v1977_v54  ;;  %v8509_v58 = vpop.eup %8508  ;;  %v9767_v36 = vadd.f32 %v8708_v35, %v1294_v33  ;;  %v1297_v38 = vadd.f32 %v9739_v62, %v1162_v26  ;;  %v8037_v62 = vld [vmem:[#allocation20 + $0x28] sm:$0xff]  }
 0x7e9   :  { %v2002_v16 = vsel %vm1953_vm2, %v8509_v58, 0.0  ;;  %v8044_v28 = vld [vmem:[#allocation20 + $0x48] sm:$0xff]  }
 0x7ea   :  { %v1994_v60 = vmul.f32 1.442695, %v1982_v55  ;;  %v2000_v61 = vmul.f32 1.442695, %v1985_v56  ;;  %v8045_v54 = vld [vmem:[#allocation20 + $0x8] sm:$0xff]   ;;  %v8046_v55 = vld [vmem:[#allocation20 + $0x40] sm:$0xff]  }
 0x7eb   :  { %v8511_v23 = vpop.eup %8510  ;;  %v1962_v63 = vpop.xlane.xlu0 %1961  ;;  %v8047_v56 = vld [vmem:[#allocation20] sm:$0xff]  }
 0x7ec   :  { %v1971_v0 = vpop.xlane.xlu1 %1970  ;;  %8512 = vpow2.f32 %v1994_v60  ;;  %v1980_v1 = vsub.f32 %v7752_v25, %v1962_v63  ;;  %v2034_v3 = vpack.c.bf16 %v8511_v23, %v8509_v58  ;;  %v2005_v31 = vsel %vm1953_vm2, %v8511_v23, 0.0  ;;  %v8048_v58 = vld [vmem:[#allocation22 + $0x70] ss:$8 sps:$4 sm:$0xff]   ;;  %v8063_v26 = vld [vmem:[#allocation22 + $0x20] ss:$8 sps:$4 sm:$0xff]  }
 0x7ed   :  { %v1983_v2 = vsub.f32 %v1941_v41, %v1971_v0  ;;  %8514 = vpow2.f32 %v2000_v61  ;;  %v9772_v41 = vadd.f32 %v8709_v40, %v1297_v38  ;;  %v8069_v33 = vld [vmem:[#allocation22] ss:$8 sps:$4 sm:$0xff]   ;;  %v8074_v38 = vld [vmem:[#allocation23 + $0x74] ss:$8 sps:$4 sm:$0xff]  }
 0x7ee   :  { %7766 = vmatprep.mubr.msk.bf16.mxu0 %vm1953_vm2, %v2034_v3  ;;  %v1990_v6 = vmul.f32 1.442695, %v1980_v1 }
 0x7ef   :  { %v1996_v5 = vmul.f32 1.442695, %v1983_v2 }
 0x7f0   :  { %v1965_v7 = vpop.xlane.xlu1 %1964 }
 0x7f1   :  { %v1981_v8 = vsub.f32 %v7753_v30, %v1965_v7  ;;  %8516 = vpow2.f32 %v1996_v5 }
 0x7f2   :  { %8518 = vpow2.f32 %v1998_v4 }
 0x7f3   :  { %v1992_v9 = vmul.f32 1.442695, %v1981_v8  ;;  %8520 = vpow2.f32 %v1990_v6 }
 0x7f5   :  { %8522 = vpow2.f32 %v1992_v9 }
 0x7f9   :  { %v8513_v10 = vpop.eup %8512 }
 0x7fa   :  { %v2014_v11 = vsel %vm1953_vm2, %v8513_v10, 0.0  ;;  %v8515_v12 = vpop.eup %8514 }
 0x7fb   :  { %2015 = vadd.xlane.f32.xlu0 %v2014_v11  ;;  %v2023_v53 = vsel %vm1953_vm2, %v8515_v12, 0.0 }
 0x7fe   :  { %v8517_v15 = vpop.eup %8516 }
 0x7ff   :  { %v8519_v18 = vpop.eup %8518  ;;  %2003 = vadd.xlane.f32.xlu0 %v2002_v16  ;;  %v2017_v19 = vsel %vm1953_vm2, %v8517_v15, 0.0  ;;  %v2036_v20 = vpack.c.bf16 %v8517_v15, %v8513_v10  ;;  %v8051_v15 = vld [vmem:[#allocation22 + $0x60] ss:$8 sps:$4 sm:$0xff]   ;;  %v8056_v16 = vld [vmem:[#allocation22 + $0x54] ss:$8 sps:$4 sm:$0xff]  }
 0x800   :  { %v8521_v21 = vpop.eup %8520  ;;  %2018 = vadd.xlane.f32.xlu1 %v2017_v19  ;;  %v2037_v22 = vpack.c.bf16 %v8515_v12, %v8519_v18  ;;  %v2020_v30 = vsel %vm1953_vm2, %v8519_v18, 0.0  ;;  %v8053_v12 = vld [vmem:[#allocation22 + $0x64] ss:$8 sps:$4 sm:$0xff]   ;;  %v8054_v18 = vld [vmem:[#allocation22 + $0x50] ss:$8 sps:$4 sm:$0xff]  }
 0x801   :  { %7774 = vmatprep.mubr.msk.bf16.mxu1 %vm1953_vm2, %v2036_v20  ;;  %v2008_v34 = vsel %vm1953_vm2, %v8521_v21, 0.0  ;;  %v8057_v19 = vld [vmem:[#allocation22 + $0x40] ss:$8 sps:$4 sm:$0xff]   ;;  %v8059_v20 = vld [vmem:[#allocation22 + $0x44] ss:$8 sps:$4 sm:$0xff]  }
 0x802   :  { %v8523_v25 = vpop.eup %8522  ;;  %7775 = vmatmul.mubr.msk.bf16.vlgmr.msra.gmra.mxu1 %vm1953_vm2, %v2037_v22  ;;  %v8060_v22 = vld [vmem:[#allocation22 + $0x30] ss:$8 sps:$4 sm:$0xff]  }
 0x803   :  { %v2035_v29 = vpack.c.bf16 %v8523_v25, %v8521_v21  ;;  %2021 = vadd.xlane.f32.xlu0 %v2020_v30  ;;  %2542 = vmatprep.mubr.bf16.mxu1 %v9343_v37  ;;  %v2011_v39 = vsel %vm1953_vm2, %v8523_v25, 0.0  ;;  %v8062_v21 = vld [vmem:[#allocation22 + $0x34] ss:$8 sps:$4 sm:$0xff]   ;;  %v8065_v25 = vld [vmem:[#allocation22 + $0x24] ss:$8 sps:$4 sm:$0xff]  }
 0x804   :  { %2006 = vadd.xlane.f32.xlu1 %v2005_v31  ;;  %2511 = vmatpush1.bf16.msra.mxu1 %v8048_v58  ;;  %v8066_v30 = vld [vmem:[#allocation22 + $0x10] ss:$8 sps:$4 sm:$0xff]   ;;  %v8071_v31 = vld [vmem:[#allocation22 + $0x4] ss:$8 sps:$4 sm:$0xff]  }
 0x805   :  { %7767 = vmatmul.mubr.msk.bf16.vlgmr.msra.gmra.mxu0 %vm1953_vm2, %v2035_v29  ;;  %2512 = vmatprep.subr.bf16.mxu1 %v8053_v12  ;;  %v8068_v29 = vld [vmem:[#allocation22 + $0x14] ss:$8 sps:$4 sm:$0xff]   ;;  %v8096_v12 = vld [vmem:[#allocation23 + $0x30] ss:$8 sps:$4 sm:$0xff]  }
 0x806   :  { %7521 = vmatpush3.bf16.msra.mxu0 %v8033_v42 }
 0x807   :  { %2009 = vadd.xlane.f32.xlu0 %v2008_v34  ;;  %7522 = vmatprep.subr.bf16.mxu0 %v8034_v14 }
 0x808   :  { %2024 = vadd.xlane.f32.xlu1 %v2023_v53  ;;  %2513 = vmatpush1.bf16.msra.mxu1 %v8051_v15  ;;  %v8104_v15 = vld [vmem:[#allocation23 + $0x24] ss:$8 sps:$4 sm:$0xff]  }
 0x809   :  { %2514 = vmatprep.subr.bf16.mxu1 %v8056_v16  ;;  %v8102_v16 = vld [vmem:[#allocation23 + $0x20] ss:$8 sps:$4 sm:$0xff]  }
 0x80a   :  { %7523 = vmatpush3.bf16.msra.mxu0 %v8035_v43 }
 0x80b   :  { %2393 = vadd.xlane.f32.xlu0 %v9767_v36  ;;  %7524 = vmatprep.subr.bf16.mxu0 %v8036_v44 }
 0x80c   :  { %2012 = vadd.xlane.f32.xlu1 %v2011_v39  ;;  %2515 = vmatpush1.bf16.msra.mxu1 %v8054_v18  ;;  %v8077_v39 = vld [vmem:[#allocation25 + $0x74] ss:$8 sps:$4 sm:$0xff]  }
 0x80d   :  { %2516 = vmatprep.subr.bf16.mxu1 %v8059_v20  ;;  %v8110_v18 = vld [vmem:[#allocation23 + $0x14] ss:$8 sps:$4 sm:$0xff]   ;;  %v8116_v20 = vld [vmem:[#allocation23 + $0x4] ss:$8 sps:$4 sm:$0xff]  }
 0x80e   :  { %7525 = vmatpush3.bf16.msra.mxu0 %v8037_v62 }
 0x80f   :  { %7526 = vmatprep.subr.bf16.mxu0 %v8038_v46 }
 0x810   :  { %2395 = vadd.xlane.f32.xlu1 %v9772_v41  ;;  %2517 = vmatpush1.bf16.msra.mxu1 %v8057_v19  ;;  %v8108_v19 = vld [vmem:[#allocation23 + $0x10] ss:$8 sps:$4 sm:$0xff]  }
 0x811   :  { %2518 = vmatprep.subr.bf16.mxu1 %v8062_v21  ;;  %v8114_v21 = vld [vmem:[#allocation23] ss:$8 sps:$4 sm:$0xff]  }
 0x812   :  { %7527 = vmatpush3.bf16.msra.mxu0 %v8039_v47 }
 0x813   :  { %7528 = vmatprep.subr.bf16.mxu0 %v8040_v24 }
 0x814   :  { %2519 = vmatpush1.bf16.msra.mxu1 %v8060_v22 }
 0x815   :  { %2520 = vmatprep.subr.bf16.mxu1 %v8065_v25 }
 0x816   :  { %7529 = vmatpush3.bf16.msra.mxu0 %v8041_v48 }
 0x817   :  { %7530 = vmatprep.subr.bf16.mxu0 %v8042_v49 }
 0x818   :  { %2521 = vmatpush1.bf16.msra.mxu1 %v8063_v26 }
 0x819   :  { %2522 = vmatprep.subr.bf16.mxu1 %v8068_v29 }
 0x81a   :  { %7531 = vmatpush3.bf16.msra.mxu0 %v8043_v50 }
 0x81b   :  { %7532 = vmatprep.subr.bf16.mxu0 %v8044_v28 }
 0x81c   :  { %2523 = vmatpush1.bf16.msra.mxu1 %v8066_v30 }
 0x81d   :  { %2524 = vmatprep.subr.bf16.mxu1 %v8071_v31 }
 0x81e   :  { %7533 = vmatpush3.bf16.msra.mxu0 %v8045_v54 }
 0x81f   :  { %7534 = vmatprep.subr.bf16.mxu0 %v8046_v55 }
 0x820   :  { %2525 = vmatpush1.bf16.msra.mxu1 %v8069_v33  ;;  %v9788_v33 = vsub.s32 6, %v9652_v51 }
 0x821   :  { %2766 = vmatprep.subr.bf16.mxu1 %v8077_v39  ;;  %v9793_v39 = vsub.s32 7, %v9652_v51 }
 0x822   :  { %7535 = vmatpush3.bf16.msra.mxu0 %v8047_v56 }
 0x823   :  { %2633 = vmatprep.subr.bf16.mxu0 %v8074_v38 }
 0x884   :  { %v2016_v60 = vpop.xlane.xlu0 %2015 }
 0x885   :  { %8524 = vrcp.f32 %v2016_v60 }
 0x888   :  { %v2004_v23 = vpop.xlane.xlu0 %2003 }
 0x889   :  { %v2019_v61 = vpop.xlane.xlu1 %2018  ;;  %8526 = vrcp.f32 %v2004_v23  ;;  %v8080_v23 = vld [vmem:[#allocation23 + $0x64] ss:$8 sps:$4 sm:$0xff]  }
 0x88a   :  { %8528 = vrcp.f32 %v2019_v61 }
 0x88c   :  { %v2022_v63 = vpop.xlane.xlu0 %2021 }
 0x88d   :  { %v2007_v0 = vpop.xlane.xlu1 %2006 }
 0x890   :  { %v2010_v1 = vpop.xlane.xlu0 %2009 }
 0x891   :  { %v2025_v2 = vpop.xlane.xlu1 %2024 }
 0x892   :  { %8530 = vrcp.f32 %v2025_v2  ;;  %v8525_v40 = vpop.eup %8524  ;;  %v8086_v2 = vld [vmem:[#allocation23 + $0x54] ss:$8 sps:$4 sm:$0xff]  }
 0x893   :  { %8532 = vrcp.f32 %v2007_v0  ;;  %v8078_v0 = vld [vmem:[#allocation23 + $0x60] ss:$8 sps:$4 sm:$0xff]  }
 0x894   :  { %v2394_v3 = vpop.xlane.xlu0 %2393  ;;  %8534 = vrcp.f32 %v2022_v63 }
 0x895   :  { %v2397_v4 = vmul.f32 0.0078125, %v2394_v3  ;;  %v2013_v5 = vpop.xlane.xlu1 %2012 }
 0x896   :  { %8536 = vrcp.f32 %v2013_v5  ;;  %v8527_v14 = vpop.eup %8526  ;;  %v8084_v5 = vld [vmem:[#allocation23 + $0x50] ss:$8 sps:$4 sm:$0xff]  }
 0x897   :  { %v9776_v6 = vsub.f32 %v9767_v36, %v2397_v4  ;;  %8538 = vrcp.f32 %v2010_v1  ;;  %v8529_v43 = vpop.eup %8528 }
 0x899   :  { %v2396_v7 = vpop.xlane.xlu1 %2395  ;;  %v2401_v8 = vmul.f32 %v9776_v6, %v9776_v6 }
 0x89a   :  { %v2398_v9 = vmul.f32 0.0078125, %v2396_v7 }
 0x89b   :  { %2403 = vadd.xlane.f32.xlu0 %v2401_v8  ;;  %v8092_v8 = vld [vmem:[#allocation23 + $0x44] ss:$8 sps:$4 sm:$0xff]  }
 0x89c   :  { %v9781_v10 = vsub.f32 %v9772_v41, %v2398_v9  ;;  %v8090_v9 = vld [vmem:[#allocation23 + $0x40] ss:$8 sps:$4 sm:$0xff]  }
 0x89e   :  { %v2402_v11 = vmul.f32 %v9781_v10, %v9781_v10 }
 0x89f   :  { %v8531_v46 = vpop.eup %8530 }
 0x8a0   :  { %2405 = vadd.xlane.f32.xlu1 %v2402_v11  ;;  %v8533_v48 = vpop.eup %8532  ;;  %v8098_v11 = vld [vmem:[#allocation23 + $0x34] ss:$8 sps:$4 sm:$0xff]  }
 0x8a1   :  { %v8535_v28 = vpop.eup %8534 }
 0x8a3   :  { %v8537_v63 = vpop.eup %8536 }
 0x8a4   :  { %v8539_v3 = vpop.eup %8538 }
 0x8c2   :  { %v7776_v34 = vpop.f32.mrf.mxu1 }
 0x8c3   :  { %v2154_v58 = vmul.f32 %v8535_v28, %v7776_v34  ;;  %v8101_v28 = vld [vmem:[#allocation25 + $0x34] ss:$8 sps:$4 sm:$0xff]  }
 0x8c4   :  { %v2133_v53 = vpop.f32.mrf.mxu1 }
 0x8c5   :  { %v7768_v35 = vpop.f32.mrf.mxu0  ;;  %v2152_v47 = vmul.f32 %v8525_v40, %v2133_v53 }
 0x8c6   :  { %v7777_v45 = vpop.f32.mrf.mxu1  ;;  %v2150_v4 = vmul.f32 %v8539_v3, %v7768_v35  ;;  %v8710_v35 = vld [vmem:[#allocation7] sm:$0xff] }
 0x8c7   :  { %v2078_v42 = vpop.f32.mrf.mxu0  ;;  %v2155_v49 = vmul.f32 %v8531_v46, %v7777_v45  ;;  %v2418_v38 = vrot.slane %v8710_v35, %v9788_v33  ;;  %v8075_v46 = vld [vmem:[#allocation25 + $0x70] ss:$8 sps:$4 sm:$0xff]  }
 0x8c8   :  { %v2136_v44 = vpop.f32.mrf.mxu1  ;;  %v2148_v54 = vmul.f32 %v8527_v14, %v2078_v42  ;;  %v2424_v14 = vrot.slane %v8710_v35, %v9793_v39 }
 0x8c9   :  { %v7769_v62 = vpop.f32.mrf.mxu0  ;;  %v2153_v24 = vmul.f32 %v8529_v43, %v2136_v44  ;;  %v2159_v61 = vpack.c.bf16 %v2155_v49, %v2154_v58  ;;  %v8087_v49 = vld [vmem:[#allocation25 + $0x50] ss:$8 sps:$4 sm:$0xff]   ;;  %v8113_v58 = vld [vmem:[#allocation25 + $0x14] ss:$8 sps:$4 sm:$0xff]  }
 0x8ca   :  { %v2151_v1 = vmul.f32 %v8537_v63, %v7769_v62 }
 0x8cb   :  { %v2081_v50 = vpop.f32.mrf.mxu0  ;;  %v2158_v55 = vpack.c.bf16 %v2153_v24, %v2152_v47  ;;  %v8083_v24 = vld [vmem:[#allocation25 + $0x64] ss:$8 sps:$4 sm:$0xff]  }
 0x8cc   :  { %v2149_v56 = vmul.f32 %v8533_v48, %v2081_v50  ;;  %v2157_v7 = vpack.c.bf16 %v2151_v1, %v2150_v4  ;;  %v8089_v48 = vld [vmem:[#allocation25 + $0x54] ss:$8 sps:$4 sm:$0xff]   ;;  %v8093_v50 = vld [vmem:[#allocation25 + $0x40] ss:$8 sps:$4 sm:$0xff]  }
 0x8cd   :  { %2292 = vmatprep.mubr.bf16.mxu0 %v2158_v55  ;;  %v8107_v55 = vld [vmem:[#allocation25 + $0x24] ss:$8 sps:$4 sm:$0xff]  }
 0x8ce   :  { %v2156_v60 = vpack.c.bf16 %v2149_v56, %v2148_v54  ;;  %v8099_v54 = vld [vmem:[#allocation25 + $0x30] ss:$8 sps:$4 sm:$0xff]   ;;  %v8105_v56 = vld [vmem:[#allocation25 + $0x20] ss:$8 sps:$4 sm:$0xff]  }
 0x8d0   :  { %2293 = vmatmul.mubr.bf16.vlgmr.msra.gmra.mxu0 %v2156_v60  ;;  %v8119_v60 = vld [vmem:[#allocation25 + $0x4] ss:$8 sps:$4 sm:$0xff]  }
 0x8d1   :  { %2300 = vmatprep.mubr.bf16.mxu0 %v2159_v61  ;;  %2634 = vmatpush1.bf16.msra.mxu0 %v8072_v59  ;;  %v8111_v59 = vld [vmem:[#allocation25 + $0x10] ss:$8 sps:$4 sm:$0xff]   ;;  %v9800_v61 = vsub.s32 5, %v9652_v51 }
 0x8d2   :  { %2635 = vmatprep.subr.bf16.mxu0 %v8080_v23  ;;  %v8117_v23 = vld [vmem:[#allocation25] ss:$8 sps:$4 sm:$0xff]  }
 0x8d3   :  { %v2163_v1 = vrot.slane %v8710_v35, %v9800_v61 }
 0x8d5   :  { %2636 = vmatpush1.bf16.msra.mxu0 %v8078_v0 }
 0x8d6   :  { %2637 = vmatprep.subr.bf16.mxu0 %v8086_v2 }
 0x8d8   :  { %2301 = vmatmul.mubr.bf16.gmra.mxu0 %v2157_v7 }
 0x8d9   :  { %2638 = vmatpush1.bf16.msra.mxu0 %v8084_v5  ;;  %2665 = vmatprep.mubr.bf16.mxu0 %v9343_v37 }
 0x8da   :  { %2639 = vmatprep.subr.bf16.mxu0 %v8092_v8 }
 0x8dd   :  { %2640 = vmatpush1.bf16.msra.mxu0 %v8090_v9 }
 0x8de   :  { %2641 = vmatprep.subr.bf16.mxu0 %v8098_v11 }
 0x8e1   :  { %2642 = vmatpush1.bf16.msra.mxu0 %v8096_v12  ;;  %v8711_v12 = vld [vmem:[#allocation5] sm:$0xff] }
 0x8e2   :  { %2643 = vmatprep.subr.bf16.mxu0 %v8104_v15 }
 0x8e5   :  { %2644 = vmatpush1.bf16.msra.mxu0 %v8102_v16  ;;  %v8712_v16 = vld [vmem:[#allocation5 + $0x8] sm:$0xff] }
 0x8e6   :  { %2645 = vmatprep.subr.bf16.mxu0 %v8110_v18 }
 0x8e9   :  { %2646 = vmatpush1.bf16.msra.mxu0 %v8108_v19 }
 0x8ea   :  { %2647 = vmatprep.subr.bf16.mxu0 %v8116_v20 }
 0x8ed   :  { %2648 = vmatpush1.bf16.msra.mxu0 %v8114_v21 }
 0x8ee   :  { %7778 = vmatprep.subr.bf16.mxu0 %v9344_v17 }
 0x924   :  { %v2404_v22 = vpop.xlane.xlu0 %2403 }
 0x925   :  { %v2407_v25 = vmul.f32 0.0078125, %v2404_v22 }
 0x927   :  { %v2409_v26 = vadd.f32 1e-05, %v2407_v25 }
 0x929   :  { %8540 = vrsqrt.f32 %v2409_v26  ;;  %v2406_v29 = vpop.xlane.xlu1 %2405 }
 0x92a   :  { %v2408_v30 = vmul.f32 0.0078125, %v2406_v29  ;;  %v8713_v29 = vld [vmem:[#allocation5 + $0x10] sm:$0xff] }
 0x92c   :  { %v2410_v31 = vadd.f32 1e-05, %v2408_v30 }
 0x92e   :  { %8542 = vrsqrt.f32 %v2410_v31  ;;  %v8714_v31 = vld [vmem:[#allocation5 + $0x18] sm:$0xff] }
 0x936   :  { %v8541_v34 = vpop.eup %8540 }
 0x937   :  { %v2413_v53 = vmul.f32 %v8541_v34, %v9776_v6  ;;  %v8081_v6 = vld [vmem:[#allocation25 + $0x60] ss:$8 sps:$4 sm:$0xff]  }
 0x939   :  { %v2419_v42 = vmul.f32 %v2418_v38, %v2413_v53 }
 0x93b   :  { %v8543_v40 = vpop.eup %8542  ;;  %v2425_v44 = vadd.f32 %v2424_v14, %v2419_v42 }
 0x93c   :  { %v2414_v45 = vmul.f32 %v8543_v40, %v9781_v10  ;;  %v8095_v10 = vld [vmem:[#allocation25 + $0x44] ss:$8 sps:$4 sm:$0xff]  }
 0x93e   :  { %v2420_v43 = vmul.f32 %v2418_v38, %v2414_v45 }
 0x940   :  { %v2426_v62 = vadd.f32 %v2424_v14, %v2420_v43 }
 0x942   :  { %v2427_v47 = vpack.c.bf16 %v2426_v62, %v2425_v44 }
 0x944   :  { %2543 = vmatmul.mubr.bf16.vlgmr.msra.gmra.mxu1 %v2427_v47 }
 0x945   :  { %2767 = vmatpush1.bf16.msra.mxu1 %v8075_v46  ;;  %2798 = vmatprep.mubr.bf16.mxu1 %v9343_v37 }
 0x946   :  { %2768 = vmatprep.subr.bf16.mxu1 %v8083_v24 }
 0x949   :  { %2769 = vmatpush1.bf16.msra.mxu1 %v8081_v6 }
 0x94a   :  { %2770 = vmatprep.subr.bf16.mxu1 %v8089_v48 }
 0x94d   :  { %2771 = vmatpush1.bf16.msra.mxu1 %v8087_v49 }
 0x94e   :  { %2772 = vmatprep.subr.bf16.mxu1 %v8095_v10 }
 0x951   :  { %2773 = vmatpush1.bf16.msra.mxu1 %v8093_v50 }
 0x952   :  { %2774 = vmatprep.subr.bf16.mxu1 %v8101_v28 }
 0x955   :  { %2775 = vmatpush1.bf16.msra.mxu1 %v8099_v54 }
 0x956   :  { %2776 = vmatprep.subr.bf16.mxu1 %v8107_v55 }
 0x959   :  { %2777 = vmatpush1.bf16.msra.mxu1 %v8105_v56 }
 0x95a   :  { %2778 = vmatprep.subr.bf16.mxu1 %v8113_v58 }
 0x95d   :  { %2779 = vmatpush1.bf16.msra.mxu1 %v8111_v59 }
 0x95e   :  { %2780 = vmatprep.subr.bf16.mxu1 %v8119_v60 }
 0x961   :  { %2781 = vmatpush1.bf16.msra.mxu1 %v8117_v23 }
 0x962   :  { %7786 = vmatprep.subr.bf16.mxu1 %v9344_v17 }
 0x990   :  { %v7536_v63 = vpop.f32.mrf.mxu0 }
 0x992   :  { %v7537_v0 = vpop.f32.mrf.mxu0 }
 0x993   :  { %v7538_v2 = vadd.f32 %v7537_v0, %v7536_v63 }
 0x994   :  { %v7539_v3 = vpop.f32.mrf.mxu0 }
 0x995   :  { %v2295_v5 = vadd.f32 %v7538_v2, %v2163_v1 }
 0x996   :  { %v7540_v4 = vpop.f32.mrf.mxu0 }
 0x997   :  { %v7541_v7 = vadd.f32 %v7540_v4, %v7539_v3  ;;  %v9803_v15 = vadd.f32 %v8711_v12, %v2295_v5 }
 0x998   :  { %v7542_v8 = vpop.f32.mrf.mxu0 }
 0x999   :  { %v2298_v9 = vadd.f32 %v7541_v7, %v2163_v1 }
 0x99a   :  { %v7543_v11 = vpop.f32.mrf.mxu0 }
 0x99b   :  { %v9805_v18 = vadd.f32 %v8712_v16, %v2298_v9  ;;  %v7544_v51 = vadd.f32 %v7543_v11, %v7542_v8 }
 0x99c   :  { %v7545_v19 = vpop.f32.mrf.mxu0 }
 0x99d   :  { %v2428_v20 = vpack.c.bf16 %v9805_v18, %v9803_v15  ;;  %v2303_v22 = vadd.f32 %v7544_v51, %v2163_v1 }
 0x99e   :  { %v7546_v21 = vpop.f32.mrf.mxu0 }
 0x99f   :  { %v7547_v25 = vadd.f32 %v7546_v21, %v7545_v19  ;;  %2666 = vmatmul.mubr.bf16.vlgmr.msra.gmra.mxu0 %v2428_v20  ;;  %2799 = vmatmul.mubr.bf16.vlgmr.msra.gmra.mxu1 %v2428_v20  ;;  %v9811_v30 = vadd.f32 %v8713_v29, %v2303_v22 }
 0x9a0   :  { %2675 = vmatprep.mubr.bf16.mxu0 %v9343_v37  ;;  %2808 = vmatprep.mubr.bf16.mxu1 %v9343_v37 }
 0x9a1   :  { %v2306_v26 = vadd.f32 %v7547_v25, %v2163_v1 }
 0x9a3   :  { %v9813_v34 = vadd.f32 %v8714_v31, %v2306_v26 }
 0x9a5   :  { %v2429_v53 = vpack.c.bf16 %v9813_v34, %v9811_v30 }
 0x9a7   :  { %2676 = vmatmul.mubr.bf16.gmra.mxu0 %v2429_v53  ;;  %2809 = vmatmul.mubr.bf16.gmra.mxu1 %v2429_v53 }
 0x9a8   :  { %7782 = vmatprep.mubr.msk.bf16.mxu0 %vm9345_vm0, %v9344_v17  ;;  %7790 = vmatprep.mubr.msk.bf16.mxu1 %vm9345_vm0, %v9344_v17 }
 0xa04   :  { %v2544_v35 = vpop.f32.mrf.mxu1 }
 0xa06   :  { %v2546_v38 = vpop.f32.mrf.mxu1 }
 0xa08   :  { %v2548_v40 = vpop.f32.mrf.mxu1 }
 0xa09   :  { %v2819_v60 = vpack.c.bf16 %v2548_v40, %v2544_v35 }
 0xa0a   :  { %v2550_v45 = vpop.f32.mrf.mxu1 }
 0xa0b   :  { %v2820_v0 = vpack.c.bf16 %v2550_v45, %v2546_v38 }
 0xa5f   :  { %v2667_v42 = vpop.f32.mrf.mxu0  ;;  %v2800_v14 = vpop.f32.mrf.mxu1 }
 0xa61   :  { %v2669_v43 = vpop.f32.mrf.mxu0  ;;  %v2802_v44 = vpop.f32.mrf.mxu1 }
 0xa63   :  { %v2671_v62 = vpop.f32.mrf.mxu0  ;;  %v2804_v47 = vpop.f32.mrf.mxu1 }
 0xa64   :  { %v2821_v56 = vpack.c.bf16 %v2671_v62, %v2667_v42  ;;  %v2825_v2 = vpack.c.bf16 %v2804_v47, %v2800_v14 }
 0xa65   :  { %v2673_v46 = vpop.f32.mrf.mxu0  ;;  %v2806_v48 = vpop.f32.mrf.mxu1 }
 0xa66   :  { %v2823_v58 = vpack.c.bf16 %v2673_v46, %v2669_v43  ;;  %v2827_v3 = vpack.c.bf16 %v2806_v48, %v2802_v44 }
 0xa67   :  { %v2677_v24 = vpop.f32.mrf.mxu0  ;;  %v2810_v54 = vpop.f32.mrf.mxu1 }
 0xa69   :  { %v2679_v6 = vpop.f32.mrf.mxu0  ;;  %v2812_v55 = vpop.f32.mrf.mxu1 }
 0xa6b   :  { %v2681_v49 = vpop.f32.mrf.mxu0  ;;  %v2814_v59 = vpop.f32.mrf.mxu1 }
 0xa6c   :  { %v2822_v10 = vpack.c.bf16 %v2681_v49, %v2677_v24  ;;  %v2826_v63 = vpack.c.bf16 %v2814_v59, %v2810_v54  ;;  %v8123_v54 = vld [vmem:[#allocation26 + $0x30] sm:$0xff]   ;;  %v8127_v59 = vld [vmem:[#allocation26 + $0x20] sm:$0xff]  }
 0xa6d   :  { %v2683_v50 = vpop.f32.mrf.mxu0  ;;  %v2816_v23 = vpop.f32.mrf.mxu1 }
 0xa6e   :  { %v2824_v28 = vpack.c.bf16 %v2683_v50, %v2679_v6  ;;  %7779 = vmatpush3.bf16.xpose.msra.mxu0 %v2822_v10  ;;  %v2828_v1 = vpack.c.bf16 %v2816_v23, %v2812_v55  ;;  %v8120_v10 = vld [vmem:[#allocation26 + $0x78] sm:$0xff]   ;;  %v8124_v55 = vld [vmem:[#allocation26 + $0x68] sm:$0xff]  }
 0xa6f   :  { %7780 = vmatprep.subr.bf16.mxu0 %v9344_v17  ;;  %v8121_v50 = vld [vmem:[#allocation26 + $0x38] sm:$0xff]  }
 0xa70   :  { %7787 = vmatpush3.bf16.xpose.msra.mxu1 %v2824_v28  ;;  %v8122_v28 = vld [vmem:[#allocation26 + $0x70] sm:$0xff]   ;;  %v8129_v23 = vld [vmem:[#allocation26 + $0x18] sm:$0xff]  }
 0xa71   :  { %7788 = vmatprep.subr.bf16.mxu1 %v9344_v17 }
 0xa76   :  { %7781 = vmatpush3.bf16.xpose.msra.mxu0 %v2821_v56  ;;  %v8125_v56 = vld [vmem:[#allocation26 + $0x28] sm:$0xff]  }
 0xa77   :  { %7794 = vmatprep.subr.bf16.mxu0 %v9344_v17 }
 0xa78   :  { %7789 = vmatpush3.bf16.xpose.msra.mxu1 %v2823_v58  ;;  %v8126_v58 = vld [vmem:[#allocation26 + $0x60] sm:$0xff]  }
 0xa79   :  { %7802 = vmatprep.subr.bf16.mxu1 %v9344_v17 }
 0xa7d   :  { %7783 = vmatmul.mubr.bf16.vlgmr.msra.gmra.mxu0 %v2819_v60  ;;  %v8128_v60 = vld [vmem:[#allocation26 + $0x58] sm:$0xff]  }
 0xa7e   :  { %7795 = vmatpush3.bf16.msra.mxu0 %v2826_v63  ;;  %7798 = vmatprep.mubr.msk.bf16.mxu0 %vm9345_vm0, %v9344_v17  ;;  %v8130_v63 = vld [vmem:[#allocation26 + $0x50] sm:$0xff]  }
 0xa7f   :  { %7791 = vmatmul.mubr.bf16.vlgmr.msra.gmra.mxu1 %v2820_v0  ;;  %7796 = vmatprep.subr.bf16.mxu0 %v9344_v17  ;;  %v8131_v0 = vld [vmem:[#allocation26 + $0x10] sm:$0xff]  }
 0xa80   :  { %7803 = vmatpush3.bf16.msra.mxu1 %v2828_v1  ;;  %7806 = vmatprep.mubr.msk.bf16.mxu1 %vm9345_vm0, %v9344_v17  ;;  %v8132_v1 = vld [vmem:[#allocation26 + $0x48] sm:$0xff]  }
 0xa81   :  { %7804 = vmatprep.subr.bf16.mxu1 %v9344_v17 }
 0xa82   :  { %7797 = vmatpush3.bf16.msra.mxu0 %v2825_v2  ;;  %v8133_v2 = vld [vmem:[#allocation26 + $0x8] sm:$0xff]  }
 0xa83   :  { %7560 = vmatprep.subr.bf16.mxu0 %v8120_v10  ;;  %v8154_v10 = vld [vmem:[#allocation28 + $0x10] ss:$8 sps:$4 sm:$0xff]  }
 0xa84   :  { %7805 = vmatpush3.bf16.msra.mxu1 %v2827_v3  ;;  %v8134_v3 = vld [vmem:[#allocation26 + $0x40] sm:$0xff]  }
 0xb3d   :  { %v2863_v4 = vpop.f32.mrf.mxu0 }
 0xb3e   :  { %v2911_v51 = vsel %vm1953_vm2, %v2863_v4, -inf }
 0xb3f   :  { %v7784_v5 = vpop.f32.mrf.mxu0  ;;  %v2904_v7 = vpop.f32.mrf.mxu1 }
 0xb40   :  { %v2917_v8 = vsel %vm1953_vm2, %v2904_v7, -inf  ;;  %v8136_v5 = vld [vmem:[#allocation28 + $0x70] ss:$8 sps:$4 sm:$0xff]  }
 0xb41   :  { %v2866_v9 = vpop.f32.mrf.mxu0  ;;  %2918 = vmax.xlane.f32.xlu0 %v2917_v8  ;;  %v7792_v11 = vpop.f32.mrf.mxu1 }
 0xb42   :  { %v2914_v20 = vsel %vm1953_vm2, %v2866_v9, -inf }
 0xb43   :  { %v7785_v12 = vpop.f32.mrf.mxu0  ;;  %v2907_v16 = vpop.f32.mrf.mxu1 }
 0xb44   :  { %v2920_v19 = vsel %vm1953_vm2, %v2907_v16, -inf }
 0xb45   :  { %2912 = vmax.xlane.f32.xlu0 %v2911_v51  ;;  %2921 = vmax.xlane.f32.xlu1 %v2920_v19  ;;  %v7793_v17 = vpop.f32.mrf.mxu1 }
 0xb49   :  { %2915 = vmax.xlane.f32.xlu1 %v2914_v20 }
 0xbca   :  { %v2919_v21 = vpop.xlane.xlu0 %2918 }
 0xbcb   :  { %v2925_v22 = vsub.f32 %v2904_v7, %v2919_v21  ;;  %v8138_v7 = vld [vmem:[#allocation28 + $0x74] ss:$8 sps:$4 sm:$0xff]  }
 0xbcc   :  { %3413 = vmatprep.subr.bf16.mxu1 %v8138_v7 }
 0xbcd   :  { %v2931_v25 = vmul.f32 1.442695, %v2925_v22 }
 0xbce   :  { %v2913_v26 = vpop.xlane.xlu0 %2912  ;;  %v2922_v29 = vpop.xlane.xlu1 %2921 }
 0xbcf   :  { %8544 = vpow2.f32 %v2931_v25  ;;  %v2923_v31 = vsub.f32 %v2863_v4, %v2913_v26  ;;  %v2926_v53 = vsub.f32 %v2907_v16, %v2922_v29  ;;  %v8135_v4 = vld [vmem:[#allocation26] sm:$0xff]  }
 0xbd1   :  { %v2927_v35 = vmul.f32 1.442695, %v2923_v31  ;;  %v2933_v38 = vmul.f32 1.442695, %v2926_v53 }
 0xbd2   :  { %v2916_v40 = vpop.xlane.xlu1 %2915 }
 0xbd3   :  { %8546 = vpow2.f32 %v2927_v35  ;;  %v2924_v45 = vsub.f32 %v2866_v9, %v2916_v40 }
 0xbd4   :  { %8548 = vpow2.f32 %v2933_v38 }
 0xbd5   :  { %v2929_v42 = vmul.f32 1.442695, %v2924_v45 }
 0xbd7   :  { %8550 = vpow2.f32 %v2929_v42  ;;  %v8141_v42 = vld [vmem:[#allocation28 + $0x64] ss:$8 sps:$4 sm:$0xff]  }
 0xbdc   :  { %v8545_v14 = vpop.eup %8544 }
 0xbdd   :  { %v2941_v43 = vsel %vm1953_vm2, %v8545_v14, 0.0 }
 0xbde   :  { %2942 = vadd.xlane.f32.xlu0 %v2941_v43  ;;  %v8144_v43 = vld [vmem:[#allocation28 + $0x54] ss:$8 sps:$4 sm:$0xff]  }
 0xbe0   :  { %v8547_v44 = vpop.eup %8546 }
 0xbe1   :  { %v8549_v62 = vpop.eup %8548  ;;  %v2935_v46 = vsel %vm1953_vm2, %v8547_v44, 0.0 }
 0xbe2   :  { %2936 = vadd.xlane.f32.xlu0 %v2935_v46  ;;  %v2944_v47 = vsel %vm1953_vm2, %v8549_v62, 0.0  ;;  %v2952_v24 = vpack.c.bf16 %v8549_v62, %v8545_v14  ;;  %v8139_v14 = vld [vmem:[#allocation28 + $0x60] ss:$8 sps:$4 sm:$0xff]   ;;  %v8147_v62 = vld [vmem:[#allocation28 + $0x44] ss:$8 sps:$4 sm:$0xff]  }
 0xbe3   :  { %2945 = vadd.xlane.f32.xlu1 %v2944_v47  ;;  %v8145_v46 = vld [vmem:[#allocation28 + $0x40] ss:$8 sps:$4 sm:$0xff]   ;;  %v8148_v47 = vld [vmem:[#allocation28 + $0x30] ss:$8 sps:$4 sm:$0xff]  }
 0xbe4   :  { %v8551_v6 = vpop.eup %8550  ;;  %7807 = vmatmul.mubr.msk.bf16.vlgmr.msra.gmra.mxu1 %vm1953_vm2, %v2952_v24  ;;  %v8150_v24 = vld [vmem:[#allocation28 + $0x34] ss:$8 sps:$4 sm:$0xff]  }
 0xbe5   :  { %v2938_v48 = vsel %vm1953_vm2, %v8551_v6, 0.0  ;;  %v2951_v49 = vpack.c.bf16 %v8551_v6, %v8547_v44  ;;  %3445 = vmatprep.mubr.bf16.mxu1 %v9343_v37  ;;  %3414 = vmatpush1.bf16.msra.mxu1 %v8136_v5  ;;  %v8142_v44 = vld [vmem:[#allocation28 + $0x50] ss:$8 sps:$4 sm:$0xff]   ;;  %v8153_v6 = vld [vmem:[#allocation28 + $0x24] ss:$8 sps:$4 sm:$0xff]  }
 0xbe6   :  { %3270 = vadd.xlane.f32.xlu0 %v9803_v15  ;;  %3415 = vmatprep.subr.bf16.mxu1 %v8141_v42  ;;  %v8198_v42 = vld [vmem:[#allocation29 + $0x14] ss:$8 sps:$4 sm:$0xff]  }
 0xbe7   :  { %2939 = vadd.xlane.f32.xlu1 %v2938_v48  ;;  %7799 = vmatmul.mubr.msk.bf16.vlgmr.msra.gmra.mxu0 %vm1953_vm2, %v2951_v49  ;;  %v8151_v48 = vld [vmem:[#allocation28 + $0x20] ss:$8 sps:$4 sm:$0xff]   ;;  %v8156_v49 = vld [vmem:[#allocation28 + $0x14] ss:$8 sps:$4 sm:$0xff]  }
 0xbe8   :  { %7561 = vmatpush3.bf16.msra.mxu0 %v8121_v50  ;;  %v8159_v50 = vld [vmem:[#allocation28 + $0x4] ss:$8 sps:$4 sm:$0xff]  }
 0xbe9   :  { %7562 = vmatprep.subr.bf16.mxu0 %v8122_v28  ;;  %3416 = vmatpush1.bf16.msra.mxu1 %v8139_v14  ;;  %v8157_v28 = vld [vmem:[#allocation28] ss:$8 sps:$4 sm:$0xff]   ;;  %v8196_v14 = vld [vmem:[#allocation29 + $0x10] ss:$8 sps:$4 sm:$0xff]  }
 0xbea   :  { %3274 = vadd.xlane.f32.xlu0 %v9811_v30  ;;  %3417 = vmatprep.subr.bf16.mxu1 %v8144_v43  ;;  %v8204_v43 = vld [vmem:[#allocation29 + $0x4] ss:$8 sps:$4 sm:$0xff]  }
 0xbeb   :  { %3272 = vadd.xlane.f32.xlu1 %v9805_v18 }
 0xbec   :  { %7563 = vmatpush3.bf16.msra.mxu0 %v8123_v54 }
 0xbed   :  { %7564 = vmatprep.subr.bf16.mxu0 %v8124_v55  ;;  %3418 = vmatpush1.bf16.msra.mxu1 %v8142_v44  ;;  %v8202_v44 = vld [vmem:[#allocation29] ss:$8 sps:$4 sm:$0xff]  }
 0xbee   :  { %3419 = vmatprep.subr.bf16.mxu1 %v8147_v62 }
 0xbef   :  { %3276 = vadd.xlane.f32.xlu1 %v9813_v34 }
 0xbf0   :  { %7565 = vmatpush3.bf16.msra.mxu0 %v8125_v56 }
 0xbf1   :  { %7566 = vmatprep.subr.bf16.mxu0 %v8126_v58  ;;  %3420 = vmatpush1.bf16.msra.mxu1 %v8145_v46 }
 0xbf2   :  { %3421 = vmatprep.subr.bf16.mxu1 %v8150_v24 }
 0xbf4   :  { %7567 = vmatpush3.bf16.msra.mxu0 %v8127_v59  ;;  %v8162_v59 = vld [vmem:[#allocation29 + $0x74] ss:$8 sps:$4 sm:$0xff]  }
 0xbf5   :  { %7568 = vmatprep.subr.bf16.mxu0 %v8128_v60  ;;  %3422 = vmatpush1.bf16.msra.mxu1 %v8148_v47 }
 0xbf6   :  { %3423 = vmatprep.subr.bf16.mxu1 %v8153_v6 }
 0xbf8   :  { %7569 = vmatpush3.bf16.msra.mxu0 %v8129_v23 }
 0xbf9   :  { %7570 = vmatprep.subr.bf16.mxu0 %v8130_v63  ;;  %3424 = vmatpush1.bf16.msra.mxu1 %v8151_v48  ;;  %v8165_v63 = vld [vmem:[#allocation31 + $0x74] ss:$8 sps:$4 sm:$0xff]  }
 0xbfa   :  { %3425 = vmatprep.subr.bf16.mxu1 %v8156_v49 }
 0xbfc   :  { %7571 = vmatpush3.bf16.msra.mxu0 %v8131_v0 }
 0xbfd   :  { %7572 = vmatprep.subr.bf16.mxu0 %v8132_v1  ;;  %3426 = vmatpush1.bf16.msra.mxu1 %v8154_v10 }
 0xbfe   :  { %3427 = vmatprep.subr.bf16.mxu1 %v8159_v50 }
 0xc00   :  { %7573 = vmatpush3.bf16.msra.mxu0 %v8133_v2 }
 0xc01   :  { %7574 = vmatprep.subr.bf16.mxu0 %v8134_v3  ;;  %3428 = vmatpush1.bf16.msra.mxu1 %v8157_v28 }
 0xc02   :  { %3669 = vmatprep.subr.bf16.mxu1 %v8165_v63 }
 0xc04   :  { %7575 = vmatpush3.bf16.msra.mxu0 %v8135_v4 }
 0xc05   :  { %3546 = vmatprep.subr.bf16.mxu0 %v8162_v59 }
 0xc67   :  { %v2943_v8 = vpop.xlane.xlu0 %2942 }
 0xc68   :  { %8552 = vrcp.f32 %v2943_v8 }
 0xc6b   :  { %v2937_v9 = vpop.xlane.xlu0 %2936 }
 0xc6c   :  { %v2946_v11 = vpop.xlane.xlu1 %2945 }
 0xc6d   :  { %8554 = vrcp.f32 %v2946_v11 }
 0xc6e   :  { %8556 = vrcp.f32 %v2937_v9 }
 0xc6f   :  { %v3271_v12 = vpop.xlane.xlu0 %3270 }
 0xc70   :  { %v3278_v16 = vmul.f32 0.0078125, %v3271_v12  ;;  %v2940_v51 = vpop.xlane.xlu1 %2939 }
 0xc71   :  { %8558 = vrcp.f32 %v2940_v51 }
 0xc72   :  { %v9847_v19 = vsub.f32 %v9803_v15, %v3278_v16  ;;  %v8160_v16 = vld [vmem:[#allocation29 + $0x70] ss:$8 sps:$4 sm:$0xff]  }
 0xc73   :  { %v3275_v17 = vpop.xlane.xlu0 %3274 }
 0xc74   :  { %v3280_v20 = vmul.f32 0.0078125, %v3275_v17  ;;  %v3273_v21 = vpop.xlane.xlu1 %3272  ;;  %v3286_v22 = vmul.f32 %v9847_v19, %v9847_v19  ;;  %v8168_v17 = vld [vmem:[#allocation29 + $0x64] ss:$8 sps:$4 sm:$0xff]  }
 0xc75   :  { %v3279_v25 = vmul.f32 0.0078125, %v3273_v21  ;;  %v8553_v56 = vpop.eup %8552  ;;  %v8174_v21 = vld [vmem:[#allocation29 + $0x54] ss:$8 sps:$4 sm:$0xff]  }
 0xc76   :  { %v9852_v26 = vsub.f32 %v9811_v30, %v3280_v20  ;;  %3290 = vadd.xlane.f32.xlu0 %v3286_v22  ;;  %v8166_v20 = vld [vmem:[#allocation29 + $0x60] ss:$8 sps:$4 sm:$0xff]   ;;  %v8172_v22 = vld [vmem:[#allocation29 + $0x50] ss:$8 sps:$4 sm:$0xff]  }
 0xc77   :  { %v9855_v29 = vsub.f32 %v9805_v18, %v3279_v25  ;;  %v8180_v25 = vld [vmem:[#allocation29 + $0x44] ss:$8 sps:$4 sm:$0xff]  }
 0xc78   :  { %v3277_v31 = vpop.xlane.xlu1 %3276  ;;  %v3288_v53 = vmul.f32 %v9852_v26, %v9852_v26 }
 0xc79   :  { %v3281_v35 = vmul.f32 0.0078125, %v3277_v31  ;;  %v3287_v38 = vmul.f32 %v9855_v29, %v9855_v29  ;;  %v8178_v31 = vld [vmem:[#allocation29 + $0x40] ss:$8 sps:$4 sm:$0xff]  }
 0xc7a   :  { %3294 = vadd.xlane.f32.xlu0 %v3288_v53  ;;  %v8555_v60 = vpop.eup %8554  ;;  %v8186_v53 = vld [vmem:[#allocation29 + $0x34] ss:$8 sps:$4 sm:$0xff]  }
 0xc7b   :  { %v9862_v40 = vsub.f32 %v9813_v34, %v3281_v35  ;;  %3292 = vadd.xlane.f32.xlu1 %v3287_v38  ;;  %v8557_v3 = vpop.eup %8556  ;;  %v8184_v35 = vld [vmem:[#allocation29 + $0x30] ss:$8 sps:$4 sm:$0xff]   ;;  %v8192_v38 = vld [vmem:[#allocation29 + $0x24] ss:$8 sps:$4 sm:$0xff]  }
 0xc7d   :  { %v3289_v45 = vmul.f32 %v9862_v40, %v9862_v40 }
 0xc7e   :  { %v8559_v5 = vpop.eup %8558 }
 0xc7f   :  { %3296 = vadd.xlane.f32.xlu1 %v3289_v45  ;;  %v8190_v45 = vld [vmem:[#allocation29 + $0x20] ss:$8 sps:$4 sm:$0xff]  }
 0xca4   :  { %v3034_v54 = vpop.f32.mrf.mxu1 }
 0xca5   :  { %v3043_v0 = vmul.f32 %v8553_v56, %v3034_v54  ;;  %v9867_v56 = vld [vmem:[#allocation7 + $0x8] sm:$0xff] }
 0xca6   :  { %v7808_v55 = vpop.f32.mrf.mxu1 }
 0xca7   :  { %v2990_v58 = vpop.f32.mrf.mxu0 }
 0xca8   :  { %v3037_v23 = vpop.f32.mrf.mxu1  ;;  %v3041_v9 = vmul.f32 %v8557_v3, %v2990_v58 }
 0xca9   :  { %v3044_v1 = vmul.f32 %v8555_v60, %v3037_v23  ;;  %v7800_v2 = vpop.f32.mrf.mxu0  ;;  %v3317_v60 = vrot.slane %v9867_v56, %v9663_v57 }
 0xcaa   :  { %v7809_v4 = vpop.f32.mrf.mxu1 }
 0xcab   :  { %v3046_v7 = vpack.c.bf16 %v3044_v1, %v3043_v0  ;;  %v2993_v8 = vpop.f32.mrf.mxu0  ;;  %v3325_v1 = vrot.slane %v9867_v56, %v9752_v13 }
 0xcac   :  { %v3042_v11 = vmul.f32 %v8559_v5, %v2993_v8 }
 0xcad   :  { %3179 = vmatprep.mubr.bf16.mxu0 %v3046_v7  ;;  %v7801_v12 = vpop.f32.mrf.mxu0 }
 0xcae   :  { %v3045_v51 = vpack.c.bf16 %v3042_v11, %v3041_v9 }
 0xcb0   :  { %3180 = vmatmul.mubr.bf16.vlgmr.msra.gmra.mxu0 %v3045_v51 }
 0xcb1   :  { %3547 = vmatpush1.bf16.msra.mxu0 %v8160_v16  ;;  %3578 = vmatprep.mubr.bf16.mxu0 %v9343_v37  ;;  %v8171_v16 = vld [vmem:[#allocation31 + $0x64] ss:$8 sps:$4 sm:$0xff]  }
 0xcb2   :  { %3548 = vmatprep.subr.bf16.mxu0 %v8168_v17 }
 0xcb5   :  { %3549 = vmatpush1.bf16.msra.mxu0 %v8166_v20  ;;  %v8177_v20 = vld [vmem:[#allocation31 + $0x54] ss:$8 sps:$4 sm:$0xff]  }
 0xcb6   :  { %3550 = vmatprep.subr.bf16.mxu0 %v8174_v21 }
 0xcb9   :  { %3551 = vmatpush1.bf16.msra.mxu0 %v8172_v22  ;;  %v8175_v22 = vld [vmem:[#allocation31 + $0x50] ss:$8 sps:$4 sm:$0xff]  }
 0xcba   :  { %3552 = vmatprep.subr.bf16.mxu0 %v8180_v25 }
 0xcbd   :  { %3553 = vmatpush1.bf16.msra.mxu0 %v8178_v31  ;;  %v8189_v31 = vld [vmem:[#allocation31 + $0x34] ss:$8 sps:$4 sm:$0xff]  }
 0xcbe   :  { %3554 = vmatprep.subr.bf16.mxu0 %v8186_v53  ;;  %v8187_v53 = vld [vmem:[#allocation31 + $0x30] ss:$8 sps:$4 sm:$0xff]  }
 0xcc1   :  { %3555 = vmatpush1.bf16.msra.mxu0 %v8184_v35  ;;  %v8195_v35 = vld [vmem:[#allocation31 + $0x24] ss:$8 sps:$4 sm:$0xff]  }
 0xcc2   :  { %3556 = vmatprep.subr.bf16.mxu0 %v8192_v38  ;;  %v8193_v38 = vld [vmem:[#allocation31 + $0x20] ss:$8 sps:$4 sm:$0xff]  }
 0xcc5   :  { %3557 = vmatpush1.bf16.msra.mxu0 %v8190_v45  ;;  %v8201_v45 = vld [vmem:[#allocation31 + $0x14] ss:$8 sps:$4 sm:$0xff]  }
 0xcc6   :  { %3558 = vmatprep.subr.bf16.mxu0 %v8198_v42  ;;  %v8199_v42 = vld [vmem:[#allocation31 + $0x10] ss:$8 sps:$4 sm:$0xff]  }
 0xcc9   :  { %3559 = vmatpush1.bf16.msra.mxu0 %v8196_v14  ;;  %v8207_v14 = vld [vmem:[#allocation31 + $0x4] ss:$8 sps:$4 sm:$0xff]  }
 0xcca   :  { %3560 = vmatprep.subr.bf16.mxu0 %v8204_v43  ;;  %v8205_v43 = vld [vmem:[#allocation31] ss:$8 sps:$4 sm:$0xff]  }
 0xccd   :  { %3561 = vmatpush1.bf16.msra.mxu0 %v8202_v44 }
 0xcff   :  { %v3291_v62 = vpop.xlane.xlu0 %3290 }
 0xd00   :  { %v3298_v46 = vmul.f32 0.0078125, %v3291_v62 }
 0xd02   :  { %v3302_v47 = vadd.f32 1e-05, %v3298_v46  ;;  %v3050_v46 = vrot.slane %v9867_v56, %v9655_v52 }
 0xd03   :  { %v3295_v24 = vpop.xlane.xlu0 %3294 }
 0xd04   :  { %8560 = vrsqrt.f32 %v3302_v47  ;;  %v3300_v6 = vmul.f32 0.0078125, %v3295_v24  ;;  %v3293_v48 = vpop.xlane.xlu1 %3292 }
 0xd05   :  { %v3299_v49 = vmul.f32 0.0078125, %v3293_v48 }
 0xd06   :  { %v3304_v10 = vadd.f32 1e-05, %v3300_v6 }
 0xd07   :  { %v3303_v50 = vadd.f32 1e-05, %v3299_v49 }
 0xd08   :  { %v3297_v28 = vpop.xlane.xlu1 %3296 }
 0xd09   :  { %8562 = vrsqrt.f32 %v3303_v50  ;;  %v3301_v54 = vmul.f32 0.0078125, %v3297_v28 }
 0xd0a   :  { %8564 = vrsqrt.f32 %v3304_v10 }
 0xd0b   :  { %v3305_v55 = vadd.f32 1e-05, %v3301_v54 }
 0xd0d   :  { %8566 = vrsqrt.f32 %v3305_v55 }
 0xd11   :  { %v8561_v58 = vpop.eup %8560 }
 0xd12   :  { %v3310_v59 = vmul.f32 %v8561_v58, %v9847_v19  ;;  %v8163_v19 = vld [vmem:[#allocation31 + $0x70] ss:$8 sps:$4 sm:$0xff]  }
 0xd14   :  { %v3318_v0 = vmul.f32 %v3317_v60, %v3310_v59 }
 0xd16   :  { %v8563_v23 = vpop.eup %8562  ;;  %v3326_v5 = vadd.f32 %v3325_v1, %v3318_v0 }
 0xd17   :  { %v3311_v63 = vmul.f32 %v8563_v23, %v9855_v29  ;;  %v8565_v2 = vpop.eup %8564  ;;  %v8169_v29 = vld [vmem:[#allocation31 + $0x60] ss:$8 sps:$4 sm:$0xff]  }
 0xd18   :  { %v3312_v8 = vmul.f32 %v8565_v2, %v9852_v26  ;;  %v8183_v26 = vld [vmem:[#allocation31 + $0x44] ss:$8 sps:$4 sm:$0xff]  }
 0xd19   :  { %v3319_v3 = vmul.f32 %v3317_v60, %v3311_v63 }
 0xd1a   :  { %v8567_v4 = vpop.eup %8566  ;;  %v3320_v51 = vmul.f32 %v3317_v60, %v3312_v8 }
 0xd1b   :  { %v3327_v7 = vadd.f32 %v3325_v1, %v3319_v3  ;;  %v3313_v9 = vmul.f32 %v8567_v4, %v9862_v40  ;;  %v8181_v40 = vld [vmem:[#allocation31 + $0x40] ss:$8 sps:$4 sm:$0xff]  }
 0xd1c   :  { %v3328_v21 = vadd.f32 %v3325_v1, %v3320_v51 }
 0xd1d   :  { %v3330_v11 = vpack.c.bf16 %v3327_v7, %v3326_v5  ;;  %v3321_v12 = vmul.f32 %v3317_v60, %v3313_v9 }
 0xd1f   :  { %3446 = vmatmul.mubr.bf16.vlgmr.msra.gmra.mxu1 %v3330_v11  ;;  %v3329_v17 = vadd.f32 %v3325_v1, %v3321_v12 }
 0xd20   :  { %3455 = vmatprep.mubr.bf16.mxu1 %v9343_v37  ;;  %3670 = vmatpush1.bf16.msra.mxu1 %v8163_v19 }
 0xd21   :  { %3671 = vmatprep.subr.bf16.mxu1 %v8171_v16  ;;  %v3331_v25 = vpack.c.bf16 %v3329_v17, %v3328_v21 }
 0xd24   :  { %3672 = vmatpush1.bf16.msra.mxu1 %v8169_v29 }
 0xd25   :  { %3673 = vmatprep.subr.bf16.mxu1 %v8177_v20 }
 0xd27   :  { %3456 = vmatmul.mubr.bf16.gmra.mxu1 %v3331_v25 }
 0xd28   :  { %3674 = vmatpush1.bf16.msra.mxu1 %v8175_v22  ;;  %3701 = vmatprep.mubr.bf16.mxu1 %v9343_v37 }
 0xd29   :  { %3675 = vmatprep.subr.bf16.mxu1 %v8183_v26 }
 0xd2c   :  { %3676 = vmatpush1.bf16.msra.mxu1 %v8181_v40 }
 0xd2d   :  { %3677 = vmatprep.subr.bf16.mxu1 %v8189_v31 }
 0xd30   :  { %3678 = vmatpush1.bf16.msra.mxu1 %v8187_v53 }
 0xd31   :  { %3679 = vmatprep.subr.bf16.mxu1 %v8195_v35 }
 0xd34   :  { %3680 = vmatpush1.bf16.msra.mxu1 %v8193_v38 }
 0xd35   :  { %3681 = vmatprep.subr.bf16.mxu1 %v8201_v45 }
 0xd38   :  { %3682 = vmatpush1.bf16.msra.mxu1 %v8199_v42 }
 0xd39   :  { %3683 = vmatprep.subr.bf16.mxu1 %v8207_v14 }
 0xd3c   :  { %3684 = vmatpush1.bf16.msra.mxu1 %v8205_v43 }
 0xd70   :  { %v7576_v44 = vpop.f32.mrf.mxu0 }
 0xd72   :  { %v7577_v62 = vpop.f32.mrf.mxu0 }
 0xd73   :  { %v7578_v47 = vadd.f32 %v7577_v62, %v7576_v44 }
 0xd74   :  { %v7579_v24 = vpop.f32.mrf.mxu0 }
 0xd75   :  { %v3182_v48 = vadd.f32 %v7578_v47, %v3050_v46 }
 0xd76   :  { %v7580_v6 = vpop.f32.mrf.mxu0 }
 0xd77   :  { %v7581_v49 = vadd.f32 %v7580_v6, %v7579_v24  ;;  %v9882_v50 = vadd.f32 %v3182_v48, %v9767_v36 }
 0xd79   :  { %v3185_v10 = vadd.f32 %v7581_v49, %v3050_v46 }
 0xd7b   :  { %v9885_v28 = vadd.f32 %v3185_v10, %v9772_v41 }
 0xd7d   :  { %v3332_v54 = vpack.c.bf16 %v9885_v28, %v9882_v50 }
 0xd7f   :  { %3579 = vmatmul.mubr.bf16.vlgmr.msra.gmra.mxu0 %v3332_v54  ;;  %3702 = vmatmul.mubr.bf16.vlgmr.msra.gmra.mxu1 %v3332_v54 }
 0xddf   :  { %v3447_v55 = vpop.f32.mrf.mxu1 }
 0xde1   :  { %v3449_v58 = vpop.f32.mrf.mxu1 }
 0xde3   :  { %v3451_v59 = vpop.f32.mrf.mxu1 }
 0xde4   :  { %v3712_v60 = vpack.c.bf16 %v3451_v59, %v3447_v55 }
 0xde5   :  { %v3453_v23 = vpop.f32.mrf.mxu1 }
 0xde6   :  { %v3714_v63 = vpack.c.bf16 %v3453_v23, %v3449_v58  ;;  %7812 = vmatprep.mubr.bf16.mxu0 %v3712_v60 }
 0xde7   :  { %v3457_v0 = vpop.f32.mrf.mxu1 }
 0xde8   :  { %7818 = vmatprep.mubr.bf16.mxu1 %v3714_v63 }
 0xde9   :  { %v3459_v1 = vpop.f32.mrf.mxu1 }
 0xdeb   :  { %v3461_v36 = vpop.f32.mrf.mxu1 }
 0xdec   :  { %v3713_v29 = vpack.c.bf16 %v3461_v36, %v3457_v0 }
 0xded   :  { %v3463_v2 = vpop.f32.mrf.mxu1 }
 0xdee   :  { %v3715_v17 = vpack.c.bf16 %v3463_v2, %v3459_v1 }
 0xe3f   :  { %v3580_v3 = vpop.f32.mrf.mxu0  ;;  %v3703_v41 = vpop.f32.mrf.mxu1 }
 0xe41   :  { %v3582_v4 = vpop.f32.mrf.mxu0  ;;  %v3705_v5 = vpop.f32.mrf.mxu1 }
 0xe43   :  { %v3584_v7 = vpop.f32.mrf.mxu0  ;;  %v3707_v8 = vpop.f32.mrf.mxu1 }
 0xe44   :  { %v3716_v9 = vpack.c.bf16 %v3584_v7, %v3580_v3  ;;  %v3718_v12 = vpack.c.bf16 %v3707_v8, %v3703_v41 }
 0xe45   :  { %v3586_v19 = vpop.f32.mrf.mxu0  ;;  %v3709_v11 = vpop.f32.mrf.mxu1 }
 0xe46   :  { %v3717_v16 = vpack.c.bf16 %v3586_v19, %v3582_v4  ;;  %7810 = vmatprep.subr.bf16.mxu0 %v3716_v9  ;;  %v3719_v51 = vpack.c.bf16 %v3709_v11, %v3705_v5 }
 0xe47   :  { %7811 = vmatpush3.bf16.xpose.msra.mxu0 %v3716_v9 }
 0xe48   :  { %7816 = vmatprep.subr.bf16.mxu1 %v3717_v16  ;;  %7822 = vmatprep.subr.bf16.mxu0 %v3718_v12 }
 0xe49   :  { %7817 = vmatpush3.bf16.xpose.msra.mxu1 %v3717_v16 }
 0xe4a   :  { %7828 = vmatprep.subr.bf16.mxu1 %v3719_v51 }
 0xe4e   :  { %7813 = vmatmul.mubr.bf16.vlgmr.msra.gmra.mxu0 %v3713_v29 }
 0xe4f   :  { %7823 = vmatpush3.bf16.msra.mxu0 %v3718_v12 }
 0xe50   :  { %7819 = vmatmul.mubr.bf16.vlgmr.msra.gmra.mxu1 %v3715_v17 }
 0xe51   :  { %7829 = vmatpush3.bf16.msra.mxu1 %v3719_v51 }
 0xf0e   :  { %v7814_v20 = vpop.f32.mrf.mxu0 }
 0xf0f   :  { %v3824_v43 = vsel %vm1022_vm1, %v7814_v20, -inf }
 0xf10   :  { %v3754_v21 = vpop.f32.mrf.mxu0  ;;  %v7820_v22 = vpop.f32.mrf.mxu1 }
 0xf11   :  { %v3818_v25 = vsel %vm1022_vm1, %v3754_v21, -inf  ;;  %v3836_v35 = vsel %vm1022_vm1, %v7820_v22, -inf }
 0xf12   :  { %3819 = vmax.xlane.f32.xlu0 %v3818_v25  ;;  %v7815_v26 = vpop.f32.mrf.mxu0  ;;  %v3803_v40 = vpop.f32.mrf.mxu1 }
 0xf13   :  { %v3830_v45 = vsel %vm1022_vm1, %v3803_v40, -inf  ;;  %v3827_v62 = vsel %vm1022_vm1, %v7815_v26, -inf }
 0xf14   :  { %v3757_v31 = vpop.f32.mrf.mxu0  ;;  %v7821_v38 = vpop.f32.mrf.mxu1 }
 0xf15   :  { %v3821_v53 = vsel %vm1022_vm1, %v3757_v31, -inf  ;;  %v3839_v42 = vsel %vm1022_vm1, %v7821_v38, -inf }
 0xf16   :  { %3822 = vmax.xlane.f32.xlu1 %v3821_v53  ;;  %3837 = vmax.xlane.f32.xlu0 %v3836_v35  ;;  %v3806_v14 = vpop.f32.mrf.mxu1 }
 0xf17   :  { %v3833_v44 = vsel %vm1022_vm1, %v3806_v14, -inf }
 0xf1a   :  { %3831 = vmax.xlane.f32.xlu0 %v3830_v45  ;;  %3840 = vmax.xlane.f32.xlu1 %v3839_v42 }
 0xf1e   :  { %3825 = vmax.xlane.f32.xlu0 %v3824_v43  ;;  %3834 = vmax.xlane.f32.xlu1 %v3833_v44 }
 0xf22   :  { %4305 = vadd.xlane.f32.xlu0 %v9882_v50  ;;  %3828 = vmax.xlane.f32.xlu1 %v3827_v62 }
 0xf26   :  { %4307 = vadd.xlane.f32.xlu1 %v9885_v28 }
 0xf9b   :  { %v3820_v46 = vpop.xlane.xlu0 %3819 }
 0xf9c   :  { %v3842_v47 = vsub.f32 %v3754_v21, %v3820_v46 }
 0xf9e   :  { %v3850_v24 = vmul.f32 1.442695, %v3842_v47 }
 0xf9f   :  { %v3823_v6 = vpop.xlane.xlu1 %3822  ;;  %v3838_v48 = vpop.xlane.xlu0 %3837 }
 0xfa0   :  { %v3843_v49 = vsub.f32 %v3757_v31, %v3823_v6  ;;  %8568 = vpow2.f32 %v3850_v24  ;;  %v3848_v60 = vsub.f32 %v7820_v22, %v3838_v48  ;;  %v8210_v48 = vld [vmem:[#allocation34 + $0xe4] ss:$16 sps:$4 sm:$0xff]  }
 0xfa1   :  { %4538 = vmatprep.subr.bf16.mxu1 %v8210_v48 }
 0xfa2   :  { %v3852_v10 = vmul.f32 1.442695, %v3843_v49  ;;  %v3862_v3 = vmul.f32 1.442695, %v3848_v60  ;;  %v8208_v49 = vld [vmem:[#allocation34 + $0xe0] ss:$16 sps:$4 sm:$0xff]  }
 0xfa3   :  { %v3832_v54 = vpop.xlane.xlu0 %3831  ;;  %v3841_v55 = vpop.xlane.xlu1 %3840  ;;  %v8217_v60 = vld [vmem:[#allocation34 + $0x80] ss:$16 sps:$4 sm:$0xff]  }
 0xfa4   :  { %8570 = vpow2.f32 %v3852_v10  ;;  %v3846_v58 = vsub.f32 %v3803_v40, %v3832_v54  ;;  %v3849_v59 = vsub.f32 %v7821_v38, %v3841_v55  ;;  %v8213_v10 = vld [vmem:[#allocation34 + $0xc4] ss:$16 sps:$4 sm:$0xff]   ;;  %v8211_v54 = vld [vmem:[#allocation34 + $0xc0] ss:$16 sps:$4 sm:$0xff]  }
 0xfa5   :  { %v8216_v55 = vld [vmem:[#allocation34 + $0xa4] ss:$16 sps:$4 sm:$0xff]  }
 0xfa6   :  { %v3858_v23 = vmul.f32 1.442695, %v3846_v58  ;;  %v3864_v1 = vmul.f32 1.442695, %v3849_v59  ;;  %v8214_v58 = vld [vmem:[#allocation34 + $0xa0] ss:$16 sps:$4 sm:$0xff]  }
 0xfa7   :  { %v3826_v63 = vpop.xlane.xlu0 %3825  ;;  %v3835_v0 = vpop.xlane.xlu1 %3834  ;;  %v8219_v59 = vld [vmem:[#allocation34 + $0x84] ss:$16 sps:$4 sm:$0xff]  }
 0xfa8   :  { %8572 = vpow2.f32 %v3858_v23  ;;  %v3844_v36 = vsub.f32 %v7814_v20, %v3826_v63  ;;  %v3847_v2 = vsub.f32 %v3806_v14, %v3835_v0  ;;  %v8222_v23 = vld [vmem:[#allocation34 + $0x64] ss:$16 sps:$4 sm:$0xff]   ;;  %v8220_v63 = vld [vmem:[#allocation34 + $0x60] ss:$16 sps:$4 sm:$0xff]   ;;  %v8229_v0 = vld [vmem:[#allocation32 + $0x78] sm:$0xff]  }
 0xfa9   :  { %8574 = vpow2.f32 %v3864_v1  ;;  %v8225_v1 = vld [vmem:[#allocation34 + $0x44] ss:$16 sps:$4 sm:$0xff]   ;;  %7594 = vmatprep.subr.bf16.mxu0 %v8229_v0 }
 0xfaa   :  { %v3860_v41 = vmul.f32 1.442695, %v3847_v2  ;;  %v3854_v4 = vmul.f32 1.442695, %v3844_v36  ;;  %v8233_v36 = vld [vmem:[#allocation32 + $0x38] sm:$0xff]   ;;  %v8234_v2 = vld [vmem:[#allocation32 + $0x70] sm:$0xff]  }
 0xfab   :  { %v3829_v5 = vpop.xlane.xlu1 %3828  ;;  %v4306_v17 = vpop.xlane.xlu0 %4305 }
 0xfac   :  { %v3845_v7 = vsub.f32 %v7815_v26, %v3829_v5  ;;  %8576 = vpow2.f32 %v3860_v41  ;;  %v4309_v53 = vmul.f32 0.0078125, %v4306_v17  ;;  %v8223_v41 = vld [vmem:[#allocation34 + $0x40] ss:$16 sps:$4 sm:$0xff]  }
 0xfad   :  { %8578 = vpow2.f32 %v3862_v3  ;;  %v8569_v9 = vpop.eup %8568  ;;  %v8238_v3 = vld [vmem:[#allocation32 + $0x30] sm:$0xff]  }
 0xfae   :  { %v3856_v8 = vmul.f32 1.442695, %v3845_v7  ;;  %8580 = vpow2.f32 %v3854_v4  ;;  %v3866_v20 = vsel %vm1022_vm1, %v8569_v9, 0.0  ;;  %v9910_v14 = vsub.f32 %v9882_v50, %v4309_v53  ;;  %v8228_v4 = vld [vmem:[#allocation34 + $0x24] ss:$16 sps:$4 sm:$0xff]  }
 0xfaf   :  { %v4308_v45 = vpop.xlane.xlu1 %4307  ;;  %v8226_v5 = vld [vmem:[#allocation34 + $0x20] ss:$16 sps:$4 sm:$0xff]   ;;  %v8232_v7 = vld [vmem:[#allocation34 + $0x4] ss:$16 sps:$4 sm:$0xff]  }
 0xfb0   :  { %8582 = vpow2.f32 %v3856_v8  ;;  %v4310_v43 = vmul.f32 0.0078125, %v4308_v45  ;;  %v4313_v46 = vmul.f32 %v9910_v14, %v9910_v14  ;;  %v8230_v8 = vld [vmem:[#allocation34] ss:$16 sps:$4 sm:$0xff]  }
 0xfb1   :  { %v8571_v19 = vpop.eup %8570  ;;  %v8254_v17 = vld [vmem:[#allocation32 + $0x50] sm:$0xff]  }
 0xfb2   :  { %v3898_v11 = vpack.c.bf16 %v8571_v19, %v8569_v9  ;;  %v3869_v42 = vsel %vm1022_vm1, %v8571_v19, 0.0  ;;  %v9917_v47 = vsub.f32 %v9885_v28, %v4310_v43  ;;  %v8237_v9 = vld [vmem:[#allocation35 + $0xe4] ss:$16 sps:$4 sm:$0xff]   ;;  %v8239_v19 = vld [vmem:[#allocation32 + $0x68] sm:$0xff]  }
 0xfb4   :  { %7824 = vmatprep.mubr.msk.bf16.mxu0 %vm1022_vm1, %v3898_v11  ;;  %v4314_v6 = vmul.f32 %v9917_v47, %v9917_v47  ;;  %v8243_v11 = vld [vmem:[#allocation32 + $0x28] sm:$0xff]  }
 0xfb5   :  { %v8573_v12 = vpop.eup %8572 }
 0xfb6   :  { %v3878_v16 = vsel %vm1022_vm1, %v8573_v12, 0.0  ;;  %v8575_v51 = vpop.eup %8574 }
 0xfb7   :  { %3879 = vadd.xlane.f32.xlu0 %v3878_v16  ;;  %v3887_v62 = vsel %vm1022_vm1, %v8575_v51, 0.0  ;;  %v8248_v16 = vld [vmem:[#allocation32 + $0x20] sm:$0xff]  }
 0xfb9   :  { %v8577_v29 = vpop.eup %8576 }
 0xfba   :  { %v8579_v21 = vpop.eup %8578  ;;  %v3881_v22 = vsel %vm1022_vm1, %v8577_v29, 0.0  ;;  %v3900_v25 = vpack.c.bf16 %v8577_v29, %v8573_v12  ;;  %v8244_v12 = vld [vmem:[#allocation32 + $0x60] sm:$0xff]   ;;  %v8253_v29 = vld [vmem:[#allocation32 + $0x18] sm:$0xff]  }
 0xfbb   :  { %3867 = vadd.xlane.f32.xlu0 %v3866_v20  ;;  %v8581_v26 = vpop.eup %8580  ;;  %3882 = vadd.xlane.f32.xlu1 %v3881_v22  ;;  %v3901_v40 = vpack.c.bf16 %v8575_v51, %v8579_v21  ;;  %v3884_v35 = vsel %vm1022_vm1, %v8579_v21, 0.0  ;;  %v8249_v51 = vld [vmem:[#allocation32 + $0x58] sm:$0xff]   ;;  %v8258_v20 = vld [vmem:[#allocation32 + $0x10] sm:$0xff]   ;;  %v8259_v21 = vld [vmem:[#allocation32 + $0x48] sm:$0xff]  }
 0xfbc   :  { %7830 = vmatprep.mubr.msk.bf16.mxu1 %vm1022_vm1, %v3900_v25  ;;  %v3872_v44 = vsel %vm1022_vm1, %v8581_v26, 0.0  ;;  %v8263_v22 = vld [vmem:[#allocation32 + $0x8] sm:$0xff]   ;;  %v8264_v25 = vld [vmem:[#allocation32 + $0x40] sm:$0xff]  }
 0xfbd   :  { %v8583_v31 = vpop.eup %8582  ;;  %7831 = vmatmul.mubr.msk.bf16.vlgmr.msra.gmra.mxu1 %vm1022_vm1, %v3901_v40  ;;  %v8271_v40 = vld [vmem:[#allocation34 + $0xec] ss:$16 sps:$4 sm:$0xff]  }
 0xfbe   :  { %v3899_v38 = vpack.c.bf16 %v8583_v31, %v8581_v26  ;;  %4570 = vmatprep.mubr.bf16.mxu1 %v9343_v37  ;;  %v3875_v24 = vsel %vm1022_vm1, %v8583_v31, 0.0  ;;  %4539 = vmatpush1.bf16.msra.mxu1 %v8208_v49  ;;  %v8268_v26 = vld [vmem:[#allocation32] sm:$0xff]  }
 0xfbf   :  { %3885 = vadd.xlane.f32.xlu0 %v3884_v35  ;;  %3870 = vadd.xlane.f32.xlu1 %v3869_v42 }
 0xfc0   :  { %7825 = vmatmul.mubr.msk.bf16.vlgmr.msra.gmra.mxu0 %vm1022_vm1, %v3899_v38  ;;  %4540 = vmatprep.subr.bf16.mxu1 %v8213_v10 }
 0xfc1   :  { %7595 = vmatpush3.bf16.msra.mxu0 %v8233_v36  ;;  %v8235_v36 = vld [vmem:[#allocation35 + $0xe0] ss:$16 sps:$4 sm:$0xff]  }
 0xfc2   :  { %4541 = vmatpush1.bf16.msra.mxu1 %v8211_v54  ;;  %7596 = vmatprep.subr.bf16.mxu0 %v8234_v2 }
 0xfc3   :  { %3873 = vadd.xlane.f32.xlu0 %v3872_v44  ;;  %3888 = vadd.xlane.f32.xlu1 %v3887_v62 }
 0xfc4   :  { %4542 = vmatprep.subr.bf16.mxu1 %v8216_v55  ;;  %v4330_v55 = vrot.slane %v9867_v56, %v9715_v32 }
 0xfc5   :  { %7597 = vmatpush3.bf16.msra.mxu0 %v8238_v3  ;;  %v8242_v3 = vld [vmem:[#allocation35 + $0xc4] ss:$16 sps:$4 sm:$0xff]  }
 0xfc6   :  { %4543 = vmatpush1.bf16.msra.mxu1 %v8214_v58  ;;  %7598 = vmatprep.subr.bf16.mxu0 %v8239_v19  ;;  %v8262_v19 = vld [vmem:[#allocation35 + $0x44] ss:$16 sps:$4 sm:$0xff]  }
 0xfc7   :  { %4315 = vadd.xlane.f32.xlu0 %v4313_v46  ;;  %3876 = vadd.xlane.f32.xlu1 %v3875_v24 }
 0xfc8   :  { %4544 = vmatprep.subr.bf16.mxu1 %v8219_v59 }
 0xfc9   :  { %7599 = vmatpush3.bf16.msra.mxu0 %v8243_v11 }
 0xfca   :  { %4545 = vmatpush1.bf16.msra.mxu1 %v8217_v60  ;;  %7600 = vmatprep.subr.bf16.mxu0 %v8244_v12 }
 0xfcb   :  { %4317 = vadd.xlane.f32.xlu1 %v4314_v6  ;;  %4546 = vmatprep.subr.bf16.mxu1 %v8222_v23  ;;  %v4336_v23 = vrot.slane %v9867_v56, %v9800_v61 }
 0xfcd   :  { %7601 = vmatpush3.bf16.msra.mxu0 %v8248_v16  ;;  %v8260_v16 = vld [vmem:[#allocation35 + $0x40] ss:$16 sps:$4 sm:$0xff]  }
 0xfce   :  { %4547 = vmatpush1.bf16.msra.mxu1 %v8220_v63  ;;  %7602 = vmatprep.subr.bf16.mxu0 %v8249_v51 }
 0xfcf   :  { %4548 = vmatprep.subr.bf16.mxu1 %v8225_v1 }
 0xfd1   :  { %7603 = vmatpush3.bf16.msra.mxu0 %v8253_v29 }
 0xfd2   :  { %4549 = vmatpush1.bf16.msra.mxu1 %v8223_v41  ;;  %7604 = vmatprep.subr.bf16.mxu0 %v8254_v17  ;;  %v8247_v41 = vld [vmem:[#allocation35 + $0xa4] ss:$16 sps:$4 sm:$0xff]  }
 0xfd3   :  { %4550 = vmatprep.subr.bf16.mxu1 %v8228_v4  ;;  %v8252_v4 = vld [vmem:[#allocation35 + $0x84] ss:$16 sps:$4 sm:$0xff]  }
 0xfd5   :  { %7605 = vmatpush3.bf16.msra.mxu0 %v8258_v20  ;;  %v8267_v20 = vld [vmem:[#allocation35 + $0x24] ss:$16 sps:$4 sm:$0xff]  }
 0xfd6   :  { %4551 = vmatpush1.bf16.msra.mxu1 %v8226_v5  ;;  %7606 = vmatprep.subr.bf16.mxu0 %v8259_v21  ;;  %v8250_v5 = vld [vmem:[#allocation35 + $0x80] ss:$16 sps:$4 sm:$0xff]  }
 0xfd7   :  { %4552 = vmatprep.subr.bf16.mxu1 %v8232_v7  ;;  %v8257_v7 = vld [vmem:[#allocation35 + $0x64] ss:$16 sps:$4 sm:$0xff]  }
 0xfd9   :  { %7607 = vmatpush3.bf16.msra.mxu0 %v8263_v22 }
 0xfda   :  { %4553 = vmatpush1.bf16.msra.mxu1 %v8230_v8  ;;  %7608 = vmatprep.subr.bf16.mxu0 %v8264_v25  ;;  %v8255_v8 = vld [vmem:[#allocation35 + $0x60] ss:$16 sps:$4 sm:$0xff]  }
 0xfdb   :  { %4820 = vmatprep.subr.bf16.mxu1 %v8237_v9 }
 0xfdd   :  { %7609 = vmatpush3.bf16.msra.mxu0 %v8268_v26 }
 0xfde   :  { %4581 = vmatprep.subr.bf16.mxu0 %v8271_v40 }
0x1040   :  { %v3880_v31 = vpop.xlane.xlu0 %3879 }
0x1044   :  { %v3868_v53 = vpop.xlane.xlu0 %3867  ;;  %v3883_v35 = vpop.xlane.xlu1 %3882 }
0x1048   :  { %v3886_v38 = vpop.xlane.xlu0 %3885  ;;  %v3871_v45 = vpop.xlane.xlu1 %3870 }
0x104c   :  { %v3874_v42 = vpop.xlane.xlu0 %3873  ;;  %v3889_v43 = vpop.xlane.xlu1 %3888 }
0x1050   :  { %v4316_v44 = vpop.xlane.xlu0 %4315  ;;  %v3877_v46 = vpop.xlane.xlu1 %3876 }
0x1051   :  { %v4319_v62 = vmul.f32 0.0078125, %v4316_v44 }
0x1053   :  { %v4321_v24 = vadd.f32 1e-05, %v4319_v62 }
0x1054   :  { %v4318_v6 = vpop.xlane.xlu1 %4317 }
0x1055   :  { %8584 = vrsqrt.f32 %v4321_v24  ;;  %v4320_v48 = vmul.f32 0.0078125, %v4318_v6 }
0x1057   :  { %v4322_v49 = vadd.f32 1e-05, %v4320_v48  ;;  %v8269_v48 = vld [vmem:[#allocation34 + $0xe8] ss:$16 sps:$4 sm:$0xff]  }
0x1059   :  { %8586 = vrsqrt.f32 %v4322_v49 }
0x105a   :  { %8588 = vrcp.f32 %v3880_v31 }
0x105b   :  { %8590 = vrcp.f32 %v3868_v53 }
0x105c   :  { %8592 = vrcp.f32 %v3883_v35  ;;  %v8265_v35 = vld [vmem:[#allocation35 + $0x20] ss:$16 sps:$4 sm:$0xff]  }
0x105d   :  { %8594 = vrcp.f32 %v3889_v43 }
0x105e   :  { %8596 = vrcp.f32 %v3871_v45 }
0x105f   :  { %8598 = vrcp.f32 %v3886_v38 }
0x1060   :  { %8600 = vrcp.f32 %v3877_v46 }
0x1061   :  { %8602 = vrcp.f32 %v3874_v42  ;;  %v8274_v42 = vld [vmem:[#allocation35 + $0x4] ss:$16 sps:$4 sm:$0xff]  }
0x1062   :  { %v8585_v10 = vpop.eup %8584 }
0x1063   :  { %v4325_v54 = vmul.f32 %v8585_v10, %v9910_v14  ;;  %v8240_v14 = vld [vmem:[#allocation35 + $0xc0] ss:$16 sps:$4 sm:$0xff]  }
0x1064   :  { %v8272_v10 = vld [vmem:[#allocation35] ss:$16 sps:$4 sm:$0xff]  }
0x1065   :  { %v4331_v60 = vmul.f32 %v4330_v55, %v4325_v54  ;;  %v8277_v54 = vld [vmem:[#allocation34 + $0xcc] ss:$16 sps:$4 sm:$0xff]  }
0x1066   :  { %v8587_v58 = vpop.eup %8586 }
0x1067   :  { %v4326_v59 = vmul.f32 %v8587_v58, %v9917_v47  ;;  %v4337_v0 = vadd.f32 %v4336_v23, %v4331_v60  ;;  %v8245_v47 = vld [vmem:[#allocation35 + $0xa0] ss:$16 sps:$4 sm:$0xff]   ;;  %v8589_v51 = vpop.eup %8588 }
0x1068   :  { %v8591_v21 = vpop.eup %8590 }
0x1069   :  { %v4332_v63 = vmul.f32 %v4330_v55, %v4326_v59  ;;  %v8593_v22 = vpop.eup %8592  ;;  %v8275_v59 = vld [vmem:[#allocation34 + $0xc8] ss:$16 sps:$4 sm:$0xff]  }
0x106a   :  { %v8595_v40 = vpop.eup %8594 }
0x106b   :  { %v4338_v1 = vadd.f32 %v4336_v23, %v4332_v63  ;;  %v8597_v38 = vpop.eup %8596  ;;  %v8280_v23 = vld [vmem:[#allocation34 + $0xac] ss:$16 sps:$4 sm:$0xff]  }
0x106c   :  { %v8599_v44 = vpop.eup %8598 }
0x106d   :  { %v9928_v2 = vpack.c.bf16 %v4338_v1, %v4337_v0  ;;  %v8601_v58 = vpop.eup %8600  ;;  %v8278_v1 = vld [vmem:[#allocation34 + $0xa8] ss:$16 sps:$4 sm:$0xff]  }
0x106e   :  { %v8603_v63 = vpop.eup %8602 }
0x106f   :  { %4571 = vmatmul.mubr.bf16.vlgmr.msra.gmra.mxu1 %v9928_v2 }
0x1070   :  { %4821 = vmatpush1.bf16.msra.mxu1 %v8235_v36  ;;  %4852 = vmatprep.mubr.bf16.mxu1 %v9343_v37 }
0x1071   :  { %4822 = vmatprep.subr.bf16.mxu1 %v8242_v3  ;;  %v8283_v3 = vld [vmem:[#allocation34 + $0x8c] ss:$16 sps:$4 sm:$0xff]  }
0x1074   :  { %4823 = vmatpush1.bf16.msra.mxu1 %v8240_v14  ;;  %v8281_v14 = vld [vmem:[#allocation34 + $0x88] ss:$16 sps:$4 sm:$0xff]  }
0x1075   :  { %4824 = vmatprep.subr.bf16.mxu1 %v8247_v41  ;;  %v8286_v41 = vld [vmem:[#allocation34 + $0x6c] ss:$16 sps:$4 sm:$0xff]  }
0x1078   :  { %4825 = vmatpush1.bf16.msra.mxu1 %v8245_v47  ;;  %v8284_v47 = vld [vmem:[#allocation34 + $0x68] ss:$16 sps:$4 sm:$0xff]  }
0x1079   :  { %4826 = vmatprep.subr.bf16.mxu1 %v8252_v4  ;;  %v8289_v4 = vld [vmem:[#allocation34 + $0x4c] ss:$16 sps:$4 sm:$0xff]  }
0x107c   :  { %4827 = vmatpush1.bf16.msra.mxu1 %v8250_v5  ;;  %v8287_v5 = vld [vmem:[#allocation34 + $0x48] ss:$16 sps:$4 sm:$0xff]  }
0x107d   :  { %v7832_v9 = vpop.f32.mrf.mxu1  ;;  %4828 = vmatprep.subr.bf16.mxu1 %v8257_v7  ;;  %v8292_v7 = vld [vmem:[#allocation34 + $0x2c] ss:$16 sps:$4 sm:$0xff]  }
0x107e   :  { %v4018_v6 = vmul.f32 %v8599_v44, %v7832_v9  ;;  %v8295_v9 = vld [vmem:[#allocation34 + $0xc] ss:$16 sps:$4 sm:$0xff]   ;;  %v8323_v44 = vld [vmem:[#allocation37 + $0x30] sm:$0xff]  }
0x107f   :  { %v3997_v11 = vpop.f32.mrf.mxu1 }
0x1080   :  { %v7826_v12 = vpop.f32.mrf.mxu0  ;;  %4829 = vmatpush1.bf16.msra.mxu1 %v8255_v8  ;;  %v4016_v31 = vmul.f32 %v8589_v51, %v3997_v11  ;;  %v8290_v8 = vld [vmem:[#allocation34 + $0x28] ss:$16 sps:$4 sm:$0xff]   ;;  %v8298_v11 = vld [vmem:[#allocation35 + $0xec] ss:$16 sps:$4 sm:$0xff]  }
0x1081   :  { %v7833_v29 = vpop.f32.mrf.mxu1  ;;  %4830 = vmatprep.subr.bf16.mxu1 %v8262_v19  ;;  %v4014_v0 = vmul.f32 %v8603_v63, %v7826_v12  ;;  %v8293_v19 = vld [vmem:[#allocation34 + $0x8] ss:$16 sps:$4 sm:$0xff]   ;;  %v8338_v63 = vld [vmem:[#allocation37 + $0xf0] sm:$0xff]  }
0x1082   :  { %v3942_v17 = vpop.f32.mrf.mxu0  ;;  %v4019_v45 = vmul.f32 %v8595_v40, %v7833_v29  ;;  %v8296_v12 = vld [vmem:[#allocation35 + $0xe8] ss:$16 sps:$4 sm:$0xff]   ;;  %v8304_v29 = vld [vmem:[#allocation35 + $0xac] ss:$16 sps:$4 sm:$0xff]  }
0x1083   :  { %v4000_v25 = vpop.f32.mrf.mxu1  ;;  %v4012_v62 = vmul.f32 %v8591_v21, %v3942_v17  ;;  %v8299_v51 = vld [vmem:[#allocation35 + $0xc8] ss:$16 sps:$4 sm:$0xff]  }
0x1084   :  { %v7827_v26 = vpop.f32.mrf.mxu0  ;;  %v4017_v53 = vmul.f32 %v8593_v22, %v4000_v25  ;;  %4831 = vmatpush1.bf16.msra.mxu1 %v8260_v16  ;;  %v4023_v55 = vpack.c.bf16 %v4019_v45, %v4018_v6  ;;  %v8301_v16 = vld [vmem:[#allocation35 + $0xcc] ss:$16 sps:$4 sm:$0xff]   ;;  %v8302_v17 = vld [vmem:[#allocation35 + $0xa8] ss:$16 sps:$4 sm:$0xff]   ;;  %v8327_v6 = vld [vmem:[#allocation37 + $0x20] sm:$0xff]  }
0x1085   :  { %4832 = vmatprep.subr.bf16.mxu1 %v8267_v20  ;;  %v4015_v60 = vmul.f32 %v8601_v58, %v7827_v26  ;;  %v8307_v20 = vld [vmem:[#allocation35 + $0x8c] ss:$16 sps:$4 sm:$0xff]   ;;  %v8305_v21 = vld [vmem:[#allocation35 + $0x88] ss:$16 sps:$4 sm:$0xff]   ;;  %v8334_v58 = vld [vmem:[#allocation37 + $0x40] sm:$0xff]  }
0x1086   :  { %v3945_v43 = vpop.f32.mrf.mxu0  ;;  %v4022_v46 = vpack.c.bf16 %v4017_v53, %v4016_v31  ;;  %v8310_v22 = vld [vmem:[#allocation35 + $0x6c] ss:$16 sps:$4 sm:$0xff]   ;;  %v8308_v25 = vld [vmem:[#allocation35 + $0x68] ss:$16 sps:$4 sm:$0xff]  }
0x1087   :  { %v4013_v24 = vmul.f32 %v8597_v38, %v3945_v43  ;;  %v4021_v36 = vpack.c.bf16 %v4015_v60, %v4014_v0  ;;  %v8313_v26 = vld [vmem:[#allocation35 + $0x4c] ss:$16 sps:$4 sm:$0xff]   ;;  %v8311_v40 = vld [vmem:[#allocation35 + $0x48] ss:$16 sps:$4 sm:$0xff]   ;;  %v8339_v0 = vld [vmem:[#allocation37 + $0xb0] sm:$0xff]  }
0x1088   :  { %4833 = vmatpush1.bf16.msra.mxu1 %v8265_v35  ;;  %4156 = vmatprep.mubr.bf16.mxu0 %v4022_v46  ;;  %v8316_v31 = vld [vmem:[#allocation35 + $0x2c] ss:$16 sps:$4 sm:$0xff]   ;;  %v8314_v53 = vld [vmem:[#allocation35 + $0x28] ss:$16 sps:$4 sm:$0xff]  }
0x1089   :  { %v4020_v49 = vpack.c.bf16 %v4013_v24, %v4012_v62  ;;  %4834 = vmatprep.subr.bf16.mxu1 %v8274_v42  ;;  %v8319_v35 = vld [vmem:[#allocation35 + $0xc] ss:$16 sps:$4 sm:$0xff]   ;;  %v8317_v38 = vld [vmem:[#allocation35 + $0x8] ss:$16 sps:$4 sm:$0xff]   ;;  %v8322_v42 = vld [vmem:[#allocation37 + $0x70] sm:$0xff]  }
0x108a   :  { %v8320_v45 = vld [vmem:[#allocation37 + $0x78] sm:$0xff]   ;;  %v8324_v62 = vld [vmem:[#allocation37 + $0x68] sm:$0xff]   ;;  %v8326_v24 = vld [vmem:[#allocation37 + $0x60] sm:$0xff]  }
0x108b   :  { %4157 = vmatmul.mubr.bf16.vlgmr.msra.gmra.mxu0 %v4020_v49  ;;  %v8321_v43 = vld [vmem:[#allocation37 + $0x38] sm:$0xff]   ;;  %v8325_v46 = vld [vmem:[#allocation37 + $0x28] sm:$0xff]  }
0x108c   :  { %4582 = vmatpush1.bf16.msra.mxu0 %v8269_v48  ;;  %4164 = vmatprep.mubr.bf16.mxu0 %v4023_v55  ;;  %v8328_v48 = vld [vmem:[#allocation37 + $0x58] sm:$0xff]   ;;  %v8333_v55 = vld [vmem:[#allocation37 + $0x8] sm:$0xff]  }
0x108d   :  { %4835 = vmatpush1.bf16.msra.mxu1 %v8272_v10  ;;  %4583 = vmatprep.subr.bf16.mxu0 %v8277_v54  ;;  %v8329_v49 = vld [vmem:[#allocation37 + $0x18] sm:$0xff]   ;;  %v8331_v10 = vld [vmem:[#allocation37 + $0x10] sm:$0xff]   ;;  %v8332_v54 = vld [vmem:[#allocation37 + $0x48] sm:$0xff]  }
0x108e   :  { %7622 = vmatprep.subr.bf16.mxu1 %v8320_v45  ;;  %v8336_v60 = vld [vmem:[#allocation37 + $0xf8] sm:$0xff]  }
0x1090   :  { %4853 = vmatmul.mubr.bf16.vlgmr.msra.gmra.mxu1 %v9928_v2  ;;  %4584 = vmatpush1.bf16.msra.mxu0 %v8275_v59  ;;  %v8335_v59 = vld [vmem:[#allocation37] sm:$0xff]  }
0x1091   :  { %4585 = vmatprep.subr.bf16.mxu0 %v8280_v23  ;;  %7623 = vmatpush3.bf16.msra.mxu1 %v8321_v43  ;;  %v8337_v23 = vld [vmem:[#allocation37 + $0xb8] sm:$0xff]  }
0x1092   :  { %7624 = vmatprep.subr.bf16.mxu1 %v8322_v42 }
0x1093   :  { %4165 = vmatmul.mubr.bf16.gmra.mxu0 %v4021_v36  ;;  %v8341_v36 = vld [vmem:[#allocation37 + $0xa8] sm:$0xff]  }
0x1094   :  { %4586 = vmatpush1.bf16.msra.mxu0 %v8278_v1  ;;  %4613 = vmatprep.mubr.bf16.mxu0 %v9343_v37  ;;  %v8340_v1 = vld [vmem:[#allocation37 + $0xe8] sm:$0xff]  }
0x1095   :  { %4587 = vmatprep.subr.bf16.mxu0 %v8283_v3  ;;  %7625 = vmatpush3.bf16.msra.mxu1 %v8323_v44  ;;  %v8342_v3 = vld [vmem:[#allocation37 + $0xe0] sm:$0xff]  }
0x1096   :  { %7626 = vmatprep.subr.bf16.mxu1 %v8324_v62 }
0x1098   :  { %4588 = vmatpush1.bf16.msra.mxu0 %v8281_v14  ;;  %v8343_v14 = vld [vmem:[#allocation37 + $0xa0] sm:$0xff]  }
0x1099   :  { %4589 = vmatprep.subr.bf16.mxu0 %v8286_v41  ;;  %7627 = vmatpush3.bf16.msra.mxu1 %v8325_v46  ;;  %v8344_v41 = vld [vmem:[#allocation37 + $0xd8] sm:$0xff]  }
0x109a   :  { %7628 = vmatprep.subr.bf16.mxu1 %v8326_v24 }
0x109c   :  { %4590 = vmatpush1.bf16.msra.mxu0 %v8284_v47  ;;  %v8345_v47 = vld [vmem:[#allocation37 + $0x98] sm:$0xff]  }
0x109d   :  { %4591 = vmatprep.subr.bf16.mxu0 %v8289_v4  ;;  %7629 = vmatpush3.bf16.msra.mxu1 %v8327_v6 }
0x109e   :  { %7630 = vmatprep.subr.bf16.mxu1 %v8328_v48 }
0x10a0   :  { %4592 = vmatpush1.bf16.msra.mxu0 %v8287_v5  ;;  %v8346_v5 = vld [vmem:[#allocation37 + $0xd0] sm:$0xff]  }
0x10a1   :  { %4593 = vmatprep.subr.bf16.mxu0 %v8292_v7  ;;  %7631 = vmatpush3.bf16.msra.mxu1 %v8329_v49  ;;  %v8347_v7 = vld [vmem:[#allocation37 + $0x90] sm:$0xff]  }
0x10a4   :  { %4594 = vmatpush1.bf16.msra.mxu0 %v8290_v8 }
0x10a5   :  { %4595 = vmatprep.subr.bf16.mxu0 %v8295_v9  ;;  %v8348_v9 = vld [vmem:[#allocation37 + $0xc8] sm:$0xff]  }
0x10a8   :  { %4596 = vmatpush1.bf16.msra.mxu0 %v8293_v19  ;;  %v8349_v19 = vld [vmem:[#allocation37 + $0x88] sm:$0xff]  }
0x10a9   :  { %4863 = vmatprep.subr.bf16.mxu0 %v8298_v11  ;;  %v8350_v11 = vld [vmem:[#allocation37 + $0xc0] sm:$0xff]  }
0x10ab   :  { %4614 = vmatmul.mubr.bf16.vlgmr.msra.gmra.mxu0 %v9928_v2 }
0x10ac   :  { %4864 = vmatpush1.bf16.msra.mxu0 %v8296_v12  ;;  %4895 = vmatprep.mubr.bf16.mxu0 %v9343_v37  ;;  %v9941_v12 = vld [vmem:[#allocation8] sm:$0xff] }
0x10ad   :  { %4865 = vmatprep.subr.bf16.mxu0 %v8301_v16  ;;  %v4627_v16 = vrot.slane %v9941_v12, %v9663_v57 }
0x10b0   :  { %4866 = vmatpush1.bf16.msra.mxu0 %v8299_v51  ;;  %v8351_v51 = vld [vmem:[#allocation37 + $0x80] sm:$0xff]  }
0x10b1   :  { %4867 = vmatprep.subr.bf16.mxu0 %v8304_v29 }
0x10b4   :  { %4868 = vmatpush1.bf16.msra.mxu0 %v8302_v17 }
0x10b5   :  { %4869 = vmatprep.subr.bf16.mxu0 %v8307_v20  ;;  %v4631_v20 = vrot.slane %v9941_v12, %v9800_v61 }
0x10b8   :  { %4870 = vmatpush1.bf16.msra.mxu0 %v8305_v21  ;;  %v4027_v21 = vrot.slane %v9867_v56, %v9709_v27 }
0x10b9   :  { %4871 = vmatprep.subr.bf16.mxu0 %v8310_v22 }
0x10bc   :  { %4872 = vmatpush1.bf16.msra.mxu0 %v8308_v25  ;;  %v4647_v25 = vrot.slane %v4627_v16, %v9663_v57 }
0x10bd   :  { %4873 = vmatprep.subr.bf16.mxu0 %v8313_v26 }
0x10c0   :  { %4874 = vmatpush1.bf16.msra.mxu0 %v8311_v40 }
0x10c1   :  { %4875 = vmatprep.subr.bf16.mxu0 %v8316_v31 }
0x10c4   :  { %4876 = vmatpush1.bf16.msra.mxu0 %v8314_v53  ;;  %v4651_v53 = vrot.slane %v4631_v20, %v9663_v57 }
0x10c5   :  { %4877 = vmatprep.subr.bf16.mxu0 %v8319_v35 }
0x10c8   :  { %4878 = vmatpush1.bf16.msra.mxu0 %v8317_v38 }
0x10c9   :  { %7644 = vmatprep.subr.bf16.mxu0 %v8336_v60 }
0x10cb   :  { %4896 = vmatmul.mubr.bf16.vlgmr.msra.gmra.mxu0 %v9928_v2  ;;  %v8330_v2 = vld [vmem:[#allocation37 + $0x50] sm:$0xff]  }
0x10cc   :  { %7632 = vmatprep.subr.bf16.mxu1 %v8330_v2  ;;  %7645 = vmatpush3.bf16.msra.mxu0 %v8337_v23 }
0x10cd   :  { %7633 = vmatpush3.bf16.msra.mxu1 %v8331_v10  ;;  %7646 = vmatprep.subr.bf16.mxu0 %v8338_v63 }
0x10ce   :  { %7634 = vmatprep.subr.bf16.mxu1 %v8332_v54 }
0x10d0   :  { %7647 = vmatpush3.bf16.msra.mxu0 %v8339_v0 }
0x10d1   :  { %7635 = vmatpush3.bf16.msra.mxu1 %v8333_v55  ;;  %7648 = vmatprep.subr.bf16.mxu0 %v8340_v1 }
0x10d2   :  { %7636 = vmatprep.subr.bf16.mxu1 %v8334_v58 }
0x10d4   :  { %7649 = vmatpush3.bf16.msra.mxu0 %v8341_v36 }
0x10d5   :  { %7637 = vmatpush3.bf16.msra.mxu1 %v8335_v59  ;;  %7650 = vmatprep.subr.bf16.mxu0 %v8342_v3 }
0x10d8   :  { %7651 = vmatpush3.bf16.msra.mxu0 %v8343_v14 }
0x10d9   :  { %7652 = vmatprep.subr.bf16.mxu0 %v8344_v41 }
0x10dc   :  { %7653 = vmatpush3.bf16.msra.mxu0 %v8345_v47 }
0x10dd   :  { %7654 = vmatprep.subr.bf16.mxu0 %v8346_v5 }
0x10e0   :  { %7655 = vmatpush3.bf16.msra.mxu0 %v8347_v7 }
0x10e1   :  { %7656 = vmatprep.subr.bf16.mxu0 %v8348_v9 }
0x10e4   :  { %7657 = vmatpush3.bf16.msra.mxu0 %v8349_v19 }
0x10e5   :  { %7658 = vmatprep.subr.bf16.mxu0 %v8350_v11 }
0x10e8   :  { %7659 = vmatpush3.bf16.msra.mxu0 %v8351_v51 }
0x112f   :  { %v9937_v4 = vpop.f32.mrf.mxu1 }
0x1131   :  { %v9939_v8 = vpop.f32.mrf.mxu1 }
0x1133   :  { %v9945_v29 = vpop.f32.mrf.mxu1 }
0x1135   :  { %v9952_v26 = vpop.f32.mrf.mxu1 }
0x114b   :  { %v7610_v17 = vpop.f32.mrf.mxu0 }
0x114d   :  { %v7611_v22 = vpop.f32.mrf.mxu0 }
0x114e   :  { %v7612_v40 = vadd.f32 %v7611_v22, %v7610_v17 }
0x114f   :  { %v7613_v31 = vpop.f32.mrf.mxu0 }
0x1150   :  { %v4159_v35 = vadd.f32 %v7612_v40, %v4027_v21  ;;  %v4854_v38 = vpop.f32.mrf.mxu1 }
0x1151   :  { %v9955_v45 = vadd.f32 %v4854_v38, %v4647_v25  ;;  %v7614_v43 = vpop.f32.mrf.mxu0 }
0x1152   :  { %v4856_v42 = vpop.f32.mrf.mxu1  ;;  %v7615_v44 = vadd.f32 %v7614_v43, %v7613_v31  ;;  %v9958_v62 = vadd.f32 %v4159_v35, %v9803_v15 }
0x1153   :  { %v9961_v56 = vmul.f32 0.70710677, %v9955_v45  ;;  %v9963_v46 = vadd.f32 %v4856_v42, %v4651_v53  ;;  %v7616_v24 = vpop.f32.mrf.mxu0 }
0x1154   :  { %10719 = vst [vmem:[#allocation63_spill] sm:$0xff] %v9958_v62  ;;  %v4162_v6 = vadd.f32 %v7615_v44, %v4027_v21  ;;  %v4858_v48 = vpop.f32.mrf.mxu1  ;;  %5542 = vadd.xlane.f32.xlu0 %v9958_v62 }
0x1155   :  { %v4938_v49 = vand.u32 2147483647, %v9961_v56  ;;  %v9968_v2 = vmul.f32 0.70710677, %v9963_v46  ;;  %v7617_v10 = vpop.f32.mrf.mxu0  ;;  %v9970_v54 = vadd.f32 %v4858_v48, %v4647_v25  ;;  %vm4922_vm3 = vcmp.ge.f32.partialorder %v9961_v56, 0.0 }
0x1156   :  { %v4860_v15 = vpop.f32.mrf.mxu1  ;;  %v9973_v55 = vadd.f32 %v4162_v6, %v9805_v18  ;;  %v7618_v18 = vadd.f32 %v7617_v10, %v7616_v24 }
0x1157   :  { %v4946_v58 = vmul.f32 0.3275911, %v4938_v49  ;;  %v4939_v59 = vand.u32 2147483647, %v9968_v2  ;;  %v9977_v60 = vmul.f32 0.70710677, %v9970_v54  ;;  %v9979_v23 = vadd.f32 %v4860_v15, %v4651_v53  ;;  %v7619_v63 = vpop.f32.mrf.mxu0 }
0x1158   :  { %10720 = vst [vmem:[#allocation64_spill] sm:$0xff] %v9973_v55  ;;  %5544 = vadd.xlane.f32.xlu1 %v9973_v55  ;;  %v4167_v9 = vadd.f32 %v7618_v18, %v4027_v21  ;;  %v5050_v51 = vsub.f32 0.0, %v4938_v49  ;;  %vm4923_vm4 = vcmp.ge.f32.partialorder %v9968_v2, 0.0 }
0x1159   :  { %v4954_v0 = vadd.f32 1.0, %v4946_v58  ;;  %v4947_v1 = vmul.f32 0.3275911, %v4939_v59  ;;  %v4942_v36 = vand.u32 2147483647, %v9977_v60  ;;  %v7620_v47 = vpop.f32.mrf.mxu0  ;;  %v5051_v25 = vsub.f32 0.0, %v4939_v59 }
0x115a   :  { %v9984_v3 = vmul.f32 0.70710677, %v9979_v23  ;;  %v7621_v11 = vadd.f32 %v7620_v47, %v7619_v63  ;;  %v9988_v16 = vadd.f32 %v4167_v9, %v9811_v30  ;;  %v5058_v40 = vmul.f32 %v5050_v51, %v4938_v49 }
0x115b   :  { %8604 = vrcp.f32 %v4954_v0  ;;  %v4955_v14 = vadd.f32 1.0, %v4947_v1  ;;  %v4950_v41 = vmul.f32 0.3275911, %v4942_v36  ;;  %v5054_v31 = vsub.f32 0.0, %v4942_v36 }
0x115c   :  { %v4943_v5 = vand.u32 2147483647, %v9984_v3  ;;  %10721 = vst [vmem:[#allocation65_spill] sm:$0xff] %v9988_v16  ;;  %v4170_v20 = vadd.f32 %v7621_v11, %v4027_v21  ;;  %5546 = vadd.xlane.f32.xlu0 %v9988_v16  ;;  %v5059_v35 = vmul.f32 %v5051_v25, %v4939_v59  ;;  %v5066_v43 = vmul.f32 1.442695, %v5058_v40 }
0x115d   :  { %8606 = vrcp.f32 %v4955_v14  ;;  %v4958_v7 = vadd.f32 1.0, %v4950_v41  ;;  %v5062_v42 = vmul.f32 %v5054_v31, %v4942_v36  ;;  %vm4926_vm5 = vcmp.ge.f32.partialorder %v9977_v60, 0.0 }
0x115e   :  { %v4951_v19 = vmul.f32 0.3275911, %v4943_v5  ;;  %v9992_v22 = vadd.f32 %v4170_v20, %v9813_v34  ;;  %v5055_v30 = vsub.f32 0.0, %v4943_v5  ;;  %v5068_v6 = vmul.f32 1.442695, %v5059_v35 }
0x115f   :  { %8608 = vrcp.f32 %v4958_v7  ;;  %v5074_v49 = vmul.f32 1.442695, %v5062_v42  ;;  %vm4927_vm6 = vcmp.ge.f32.partialorder %v9984_v3, 0.0  ;;  %v4910_v3 = vmul.f32 0.5, %v9970_v54 }
0x1160   :  { %v4959_v17 = vadd.f32 1.0, %v4951_v19  ;;  %10722 = vst [vmem:[#allocation66_spill] sm:$0xff] %v9992_v22  ;;  %5548 = vadd.xlane.f32.xlu1 %v9992_v22  ;;  %v5063_v34 = vmul.f32 %v5055_v30, %v4943_v5 }
0x1162   :  { %8610 = vrcp.f32 %v4959_v17  ;;  %v5076_v41 = vmul.f32 1.442695, %v5063_v34 }
0x1163   :  { %8612 = vpow2.f32 %v5066_v43 }
0x1164   :  { %8614 = vpow2.f32 %v5068_v6 }
0x1165   :  { %8616 = vpow2.f32 %v5074_v49 }
0x1166   :  { %8618 = vpow2.f32 %v5076_v41 }
0x1168   :  { %v8605_v53 = vpop.eup %8604 }
0x1169   :  { %v4978_v38 = vmul.f32 1.0614054, %v8605_v53 }
0x116a   :  { %v8607_v44 = vpop.eup %8606 }
0x116b   :  { %v4986_v24 = vadd.f32 -1.4531521, %v4978_v38  ;;  %v4979_v21 = vmul.f32 1.0614054, %v8607_v44  ;;  %v9996_v49 = vpop.f32.mrf.mxu0 }
0x116c   :  { %v8609_v48 = vpop.eup %8608 }
0x116d   :  { %v4994_v10 = vmul.f32 %v8605_v53, %v4986_v24  ;;  %v4987_v15 = vadd.f32 -1.4531521, %v4979_v21  ;;  %v4982_v58 = vmul.f32 1.0614054, %v8609_v48 }
0x116f   :  { %v5002_v63 = vadd.f32 1.4214138, %v4994_v10  ;;  %v8611_v0 = vpop.eup %8610  ;;  %v4995_v1 = vmul.f32 %v8607_v44, %v4987_v15  ;;  %v4990_v59 = vadd.f32 -1.4531521, %v4982_v58 }
0x1170   :  { %v4983_v14 = vmul.f32 1.0614054, %v8611_v0  ;;  %v8613_v30 = vpop.eup %8612 }
0x1171   :  { %v5010_v18 = vmul.f32 %v8605_v53, %v5002_v63  ;;  %v5003_v36 = vadd.f32 1.4214138, %v4995_v1  ;;  %v4998_v47 = vmul.f32 %v8609_v48, %v4990_v59  ;;  %v8615_v15 = vpop.eup %8614 }
0x1172   :  { %v4991_v9 = vadd.f32 -1.4531521, %v4983_v14 }
0x1173   :  { %v5018_v7 = vadd.f32 -0.28449672, %v5010_v18  ;;  %v5011_v19 = vmul.f32 %v8607_v44, %v5003_v36  ;;  %v5006_v11 = vadd.f32 1.4214138, %v4998_v47  ;;  %v10680_v36 = vmov -1.0  }
0x1174   :  { %v4999_v5 = vmul.f32 %v8611_v0, %v4991_v9  ;;  %v4931_v47 = vsel %vm4923_vm4, 1.0, %v10680_v36 }
0x1175   :  { %v5026_v51 = vmul.f32 %v8605_v53, %v5018_v7  ;;  %v5019_v17 = vadd.f32 -0.28449672, %v5011_v19  ;;  %v5014_v20 = vmul.f32 %v8609_v48, %v5006_v11  ;;  %v10002_v7 = vpop.f32.mrf.mxu0 }
0x1176   :  { %v5007_v40 = vadd.f32 1.4214138, %v4999_v5  ;;  %v10008_v5 = vld [vmem:[#allocation8 + $0x8] sm:$0xff] }
0x1177   :  { %v5034_v25 = vadd.f32 0.2548296, %v5026_v51  ;;  %v5027_v31 = vmul.f32 %v8607_v44, %v5019_v17  ;;  %v5022_v35 = vadd.f32 -0.28449672, %v5014_v20  ;;  %v4934_v51 = vsel %vm4926_vm5, 1.0, %v10680_v36 }
0x1178   :  { %v5015_v43 = vmul.f32 %v8611_v0, %v5007_v40  ;;  %v4345_v17 = vrot.slane %v9941_v12, %v9655_v52  ;;  %v4635_v20 = vrot.slane %v10008_v5, %v9663_v57 }
0x1179   :  { %v5042_v38 = vmul.f32 %v8605_v53, %v5034_v25  ;;  %v5035_v42 = vadd.f32 0.2548296, %v5027_v31  ;;  %v5030_v24 = vmul.f32 %v8609_v48, %v5022_v35  ;;  %v8617_v53 = vpop.eup %8616  ;;  %v10014_v31 = vpop.f32.mrf.mxu0  ;;  %v4639_v35 = vrot.slane %v10008_v5, %v9800_v61 }
0x117a   :  { %v5023_v6 = vadd.f32 -0.28449672, %v5015_v43  ;;  %v8619_v9 = vpop.eup %8618  ;;  %v4911_v61 = vmul.f32 0.5, %v9979_v23 }
0x117b   :  { %v5082_v21 = vmul.f32 %v8613_v30, %v5042_v38  ;;  %v5043_v10 = vmul.f32 %v8607_v44, %v5035_v42  ;;  %v5038_v34 = vadd.f32 0.2548296, %v5030_v24  ;;  %v4930_v44 = vsel %vm4922_vm3, 1.0, %v10680_v36  ;;  %v10026_v54 = vpop.f32.mrf.mxu0 }
0x117c   :  { %v5031_v58 = vmul.f32 %v8611_v0, %v5023_v6  ;;  %v4935_v30 = vsel %vm4927_vm6, 1.0, %v10680_v36  ;;  %v4906_v6 = vmul.f32 0.5, %v9955_v45 }
0x117d   :  { %v5090_v63 = vsub.f32 1.0, %v5082_v21  ;;  %v5083_v1 = vmul.f32 %v8615_v15, %v5043_v10  ;;  %v5046_v59 = vmul.f32 %v8609_v48, %v5038_v34  ;;  %v4349_v48 = vrot.slane %v9941_v12, %v9715_v32 }
0x117e   :  { %v5039_v18 = vadd.f32 0.2548296, %v5031_v58  ;;  %v4907_v12 = vmul.f32 0.5, %v9963_v46  ;;  %v4365_v21 = vrot.slane %v4345_v17, %v9655_v52  ;;  %v4655_v34 = vrot.slane %v4635_v20, %v9663_v57 }
0x117f   :  { %v5091_v14 = vsub.f32 1.0, %v5083_v1  ;;  %v5086_v41 = vmul.f32 %v8617_v53, %v5046_v59  ;;  %v5098_v19 = vmul.f32 %v5090_v63, %v4930_v44  ;;  %v4369_v42 = vrot.slane %v4349_v48, %v9655_v52 }
0x1180   :  { %v5047_v56 = vmul.f32 %v8611_v0, %v5039_v18  ;;  %v4577_v63 = vadd.f32 %v9945_v29, %v4365_v21  ;;  %v4659_v59 = vrot.slane %v4639_v35, %v9663_v57 }
0x1181   :  { %v5099_v11 = vmul.f32 %v5091_v14, %v4931_v47  ;;  %v5094_v2 = vsub.f32 1.0, %v5086_v41  ;;  %v5106_v38 = vadd.f32 1.0, %v5098_v19  ;;  %v4575_v46 = vadd.f32 %v9939_v8, %v4369_v42 }
0x1182   :  { %v5087_v60 = vmul.f32 %v8619_v9, %v5047_v56  ;;  %v4579_v53 = vadd.f32 %v9952_v26, %v4369_v42  ;;  %v4573_v14 = vadd.f32 %v9937_v4, %v4365_v21 }
0x1183   :  { %v5102_v0 = vmul.f32 %v5094_v2, %v4934_v51  ;;  %v5107_v25 = vadd.f32 1.0, %v5099_v11  ;;  %v5114_v1 = vmul.f32 %v5106_v38, %v4906_v6 }
0x1184   :  { %v5095_v40 = vsub.f32 1.0, %v5087_v60 }
0x1185   :  { %v5110_v43 = vadd.f32 1.0, %v5102_v0  ;;  %v5115_v15 = vmul.f32 %v5107_v25, %v4907_v12  ;;  %v5122_v9 = vmul.f32 %v5114_v1, %v4573_v14 }
0x1186   :  { %v5103_v24 = vmul.f32 %v5095_v40, %v4935_v30 }
0x1187   :  { %v5118_v10 = vmul.f32 %v5110_v43, %v4910_v3  ;;  %v5123_v47 = vmul.f32 %v5115_v15, %v4575_v46 }
0x1188   :  { %v5111_v58 = vadd.f32 1.0, %v5103_v24 }
0x1189   :  { %v5126_v41 = vmul.f32 %v5118_v10, %v4577_v63 }
0x118a   :  { %v5119_v18 = vmul.f32 %v5111_v58, %v4911_v61 }
0x118b   :  { %v4897_v45 = vpop.f32.mrf.mxu0  ;;  %v5130_v4 = vpack.c.bf16 %v5126_v41, %v5122_v9 }
0x118c   :  { %v10033_v44 = vadd.f32 %v4897_v45, %v4655_v34  ;;  %v5127_v56 = vmul.f32 %v5119_v18, %v4579_v53 }
0x118d   :  { %v4899_v23 = vpop.f32.mrf.mxu0 }
0x118e   :  { %v10036_v29 = vmul.f32 0.70710677, %v10033_v44  ;;  %v10038_v19 = vadd.f32 %v4899_v23, %v4659_v59  ;;  %v5131_v11 = vpack.c.bf16 %v5127_v56, %v5123_v47 }
0x118f   :  { %v4901_v8 = vpop.f32.mrf.mxu0 }
0x1190   :  { %v4940_v26 = vand.u32 2147483647, %v10036_v29  ;;  %v10042_v2 = vmul.f32 0.70710677, %v10038_v19  ;;  %5362 = vmatprep.mubr.bf16.mxu1 %v5131_v11  ;;  %v10044_v48 = vadd.f32 %v4901_v8, %v4655_v34  ;;  %vm4924_vm7 = vcmp.ge.f32.partialorder %v10036_v29, 0.0 }
0x1191   :  { %v4903_v51 = vpop.f32.mrf.mxu0  ;;  %5363 = vmatmul.mubr.bf16.vlgmr.msra.gmra.mxu1 %v5130_v4 }
0x1192   :  { %v4948_v60 = vmul.f32 0.3275911, %v4940_v26  ;;  %v4941_v17 = vand.u32 2147483647, %v10042_v2  ;;  %v10048_v0 = vmul.f32 0.70710677, %v10044_v48  ;;  %v10050_v20 = vadd.f32 %v4903_v51, %v4659_v59  ;;  %5832 = vmatprep.mubr.bf16.mxu1 %v9343_v37 }
0x1193   :  { %v5052_v24 = vsub.f32 0.0, %v4940_v26  ;;  %vm4925_vm8 = vcmp.ge.f32.partialorder %v10042_v2, 0.0  ;;  %v4357_v2 = vrot.slane %v10008_v5, %v9715_v32  ;;  %v4909_v32 = vmul.f32 0.5, %v10038_v19 }
0x1194   :  { %v4956_v25 = vadd.f32 1.0, %v4948_v60  ;;  %v4949_v40 = vmul.f32 0.3275911, %v4941_v17  ;;  %v4944_v35 = vand.u32 2147483647, %v10048_v0  ;;  %v5053_v6 = vsub.f32 0.0, %v4941_v17 }
0x1195   :  { %v10055_v38 = vmul.f32 0.70710677, %v10050_v20  ;;  %v5060_v10 = vmul.f32 %v5052_v24, %v4940_v26  ;;  %vm4928_vm9 = vcmp.ge.f32.partialorder %v10048_v0, 0.0  ;;  %v4353_v0 = vrot.slane %v10008_v5, %v9655_v52 }
0x1196   :  { %8620 = vrcp.f32 %v4956_v25  ;;  %v4957_v3 = vadd.f32 1.0, %v4949_v40  ;;  %v4952_v43 = vmul.f32 0.3275911, %v4944_v35  ;;  %v5056_v34 = vsub.f32 0.0, %v4944_v35 }
0x1197   :  { %v4945_v30 = vand.u32 2147483647, %v10055_v38  ;;  %v5061_v61 = vmul.f32 %v5053_v6, %v4941_v17  ;;  %v5070_v63 = vmul.f32 1.442695, %v5060_v10  ;;  %vm4929_vm10 = vcmp.ge.f32.partialorder %v10055_v38, 0.0 }
0x1198   :  { %8622 = vrcp.f32 %v4957_v3  ;;  %v4960_v42 = vadd.f32 1.0, %v4952_v43  ;;  %v5064_v59 = vmul.f32 %v5056_v34, %v4944_v35  ;;  %v4373_v38 = vrot.slane %v4353_v0, %v9655_v52  ;;  %v8360_v0 = vld [vmem:[#allocation38 + $0xc4] ss:$16 sps:$4 sm:$0xff]  }
0x1199   :  { %v4953_v12 = vmul.f32 0.3275911, %v4945_v30  ;;  %v5057_v1 = vsub.f32 0.0, %v4945_v30  ;;  %v5072_v45 = vmul.f32 1.442695, %v5061_v61 }
0x119a   :  { %8624 = vrcp.f32 %v4960_v42  ;;  %v5078_v9 = vmul.f32 1.442695, %v5064_v59  ;;  %v4616_v19 = vadd.f32 %v9996_v49, %v4373_v38 }
0x119b   :  { %v4961_v21 = vadd.f32 1.0, %v4953_v12  ;;  %v5065_v23 = vmul.f32 %v5057_v1, %v4945_v30 }
0x119d   :  { %8626 = vrcp.f32 %v4961_v21  ;;  %v5080_v17 = vmul.f32 1.442695, %v5065_v23 }
0x119e   :  { %8628 = vpow2.f32 %v5070_v63 }
0x119f   :  { %8630 = vpow2.f32 %v5072_v45 }
0x11a0   :  { %8632 = vpow2.f32 %v5078_v9 }
0x11a1   :  { %8634 = vpow2.f32 %v5080_v17  ;;  %v4932_v17 = vsel %vm4924_vm7, 1.0, %v10680_v36 }
0x11a3   :  { %v8621_v15 = vpop.eup %8620 }
0x11a4   :  { %v4980_v58 = vmul.f32 1.0614054, %v8621_v15 }
0x11a5   :  { %v8623_v46 = vpop.eup %8622 }
0x11a6   :  { %v4988_v53 = vadd.f32 -1.4531521, %v4980_v58  ;;  %v4981_v18 = vmul.f32 1.0614054, %v8623_v46 }
0x11a7   :  { %v8625_v14 = vpop.eup %8624 }
0x11a8   :  { %v4996_v41 = vmul.f32 %v8621_v15, %v4988_v53  ;;  %v4989_v47 = vadd.f32 -1.4531521, %v4981_v18  ;;  %v4984_v56 = vmul.f32 1.0614054, %v8625_v14 }
0x11aa   :  { %v5004_v11 = vadd.f32 1.4214138, %v4996_v41  ;;  %v8627_v8 = vpop.eup %8626  ;;  %v4997_v26 = vmul.f32 %v8623_v46, %v4989_v47  ;;  %v4992_v4 = vadd.f32 -1.4531521, %v4984_v56 }
0x11ab   :  { %v4985_v60 = vmul.f32 1.0614054, %v8627_v8  ;;  %v8629_v1 = vpop.eup %8628 }
0x11ac   :  { %v5012_v51 = vmul.f32 %v8621_v15, %v5004_v11  ;;  %v5005_v25 = vadd.f32 1.4214138, %v4997_v26  ;;  %v5000_v40 = vmul.f32 %v8625_v14, %v4992_v4  ;;  %v8631_v47 = vpop.eup %8630 }
0x11ad   :  { %v4993_v3 = vadd.f32 -1.4531521, %v4985_v60  ;;  %v8633_v4 = vpop.eup %8632 }
0x11ae   :  { %v5020_v35 = vadd.f32 -0.28449672, %v5012_v51  ;;  %v5013_v43 = vmul.f32 %v8623_v46, %v5005_v25  ;;  %v5008_v42 = vadd.f32 1.4214138, %v5000_v40  ;;  %v8635_v40 = vpop.eup %8634 }
0x11af   :  { %v5001_v30 = vmul.f32 %v8627_v8, %v4993_v3 }
0x11b0   :  { %v5028_v12 = vmul.f32 %v8621_v15, %v5020_v35  ;;  %v5021_v24 = vadd.f32 -0.28449672, %v5013_v43  ;;  %v5016_v21 = vmul.f32 %v8625_v14, %v5008_v42 }
0x11b1   :  { %v5009_v10 = vadd.f32 1.4214138, %v5001_v30 }
0x11b2   :  { %v5036_v6 = vadd.f32 0.2548296, %v5028_v12  ;;  %v5029_v34 = vmul.f32 %v8623_v46, %v5021_v24  ;;  %v5024_v61 = vadd.f32 -0.28449672, %v5016_v21 }
0x11b3   :  { %v5017_v63 = vmul.f32 %v8627_v8, %v5009_v10  ;;  %v4377_v10 = vrot.slane %v4357_v2, %v9655_v52 }
0x11b4   :  { %v5044_v58 = vmul.f32 %v8621_v15, %v5036_v6  ;;  %v5037_v59 = vadd.f32 0.2548296, %v5029_v34  ;;  %v5032_v53 = vmul.f32 %v8625_v14, %v5024_v61  ;;  %v4937_v6 = vsel %vm4929_vm10, 1.0, %v10680_v36 }
0x11b5   :  { %v5025_v45 = vadd.f32 -0.28449672, %v5017_v63  ;;  %v4908_v61 = vmul.f32 0.5, %v10033_v44 }
0x11b6   :  { %v5084_v18 = vmul.f32 %v8629_v1, %v5044_v58  ;;  %v5045_v41 = vmul.f32 %v8623_v46, %v5037_v59  ;;  %v5040_v23 = vadd.f32 0.2548296, %v5032_v53  ;;  %v4933_v46 = vsel %vm4925_vm8, 1.0, %v10680_v36 }
0x11b7   :  { %v5033_v56 = vmul.f32 %v8627_v8, %v5025_v45  ;;  %v4913_v1 = vmul.f32 0.5, %v10050_v20  ;;  %v4620_v53 = vadd.f32 %v10014_v31, %v4373_v38  ;;  %v4622_v45 = vadd.f32 %v10026_v54, %v4377_v10  ;;  %v8352_v20 = vld [vmem:[#allocation38 + $0xe0] ss:$16 sps:$4 sm:$0xff]   ;;  %v8354_v31 = vld [vmem:[#allocation38 + $0xe4] ss:$16 sps:$4 sm:$0xff]  }
0x11b8   :  { %v5092_v9 = vsub.f32 1.0, %v5084_v18  ;;  %v5085_v11 = vmul.f32 %v8631_v47, %v5045_v41  ;;  %v5048_v26 = vmul.f32 %v8625_v14, %v5040_v23  ;;  %v4936_v14 = vsel %vm4928_vm9, 1.0, %v10680_v36  ;;  %5800 = vmatprep.subr.bf16.mxu1 %v8354_v31  ;;  %v8373_v38 = vld [vmem:[#allocation38 + $0x88] ss:$16 sps:$4 sm:$0xff]  }
0x11b9   :  { %v5041_v51 = vadd.f32 0.2548296, %v5033_v56  ;;  %v4618_v18 = vadd.f32 %v10002_v7, %v4377_v10  ;;  %5801 = vmatpush1.bf16.msra.mxu1 %v8352_v20  ;;  %v8372_v10 = vld [vmem:[#allocation38 + $0x84] ss:$16 sps:$4 sm:$0xff]   ;;  %v8405_v20 = vld [vmem:[#allocation40 + $0xec] ss:$16 sps:$4 sm:$0xff]  }
0x11ba   :  { %v5093_v15 = vsub.f32 1.0, %v5085_v11  ;;  %v5088_v60 = vmul.f32 %v8633_v4, %v5048_v26  ;;  %v5100_v35 = vmul.f32 %v5092_v9, %v4932_v17  ;;  %v8355_v26 = vld [vmem:[#allocation38 + $0xe8] ss:$16 sps:$4 sm:$0xff]   ;;  %v8357_v4 = vld [vmem:[#allocation38 + $0xec] ss:$16 sps:$4 sm:$0xff]   ;;  %5802 = vmatprep.subr.bf16.mxu1 %v8360_v0 }
0x11bb   :  { %v5049_v25 = vmul.f32 %v8627_v8, %v5041_v51  ;;  %v4912_v8 = vmul.f32 0.5, %v10044_v48  ;;  %5853 = vmatprep.subr.bf16.mxu0 %v8357_v4 }
0x11bc   :  { %v5101_v29 = vmul.f32 %v5093_v15, %v4933_v46  ;;  %v5096_v3 = vsub.f32 1.0, %v5088_v60  ;;  %v5108_v24 = vadd.f32 1.0, %v5100_v35 }
0x11bd   :  { %v5089_v43 = vmul.f32 %v8635_v40, %v5049_v25 }
0x11be   :  { %v5104_v42 = vmul.f32 %v5096_v3, %v4936_v14  ;;  %v5109_v12 = vadd.f32 1.0, %v5101_v29  ;;  %v5116_v48 = vmul.f32 %v5108_v24, %v4908_v61  ;;  %v8364_v24 = vld [vmem:[#allocation38 + $0xa0] ss:$16 sps:$4 sm:$0xff]   ;;  %v8378_v61 = vld [vmem:[#allocation38 + $0x64] ss:$16 sps:$4 sm:$0xff]  }
0x11bf   :  { %v5097_v30 = vsub.f32 1.0, %v5089_v43  ;;  %v8358_v43 = vld [vmem:[#allocation38 + $0xc0] ss:$16 sps:$4 sm:$0xff]  }
0x11c0   :  { %v5112_v21 = vadd.f32 1.0, %v5104_v42  ;;  %v5117_v63 = vmul.f32 %v5109_v12, %v4909_v32  ;;  %v5124_v9 = vmul.f32 %v5116_v48, %v4616_v19  ;;  %v8361_v42 = vld [vmem:[#allocation38 + $0xc8] ss:$16 sps:$4 sm:$0xff]   ;;  %5803 = vmatpush1.bf16.msra.mxu1 %v8358_v43  ;;  %v8375_v32 = vld [vmem:[#allocation38 + $0x8c] ss:$16 sps:$4 sm:$0xff]  }
0x11c1   :  { %v5105_v34 = vmul.f32 %v5097_v30, %v4937_v6  ;;  %v8363_v30 = vld [vmem:[#allocation38 + $0xcc] ss:$16 sps:$4 sm:$0xff]   ;;  %v8385_v48 = vld [vmem:[#allocation38 + $0x48] ss:$16 sps:$4 sm:$0xff]   ;;  %v8388_v19 = vld [vmem:[#allocation38 + $0x20] ss:$16 sps:$4 sm:$0xff]  }
0x11c2   :  { %v5120_v58 = vmul.f32 %v5112_v21, %v4912_v8  ;;  %v5125_v47 = vmul.f32 %v5117_v63, %v4618_v18  ;;  %v8366_v8 = vld [vmem:[#allocation38 + $0xa4] ss:$16 sps:$4 sm:$0xff]   ;;  %v8367_v21 = vld [vmem:[#allocation38 + $0xa8] ss:$16 sps:$4 sm:$0xff]   ;;  %v8369_v6 = vld [vmem:[#allocation38 + $0xac] ss:$16 sps:$4 sm:$0xff]  }
0x11c3   :  { %v5113_v59 = vadd.f32 1.0, %v5105_v34  ;;  %5804 = vmatprep.subr.bf16.mxu1 %v8366_v8  ;;  %v8370_v34 = vld [vmem:[#allocation38 + $0x80] ss:$16 sps:$4 sm:$0xff]   ;;  %v8387_v18 = vld [vmem:[#allocation38 + $0x4c] ss:$16 sps:$4 sm:$0xff]  }
0x11c4   :  { %v5128_v23 = vmul.f32 %v5120_v58, %v4620_v53  ;;  %5805 = vmatpush1.bf16.msra.mxu1 %v8364_v24  ;;  %v8381_v58 = vld [vmem:[#allocation38 + $0x6c] ss:$16 sps:$4 sm:$0xff]   ;;  %v8376_v63 = vld [vmem:[#allocation38 + $0x60] ss:$16 sps:$4 sm:$0xff]   ;;  %v8384_v53 = vld [vmem:[#allocation38 + $0x44] ss:$16 sps:$4 sm:$0xff]  }
0x11c5   :  { %v5121_v41 = vmul.f32 %v5113_v59, %v4913_v1  ;;  %5806 = vmatprep.subr.bf16.mxu1 %v8372_v10  ;;  %v8379_v1 = vld [vmem:[#allocation38 + $0x68] ss:$16 sps:$4 sm:$0xff]   ;;  %v8382_v59 = vld [vmem:[#allocation38 + $0x40] ss:$16 sps:$4 sm:$0xff]  }
0x11c6   :  { %v5132_v11 = vpack.c.bf16 %v5128_v23, %v5124_v9  ;;  %v8391_v23 = vld [vmem:[#allocation38 + $0x28] ss:$16 sps:$4 sm:$0xff]   ;;  %v8394_v9 = vld [vmem:[#allocation38] ss:$16 sps:$4 sm:$0xff]  }
0x11c7   :  { %v5129_v56 = vmul.f32 %v5121_v41, %v4622_v45  ;;  %v8390_v45 = vld [vmem:[#allocation38 + $0x24] ss:$16 sps:$4 sm:$0xff]   ;;  %v8393_v41 = vld [vmem:[#allocation38 + $0x2c] ss:$16 sps:$4 sm:$0xff]  }
0x11c8   :  { %5807 = vmatpush1.bf16.msra.mxu1 %v8370_v34 }
0x11c9   :  { %v5133_v44 = vpack.c.bf16 %v5129_v56, %v5125_v47  ;;  %5808 = vmatprep.subr.bf16.mxu1 %v8378_v61  ;;  %v8396_v47 = vld [vmem:[#allocation38 + $0x4] ss:$16 sps:$4 sm:$0xff]   ;;  %v8399_v56 = vld [vmem:[#allocation38 + $0xc] ss:$16 sps:$4 sm:$0xff]   ;;  %v8400_v61 = vld [vmem:[#allocation40 + $0xe0] ss:$16 sps:$4 sm:$0xff]  }
0x11cb   :  { %5403 = vmatprep.mubr.bf16.mxu0 %v5133_v44  ;;  %v8397_v44 = vld [vmem:[#allocation38 + $0x8] ss:$16 sps:$4 sm:$0xff]  }
0x11cc   :  { %5404 = vmatmul.mubr.bf16.vlgmr.msra.gmra.mxu0 %v5132_v11  ;;  %5809 = vmatpush1.bf16.msra.mxu1 %v8376_v63  ;;  %v8402_v11 = vld [vmem:[#allocation40 + $0xe4] ss:$16 sps:$4 sm:$0xff]  }
0x11cd   :  { %5885 = vmatprep.mubr.bf16.mxu0 %v9343_v37  ;;  %5854 = vmatpush1.bf16.msra.mxu0 %v8355_v26  ;;  %v8408_v63 = vld [vmem:[#allocation40 + $0xc4] ss:$16 sps:$4 sm:$0xff]  }
0x11ce   :  { %5855 = vmatprep.subr.bf16.mxu0 %v8363_v30  ;;  %5810 = vmatprep.subr.bf16.mxu1 %v8384_v53 }
0x11d0   :  { %5811 = vmatpush1.bf16.msra.mxu1 %v8382_v59 }
0x11d1   :  { %5856 = vmatpush1.bf16.msra.mxu0 %v8361_v42  ;;  %5812 = vmatprep.subr.bf16.mxu1 %v8390_v45  ;;  %v8409_v45 = vld [vmem:[#allocation40 + $0xc8] ss:$16 sps:$4 sm:$0xff]  }
0x11d2   :  { %5857 = vmatprep.subr.bf16.mxu0 %v8369_v6 }
0x11d4   :  { %5813 = vmatpush1.bf16.msra.mxu1 %v8388_v19  ;;  %v8417_v19 = vld [vmem:[#allocation40 + $0xac] ss:$16 sps:$4 sm:$0xff]  }
0x11d5   :  { %5858 = vmatpush1.bf16.msra.mxu0 %v8367_v21  ;;  %5814 = vmatprep.subr.bf16.mxu1 %v8396_v47 }
0x11d6   :  { %5859 = vmatprep.subr.bf16.mxu0 %v8375_v32 }
0x11d8   :  { %5815 = vmatpush1.bf16.msra.mxu1 %v8394_v9 }
0x11d9   :  { %5860 = vmatpush1.bf16.msra.mxu0 %v8373_v38  ;;  %6102 = vmatprep.subr.bf16.mxu1 %v8402_v11 }
0x11da   :  { %5861 = vmatprep.subr.bf16.mxu0 %v8381_v58 }
0x11dd   :  { %v5543_v7 = vpop.xlane.xlu0 %5542  ;;  %5862 = vmatpush1.bf16.msra.mxu0 %v8379_v1  ;;  %v8411_v1 = vld [vmem:[#allocation40 + $0xcc] ss:$16 sps:$4 sm:$0xff]  }
0x11de   :  { %v5550_v54 = vmul.f32 0.0078125, %v5543_v7  ;;  %5863 = vmatprep.subr.bf16.mxu0 %v8387_v18  ;;  %v8406_v18 = vld [vmem:[#allocation40 + $0xc0] ss:$16 sps:$4 sm:$0xff]  }
0x11e0   :  { %v10082_v49 = vsub.f32 %v9958_v62, %v5550_v54 }
0x11e1   :  { %v5545_v51 = vpop.xlane.xlu1 %5544  ;;  %5864 = vmatpush1.bf16.msra.mxu0 %v8385_v48 }
0x11e2   :  { %v5551_v15 = vmul.f32 0.0078125, %v5545_v51  ;;  %v5558_v60 = vmul.f32 %v10082_v49, %v10082_v49  ;;  %5865 = vmatprep.subr.bf16.mxu0 %v8393_v41  ;;  %v8414_v41 = vld [vmem:[#allocation40 + $0xa4] ss:$16 sps:$4 sm:$0xff]  }
0x11e4   :  { %v10087_v17 = vsub.f32 %v9973_v55, %v5551_v15  ;;  %5562 = vadd.xlane.f32.xlu0 %v5558_v60 }
0x11e5   :  { %v5547_v25 = vpop.xlane.xlu0 %5546  ;;  %5866 = vmatpush1.bf16.msra.mxu0 %v8391_v23 }
0x11e6   :  { %v5559_v46 = vmul.f32 %v10087_v17, %v10087_v17  ;;  %v5552_v40 = vmul.f32 0.0078125, %v5547_v25  ;;  %5867 = vmatprep.subr.bf16.mxu0 %v8399_v56 }
0x11e8   :  { %5564 = vadd.xlane.f32.xlu1 %v5559_v46  ;;  %v10092_v35 = vsub.f32 %v9988_v16, %v5552_v40 }
0x11e9   :  { %v5549_v29 = vpop.xlane.xlu1 %5548  ;;  %5868 = vmatpush1.bf16.msra.mxu0 %v8397_v44 }
0x11ea   :  { %v5553_v3 = vmul.f32 0.0078125, %v5549_v29  ;;  %v5560_v2 = vmul.f32 %v10092_v35, %v10092_v35  ;;  %6155 = vmatprep.subr.bf16.mxu0 %v8405_v20 }
0x11ec   :  { %v10097_v14 = vsub.f32 %v9992_v22, %v5553_v3  ;;  %5566 = vadd.xlane.f32.xlu0 %v5560_v2  ;;  %v8715_v2 = vld [vmem:[#allocation7 + $0x8] sm:$0xff] }
0x11ed   :  { %v5589_v43 = vrot.slane %v8715_v2, %v9793_v39  ;;  %v5137_v59 = vrot.slane %v8715_v2, %v9788_v33 }
0x11ee   :  { %v5561_v12 = vmul.f32 %v10097_v14, %v10097_v14 }
0x11f0   :  { %5568 = vadd.xlane.f32.xlu1 %v5561_v12  ;;  %v440_v12 = vld [vmem:[#allocation7 + $0x10] sm:$0x3] }
0x11f1   :  { %v5597_v21 = vrot.slane %v440_v12, %v9655_v52  ;;  %v8426_v12 = vld [vmem:[#allocation40 + $0x64] ss:$16 sps:$4 sm:$0xff]  }
0x1251   :  { %v7638_v0 = vpop.f32.mrf.mxu1 }
0x1253   :  { %v7639_v6 = vpop.f32.mrf.mxu1 }
0x1254   :  { %v7640_v53 = vadd.f32 %v7639_v6, %v7638_v0  ;;  %v8418_v0 = vld [vmem:[#allocation40 + $0x80] ss:$16 sps:$4 sm:$0xff]  }
0x1255   :  { %v7641_v38 = vpop.f32.mrf.mxu1  ;;  %v8430_v6 = vld [vmem:[#allocation40 + $0x40] ss:$16 sps:$4 sm:$0xff]  }
0x1256   :  { %v5365_v9 = vadd.f32 %v7640_v53, %v5137_v59 }
0x1257   :  { %v7642_v52 = vpop.f32.mrf.mxu1 }
0x1258   :  { %v7643_v44 = vadd.f32 %v7642_v52, %v7641_v38  ;;  %v8439_v38 = vld [vmem:[#allocation40 + $0x28] ss:$16 sps:$4 sm:$0xff]  }
0x1259   :  { %v8449_v52 = vld [vmem:[#allocation41 + $0xf8] sm:$0xff]  }
0x126d   :  { %v5563_v31 = vpop.xlane.xlu0 %5562 }
0x126e   :  { %v5570_v26 = vmul.f32 0.0078125, %v5563_v31  ;;  %v8412_v31 = vld [vmem:[#allocation40 + $0xa0] ss:$16 sps:$4 sm:$0xff]  }
0x1270   :  { %v5574_v4 = vadd.f32 1e-05, %v5570_v26  ;;  %v8415_v26 = vld [vmem:[#allocation40 + $0xa8] ss:$16 sps:$4 sm:$0xff]  }
0x1271   :  { %v5565_v7 = vpop.xlane.xlu1 %5564 }
0x1272   :  { %8636 = vrsqrt.f32 %v5574_v4  ;;  %v5571_v54 = vmul.f32 0.0078125, %v5565_v7 }
0x1274   :  { %v5575_v51 = vadd.f32 1e-05, %v5571_v54 }
0x1275   :  { %v5567_v15 = vpop.xlane.xlu0 %5566 }
0x1276   :  { %8638 = vrsqrt.f32 %v5575_v51  ;;  %v5572_v60 = vmul.f32 0.0078125, %v5567_v15  ;;  %v8423_v51 = vld [vmem:[#allocation40 + $0x8c] ss:$16 sps:$4 sm:$0xff]  }
0x1278   :  { %v5576_v46 = vadd.f32 1e-05, %v5572_v60 }
0x1279   :  { %v5569_v25 = vpop.xlane.xlu1 %5568 }
0x127a   :  { %v5573_v29 = vmul.f32 0.0078125, %v5569_v25  ;;  %8640 = vrsqrt.f32 %v5576_v46  ;;  %v5368_v46 = vadd.f32 %v7643_v44, %v5137_v59  ;;  %v8457_v44 = vld [vmem:[#allocation41 + $0xe8] sm:$0xff]  }
0x127c   :  { %v5577_v42 = vadd.f32 1e-05, %v5573_v29 }
0x127e   :  { %8642 = vrsqrt.f32 %v5577_v42 }
0x127f   :  { %v8637_v40 = vpop.eup %8636 }
0x1280   :  { %v5582_v3 = vmul.f32 %v8637_v40, %v10082_v49  ;;  %v8403_v49 = vld [vmem:[#allocation40 + $0xe8] ss:$16 sps:$4 sm:$0xff]  }
0x1282   :  { %v5590_v8 = vmul.f32 %v5589_v43, %v5582_v3 }
0x1283   :  { %v8639_v30 = vpop.eup %8638 }
0x1284   :  { %v5583_v24 = vmul.f32 %v8639_v30, %v10087_v17  ;;  %v5598_v32 = vadd.f32 %v5597_v21, %v5590_v8  ;;  %v8429_v30 = vld [vmem:[#allocation40 + $0x6c] ss:$16 sps:$4 sm:$0xff]   ;;  %v8432_v8 = vld [vmem:[#allocation40 + $0x44] ss:$16 sps:$4 sm:$0xff]  }
0x1286   :  { %v5591_v10 = vmul.f32 %v5589_v43, %v5583_v24 }
0x1287   :  { %v8641_v17 = vpop.eup %8640 }
0x1288   :  { %v5599_v34 = vadd.f32 %v5597_v21, %v5591_v10  ;;  %v5584_v23 = vmul.f32 %v8641_v17, %v10092_v35  ;;  %v8420_v35 = vld [vmem:[#allocation40 + $0x84] ss:$16 sps:$4 sm:$0xff]   ;;  %v8433_v10 = vld [vmem:[#allocation40 + $0x48] ss:$16 sps:$4 sm:$0xff]  }
0x1289   :  { %v8448_v17 = vld [vmem:[#allocation41 + $0x78] sm:$0xff]  }
0x128a   :  { %v10105_v58 = vpack.c.bf16 %v5599_v34, %v5598_v32  ;;  %v5592_v7 = vmul.f32 %v5589_v43, %v5584_v23  ;;  %v8441_v32 = vld [vmem:[#allocation40 + $0x2c] ss:$16 sps:$4 sm:$0xff]   ;;  %v8436_v34 = vld [vmem:[#allocation40 + $0x20] ss:$16 sps:$4 sm:$0xff]  }
0x128b   :  { %v8643_v56 = vpop.eup %8642  ;;  %v8455_v23 = vld [vmem:[#allocation41 + $0xb0] sm:$0xff]  }
0x128c   :  { %5833 = vmatmul.mubr.bf16.vlgmr.msra.gmra.mxu1 %v10105_v58  ;;  %5886 = vmatmul.mubr.bf16.vlgmr.msra.gmra.mxu0 %v10105_v58  ;;  %v7660_v48 = vpop.f32.mrf.mxu0  ;;  %v5585_v4 = vmul.f32 %v8643_v56, %v10097_v14  ;;  %v5600_v29 = vadd.f32 %v5597_v21, %v5592_v7  ;;  %v8421_v14 = vld [vmem:[#allocation40 + $0x88] ss:$16 sps:$4 sm:$0xff]   ;;  %v8461_v7 = vld [vmem:[#allocation41 + $0xe0] sm:$0xff]  }
0x128d   :  { %6103 = vmatpush1.bf16.msra.mxu1 %v8400_v61  ;;  %6156 = vmatpush1.bf16.msra.mxu0 %v8403_v49  ;;  %v8444_v61 = vld [vmem:[#allocation40 + $0x4] ss:$16 sps:$4 sm:$0xff]   ;;  %v8447_v49 = vld [vmem:[#allocation40 + $0xc] ss:$16 sps:$4 sm:$0xff]  }
0x128e   :  { %6104 = vmatprep.subr.bf16.mxu1 %v8408_v63  ;;  %6157 = vmatprep.subr.bf16.mxu0 %v8411_v1  ;;  %v7661_v47 = vpop.f32.mrf.mxu0  ;;  %v5593_v60 = vmul.f32 %v5589_v43, %v5585_v4  ;;  %v8427_v43 = vld [vmem:[#allocation40 + $0x68] ss:$16 sps:$4 sm:$0xff]   ;;  %v8442_v63 = vld [vmem:[#allocation40] ss:$16 sps:$4 sm:$0xff]  }
0x128f   :  { %5842 = vmatprep.mubr.bf16.mxu1 %v9343_v37  ;;  %5895 = vmatprep.mubr.bf16.mxu0 %v9343_v37  ;;  %v7662_v11 = vadd.f32 %v7661_v47, %v7660_v48  ;;  %v8445_v1 = vld [vmem:[#allocation40 + $0x8] ss:$16 sps:$4 sm:$0xff]   ;;  %v8460_v4 = vld [vmem:[#allocation41 + $0x60] sm:$0xff]  }
0x1290   :  { %v7663_v20 = vpop.f32.mrf.mxu0  ;;  %v5601_v3 = vadd.f32 %v5597_v21, %v5593_v60  ;;  %v8435_v21 = vld [vmem:[#allocation40 + $0x4c] ss:$16 sps:$4 sm:$0xff]  }
0x1291   :  { %6105 = vmatpush1.bf16.msra.mxu1 %v8406_v18  ;;  %6158 = vmatpush1.bf16.msra.mxu0 %v8409_v45  ;;  %v5406_v54 = vadd.f32 %v7662_v11, %v5365_v9  ;;  %v8450_v48 = vld [vmem:[#allocation41 + $0x38] sm:$0xff]   ;;  %v8456_v9 = vld [vmem:[#allocation41 + $0x68] sm:$0xff]  }
0x1292   :  { %6106 = vmatprep.subr.bf16.mxu1 %v8414_v41  ;;  %6159 = vmatprep.subr.bf16.mxu0 %v8417_v19  ;;  %v7664_v15 = vpop.f32.mrf.mxu0  ;;  %v5603_v42 = vpack.c.bf16 %v5601_v3, %v5600_v29  ;;  %v8451_v18 = vld [vmem:[#allocation41 + $0xb8] sm:$0xff]   ;;  %v8454_v19 = vld [vmem:[#allocation41 + $0x30] sm:$0xff]   ;;  %v8458_v11 = vld [vmem:[#allocation41 + $0x28] sm:$0xff]  }
0x1293   :  { %v5412_v25 = vadd.f32 %v5406_v54, %v9882_v50  ;;  %v7665_v40 = vadd.f32 %v7664_v15, %v7663_v20  ;;  %v8424_v50 = vld [vmem:[#allocation40 + $0x60] ss:$16 sps:$4 sm:$0xff]   ;;  %v8459_v20 = vld [vmem:[#allocation41 + $0xa8] sm:$0xff]   ;;  %v8464_v60 = vld [vmem:[#allocation41 + $0x58] sm:$0xff]  }
0x1294   :  { %5843 = vmatmul.mubr.bf16.gmra.mxu1 %v5603_v42  ;;  %5896 = vmatmul.mubr.bf16.gmra.mxu0 %v5603_v42  ;;  %v8462_v54 = vld [vmem:[#allocation41 + $0x20] sm:$0xff]  }
0x1295   :  { %6107 = vmatpush1.bf16.msra.mxu1 %v8412_v31  ;;  %6160 = vmatpush1.bf16.msra.mxu0 %v8415_v26  ;;  %6962 = vst [vmem:[#allocation43] sm:$0xff] %v5412_v25  ;;  %v5409_v2 = vadd.f32 %v7665_v40, %v5368_v46  ;;  %v8465_v46 = vld [vmem:[#allocation41 + $0xd8] sm:$0xff]  }
0x1296   :  { %6108 = vmatprep.subr.bf16.mxu1 %v8420_v35  ;;  %6161 = vmatprep.subr.bf16.mxu0 %v8423_v51  ;;  %v8463_v35 = vld [vmem:[#allocation41 + $0xa0] sm:$0xff]   ;;  %v8466_v25 = vld [vmem:[#allocation41 + $0x18] sm:$0xff]  }
0x1297   :  { %v5413_v24 = vadd.f32 %v5409_v2, %v9885_v28  ;;  %6134 = vmatprep.mubr.bf16.mxu1 %v9343_v37  ;;  %6187 = vmatprep.mubr.bf16.mxu0 %v9343_v37  ;;  %v8438_v28 = vld [vmem:[#allocation40 + $0x24] ss:$16 sps:$4 sm:$0xff]   ;;  %v8467_v40 = vld [vmem:[#allocation41 + $0x98] sm:$0xff]  }
0x1298   :  { %v8468_v2 = vld [vmem:[#allocation41 + $0x50] sm:$0xff]  }
0x1299   :  { %6963 = vst [vmem:[#allocation43 + $0x8] sm:$0xff] %v5413_v24  ;;  %6109 = vmatpush1.bf16.msra.mxu1 %v8418_v0  ;;  %6162 = vmatpush1.bf16.msra.mxu0 %v8421_v14  ;;  %v8469_v0 = vld [vmem:[#allocation41 + $0xd0] sm:$0xff]   ;;  %v5917_v24 = vrot.slane %v10008_v5, %v9709_v27 }
0x129a   :  { %6110 = vmatprep.subr.bf16.mxu1 %v8426_v12  ;;  %6163 = vmatprep.subr.bf16.mxu0 %v8429_v30  ;;  %v8470_v14 = vld [vmem:[#allocation41 + $0x10] sm:$0xff]  }
0x129b   :  { %v10146_v12 = vld [vmem:[#allocation8] sm:$0xff] }
0x129c   :  { %v5909_v30 = vrot.slane %v10146_v12, %v9709_v27 }
0x129d   :  { %6111 = vmatpush1.bf16.msra.mxu1 %v8424_v50  ;;  %6164 = vmatpush1.bf16.msra.mxu0 %v8427_v43 }
0x129e   :  { %6112 = vmatprep.subr.bf16.mxu1 %v8432_v8  ;;  %6165 = vmatprep.subr.bf16.mxu0 %v8435_v21  ;;  %v8472_v8 = vld [vmem:[#allocation41 + $0x48] sm:$0xff]  }
0x129f   :  { %v8473_v21 = vld [vmem:[#allocation41 + $0xc8] sm:$0xff]  }
0x12a1   :  { %6113 = vmatpush1.bf16.msra.mxu1 %v8430_v6  ;;  %6166 = vmatpush1.bf16.msra.mxu0 %v8433_v10  ;;  %v5913_v6 = vrot.slane %v10146_v12, %v9793_v39  ;;  %v5921_v10 = vrot.slane %v10008_v5, %v9793_v39 }
0x12a2   :  { %6114 = vmatprep.subr.bf16.mxu1 %v8438_v28  ;;  %6167 = vmatprep.subr.bf16.mxu0 %v8441_v32  ;;  %v8474_v28 = vld [vmem:[#allocation41 + $0x8] sm:$0xff]  }
0x12a3   :  { %v8475_v32 = vld [vmem:[#allocation41 + $0x88] sm:$0xff]   ;;  %v10171_v5 = vrot.slane %v5913_v6, %v9709_v27 }
0x12a5   :  { %6115 = vmatpush1.bf16.msra.mxu1 %v8436_v34  ;;  %6168 = vmatpush1.bf16.msra.mxu0 %v8439_v38  ;;  %v10161_v34 = vrot.slane %v5909_v30, %v9709_v27  ;;  %v10164_v38 = vrot.slane %v5917_v24, %v9709_v27 }
0x12a6   :  { %6116 = vmatprep.subr.bf16.mxu1 %v8444_v61  ;;  %6169 = vmatprep.subr.bf16.mxu0 %v8447_v49 }
0x12a9   :  { %6117 = vmatpush1.bf16.msra.mxu1 %v8442_v63  ;;  %6170 = vmatpush1.bf16.msra.mxu0 %v8445_v1  ;;  %v8476_v63 = vld [vmem:[#allocation41 + $0x40] sm:$0xff]  }
0x12aa   :  { %7666 = vmatprep.subr.bf16.mxu1 %v8448_v17  ;;  %7694 = vmatprep.subr.bf16.mxu0 %v8449_v52  ;;  %v8477_v1 = vld [vmem:[#allocation41 + $0xc0] sm:$0xff]   ;;  %v10174_v52 = vrot.slane %v5921_v10, %v9709_v27 }
0x12ac   :  { %6135 = vmatmul.mubr.bf16.vlgmr.msra.gmra.mxu1 %v10105_v58  ;;  %6188 = vmatmul.mubr.bf16.vlgmr.msra.gmra.mxu0 %v10105_v58  ;;  %v8452_v58 = vld [vmem:[#allocation41 + $0x70] sm:$0xff]  }
0x12ad   :  { %6144 = vmatprep.mubr.bf16.mxu1 %v9343_v37  ;;  %6197 = vmatprep.mubr.bf16.mxu0 %v9343_v37  ;;  %v8453_v37 = vld [vmem:[#allocation41 + $0xf0] sm:$0xff]  }
0x12ae   :  { %7667 = vmatpush3.bf16.msra.mxu1 %v8450_v48  ;;  %7695 = vmatpush3.bf16.msra.mxu0 %v8451_v18  ;;  %v8478_v48 = vld [vmem:[#allocation41] sm:$0xff]  }
0x12af   :  { %7668 = vmatprep.subr.bf16.mxu1 %v8452_v58  ;;  %7696 = vmatprep.subr.bf16.mxu0 %v8453_v37  ;;  %v8479_v18 = vld [vmem:[#allocation41 + $0x80] sm:$0xff]  }
0x12b2   :  { %7669 = vmatpush3.bf16.msra.mxu1 %v8454_v19  ;;  %7697 = vmatpush3.bf16.msra.mxu0 %v8455_v23 }
0x12b3   :  { %7670 = vmatprep.subr.bf16.mxu1 %v8456_v9  ;;  %7698 = vmatprep.subr.bf16.mxu0 %v8457_v44 }
0x12b4   :  { %6145 = vmatmul.mubr.bf16.gmra.mxu1 %v5603_v42  ;;  %6198 = vmatmul.mubr.bf16.gmra.mxu0 %v5603_v42  ;;  %v8471_v42 = vld [vmem:[#allocation41 + $0x90] sm:$0xff]  }
0x12b6   :  { %7671 = vmatpush3.bf16.msra.mxu1 %v8458_v11  ;;  %7699 = vmatpush3.bf16.msra.mxu0 %v8459_v20 }
0x12b7   :  { %7672 = vmatprep.subr.bf16.mxu1 %v8460_v4  ;;  %7700 = vmatprep.subr.bf16.mxu0 %v8461_v7 }
0x12ba   :  { %7673 = vmatpush3.bf16.msra.mxu1 %v8462_v54  ;;  %7701 = vmatpush3.bf16.msra.mxu0 %v8463_v35 }
0x12bb   :  { %7674 = vmatprep.subr.bf16.mxu1 %v8464_v60  ;;  %7702 = vmatprep.subr.bf16.mxu0 %v8465_v46 }
0x12be   :  { %7675 = vmatpush3.bf16.msra.mxu1 %v8466_v25  ;;  %7703 = vmatpush3.bf16.msra.mxu0 %v8467_v40 }
0x12bf   :  { %7676 = vmatprep.subr.bf16.mxu1 %v8468_v2  ;;  %7704 = vmatprep.subr.bf16.mxu0 %v8469_v0 }
0x12c2   :  { %7677 = vmatpush3.bf16.msra.mxu1 %v8470_v14  ;;  %7705 = vmatpush3.bf16.msra.mxu0 %v8471_v42 }
0x12c3   :  { %7678 = vmatprep.subr.bf16.mxu1 %v8472_v8  ;;  %7706 = vmatprep.subr.bf16.mxu0 %v8473_v21 }
0x12c6   :  { %7679 = vmatpush3.bf16.msra.mxu1 %v8474_v28  ;;  %7707 = vmatpush3.bf16.msra.mxu0 %v8475_v32 }
0x12c7   :  { %7680 = vmatprep.subr.bf16.mxu1 %v8476_v63  ;;  %7708 = vmatprep.subr.bf16.mxu0 %v8477_v1 }
0x12ca   :  { %7681 = vmatpush3.bf16.msra.mxu1 %v8478_v48  ;;  %7709 = vmatpush3.bf16.msra.mxu0 %v8479_v18  ;;  %v5607_v18 = vrot.slane %v10146_v12, %v9752_v13 }
0x12cc   :  { %v10247_v36 = vrot.slane %v5607_v18, %v9752_v13 }
0x12ce   :  { %10732 = vst [vmem:[#allocation76_spill] sm:$0xff] %v10247_v36 }
0x134c   :  { %v10122_v59 = vpop.f32.mrf.mxu1  ;;  %v10124_v53 = vpop.f32.mrf.mxu0 }
0x134e   :  { %v10126_v45 = vpop.f32.mrf.mxu1  ;;  %v10128_v41 = vpop.f32.mrf.mxu0 }
0x1350   :  { %v10130_v47 = vpop.f32.mrf.mxu1  ;;  %v10132_v56 = vpop.f32.mrf.mxu0 }
0x1352   :  { %v10134_v31 = vpop.f32.mrf.mxu1  ;;  %v10136_v26 = vpop.f32.mrf.mxu0 }
0x1353   :  { %10723 = vst [vmem:[#allocation67_spill] sm:$0xff] %v10136_v26 }
0x1354   :  { %v10138_v51 = vpop.f32.mrf.mxu1  ;;  %v10140_v15 = vpop.f32.mrf.mxu0 }
0x1355   :  { %10724 = vst [vmem:[#allocation68_spill] sm:$0xff] %v10138_v51  ;;  %10725 = vst [vmem:[#allocation69_spill] sm:$0xff] %v10140_v15 }
0x1356   :  { %v10142_v29 = vpop.f32.mrf.mxu1  ;;  %v10144_v3 = vpop.f32.mrf.mxu0 }
0x1357   :  { %10726 = vst [vmem:[#allocation70_spill] sm:$0xff] %v10142_v29  ;;  %10727 = vst [vmem:[#allocation71_spill] sm:$0xff] %v10144_v3 }
0x1358   :  { %v10152_v50 = vpop.f32.mrf.mxu1  ;;  %v10154_v43 = vpop.f32.mrf.mxu0 }
0x1359   :  { %10728 = vst [vmem:[#allocation72_spill] sm:$0xff] %v10152_v50  ;;  %10729 = vst [vmem:[#allocation73_spill] sm:$0xff] %v10154_v43 }
0x135a   :  { %v10166_v61 = vpop.f32.mrf.mxu1  ;;  %v10168_v49 = vpop.f32.mrf.mxu0 }
0x135b   :  { %10730 = vst [vmem:[#allocation74_spill] sm:$0xff] %v10166_v61  ;;  %10731 = vst [vmem:[#allocation75_spill] sm:$0xff] %v10168_v49 }
0x136c   :  { %v6136_v17 = vpop.f32.mrf.mxu1  ;;  %v6189_v39 = vpop.f32.mrf.mxu0 }
0x136d   :  { %v10177_v58 = vadd.f32 %v6136_v17, %v10161_v34  ;;  %v10180_v37 = vadd.f32 %v6189_v39, %v10164_v38 }
0x136e   :  { %v6138_v19 = vpop.f32.mrf.mxu1  ;;  %v6191_v23 = vpop.f32.mrf.mxu0 }
0x136f   :  { %v10183_v9 = vmul.f32 0.70710677, %v10177_v58  ;;  %v10186_v27 = vmul.f32 0.70710677, %v10180_v37  ;;  %v10189_v44 = vadd.f32 %v6138_v19, %v10171_v5  ;;  %v10192_v11 = vadd.f32 %v6191_v23, %v10174_v52  ;;  %v8717_v19 = vld [vmem:[#allocation8 + $0x8] sm:$0xff] }
0x1370   :  { %v6140_v54 = vpop.f32.mrf.mxu1  ;;  %v6193_v14 = vpop.f32.mrf.mxu0  ;;  %v5615_v23 = vrot.slane %v8717_v19, %v9752_v13 }
0x1371   :  { %v6272_v20 = vand.u32 2147483647, %v10183_v9  ;;  %v6274_v4 = vand.u32 2147483647, %v10186_v27  ;;  %v10197_v7 = vmul.f32 0.70710677, %v10189_v44  ;;  %v10210_v8 = vadd.f32 %v6140_v54, %v10161_v34 }
0x1372   :  { %v10203_v25 = vmul.f32 0.70710677, %v10192_v11  ;;  %v6142_v42 = vpop.f32.mrf.mxu1  ;;  %v10213_v21 = vadd.f32 %v6193_v14, %v10164_v38  ;;  %v6195_v39 = vpop.f32.mrf.mxu0  ;;  %vm6240_vm11 = vcmp.ge.f32.partialorder %v10183_v9, 0.0  ;;  %vm6242_vm12 = vcmp.ge.f32.partialorder %v10186_v27, 0.0 }
0x1373   :  { %v6288_v35 = vmul.f32 0.3275911, %v6272_v20  ;;  %v6290_v60 = vmul.f32 0.3275911, %v6274_v4  ;;  %v10200_v46 = vand.u32 2147483647, %v10197_v7  ;;  %v10216_v6 = vadd.f32 %v6142_v42, %v10171_v5 }
0x1374   :  { %v10207_v24 = vand.u32 2147483647, %v10203_v25  ;;  %v10220_v28 = vmul.f32 0.70710677, %v10210_v8  ;;  %v10223_v63 = vmul.f32 0.70710677, %v10213_v21 }
0x1375   :  { %v6304_v40 = vadd.f32 1.0, %v6288_v35  ;;  %v6306_v2 = vadd.f32 1.0, %v6290_v60  ;;  %v6289_v0 = vmul.f32 0.3275911, %v10200_v46  ;;  %v10227_v17 = vmul.f32 0.70710677, %v10216_v6 }
0x1376   :  { %v6291_v10 = vmul.f32 0.3275911, %v10207_v24  ;;  %v6276_v1 = vand.u32 2147483647, %v10220_v28  ;;  %v6496_v48 = vsub.f32 0.0, %v6272_v20  ;;  %v5611_v60 = vrot.slane %v10146_v12, %v9788_v33 }
0x1377   :  { %8644 = vrcp.f32 %v6304_v40  ;;  %v6305_v30 = vadd.f32 1.0, %v6289_v0  ;;  %v10233_v35 = vand.u32 2147483647, %v10223_v63  ;;  %v10238_v40 = vand.u32 2147483647, %v10227_v17 }
0x1378   :  { %8646 = vrcp.f32 %v6306_v2  ;;  %v6307_v32 = vadd.f32 1.0, %v6291_v10  ;;  %v6292_v54 = vmul.f32 0.3275911, %v6276_v1  ;;  %v10241_v2 = vadd.f32 %v6195_v39, %v10174_v52 }
0x1379   :  { %8648 = vrcp.f32 %v6305_v30  ;;  %v6498_v0 = vsub.f32 0.0, %v6274_v4  ;;  %v6294_v42 = vmul.f32 0.3275911, %v10233_v35  ;;  %v5619_v30 = vrot.slane %v8717_v19, %v9788_v33 }
0x137a   :  { %8650 = vrcp.f32 %v6307_v32  ;;  %v6308_v14 = vadd.f32 1.0, %v6292_v54  ;;  %v6512_v10 = vmul.f32 %v6496_v48, %v6272_v20  ;;  %v6293_v32 = vmul.f32 0.3275911, %v10238_v40 }
0x137b   :  { %v10250_v12 = vrot.slane %v5615_v23, %v9752_v13  ;;  %v6310_v22 = vadd.f32 1.0, %v6294_v42  ;;  %v10255_v39 = vrot.slane %v5611_v60, %v9752_v13  ;;  %v10258_v55 = vmul.f32 0.70710677, %v10241_v2 }
0x137c   :  { %8652 = vrcp.f32 %v6308_v14  ;;  %v6309_v54 = vadd.f32 1.0, %v6293_v32  ;;  %v6514_v48 = vmul.f32 %v6498_v0, %v6274_v4  ;;  %v10264_v18 = vrot.slane %v5619_v30, %v9752_v13  ;;  %v6146_v4 = vpop.f32.mrf.mxu1 }
0x137d   :  { %v6528_v19 = vmul.f32 1.442695, %v6512_v10  ;;  %8654 = vrcp.f32 %v6310_v22  ;;  %v10269_v60 = vadd.f32 %v10122_v59, %v10247_v36  ;;  %v10273_v14 = vadd.f32 %v10124_v53, %v10250_v12 }
0x137e   :  { %v10276_v32 = vand.u32 2147483647, %v10258_v55  ;;  %v10282_v13 = vadd.f32 %v10126_v45, %v10255_v39  ;;  %v6500_v30 = vsub.f32 0.0, %v6276_v1  ;;  %8656 = vrcp.f32 %v6309_v54 }
0x137f   :  { %v6532_v10 = vmul.f32 1.442695, %v6514_v48  ;;  %v6497_v53 = vsub.f32 0.0, %v10200_v46  ;;  %8658 = vpow2.f32 %v6528_v19  ;;  %v6499_v57 = vsub.f32 0.0, %v10207_v24 }
0x1380   :  { %v10290_v49 = vadd.f32 %v6146_v4, %v10161_v34  ;;  %v10298_v3 = vadd.f32 %v10128_v41, %v10264_v18  ;;  %v10311_v41 = vadd.f32 %v10130_v47, %v10247_v36  ;;  %vm6244_vm13 = vcmp.ge.f32.partialorder %v10220_v28, 0.0 }
0x1381   :  { %v6513_v4 = vmul.f32 %v6497_v53, %v10200_v46  ;;  %v10317_v53 = vmul.f32 0.5, %v10177_v58  ;;  %v6501_v58 = vsub.f32 0.0, %v10238_v40  ;;  %vm6246_vm14 = vcmp.ge.f32.partialorder %v10223_v63, 0.0 }
0x1382   :  { %10733 = vst [vmem:[#allocation77_spill] sm:$0xff] %v10290_v49  ;;  %10734 = vst [vmem:[#allocation78_spill] sm:$0xff] %v10298_v3  ;;  %v10307_v43 = vmul.f32 0.70710677, %v10290_v49  ;;  %vm6241_vm15 = vcmp.ge.f32.partialorder %v10197_v7, 0.0  ;;  %vm6243_vm0 = vcmp.ge.f32.partialorder %v10203_v25, 0.0 }
0x1383   :  { %v6530_v47 = vmul.f32 1.442695, %v6513_v4  ;;  %vm6245_vm1 = vcmp.ge.f32.partialorder %v10227_v17, 0.0  ;;  %vm6247_vm2 = vcmp.ge.f32.partialorder %v10258_v55, 0.0 }
0x1384   :  { %v10252_v16 = vpop.eup %8644  ;;  %10735 = vst [vmem:[#allocation79_spill] sm:$0xff] %v10307_v43  ;;  %v10329_v49 = vand.u32 2147483647, %v10307_v43 }
0x1385   :  { %v10260_v33 = vpop.eup %8646  ;;  %v6352_v20 = vmul.f32 1.0614054, %v10252_v16 }
0x1386   :  { %v6354_v23 = vmul.f32 1.0614054, %v10260_v33  ;;  %v10278_v0 = vpop.eup %8648 }
0x1387   :  { %v6368_v42 = vadd.f32 -1.4531521, %v6352_v20  ;;  %v6295_v20 = vmul.f32 0.3275911, %v10276_v32  ;;  %v10292_v45 = vpop.eup %8650  ;;  %v6353_v54 = vmul.f32 1.0614054, %v10278_v0 }
0x1388   :  { %v6370_v22 = vadd.f32 -1.4531521, %v6354_v23  ;;  %v6355_v29 = vmul.f32 1.0614054, %v10292_v45 }
0x1389   :  { %v6384_v59 = vmul.f32 %v10252_v16, %v6368_v42  ;;  %v6502_v42 = vsub.f32 0.0, %v10233_v35  ;;  %v6311_v48 = vadd.f32 1.0, %v6295_v20  ;;  %v6515_v20 = vmul.f32 %v6499_v57, %v10207_v24  ;;  %v10314_v46 = vpop.eup %8652 }
0x138a   :  { %v6386_v62 = vmul.f32 %v10260_v33, %v6370_v22  ;;  %v6516_v22 = vmul.f32 %v6500_v30, %v6276_v1  ;;  %v6369_v1 = vadd.f32 -1.4531521, %v6353_v54  ;;  %v6199_v54 = vpop.f32.mrf.mxu0  ;;  %v10331_v9 = vpop.eup %8654 }
0x138b   :  { %v6400_v23 = vadd.f32 1.4214138, %v6384_v59  ;;  %8660 = vrcp.f32 %v6311_v48  ;;  %v6518_v30 = vmul.f32 %v6502_v42, %v10233_v35  ;;  %v6534_v42 = vmul.f32 1.442695, %v6515_v20  ;;  %v10338_v20 = vpop.eup %8656 }
0x138c   :  { %v6402_v19 = vadd.f32 1.4214138, %v6386_v62  ;;  %8662 = vpow2.f32 %v6532_v10  ;;  %v6536_v10 = vmul.f32 1.442695, %v6516_v22  ;;  %v6385_v22 = vmul.f32 %v10278_v0, %v6369_v1 }
0x138d   :  { %v6416_v61 = vmul.f32 %v10252_v16, %v6400_v23  ;;  %v10736_v23 = vmov -1.0   ;;  %v10336_v15 = vadd.f32 %v6199_v54, %v10164_v38 }
0x138e   :  { %v6418_v59 = vmul.f32 %v10260_v33, %v6402_v19  ;;  %v10322_v57 = vsel %vm6240_vm11, 1.0, %v10736_v23  ;;  %v6371_v19 = vadd.f32 -1.4531521, %v6355_v29  ;;  %8664 = vpow2.f32 %v6536_v10 }
0x138f   :  { %v6432_v62 = vadd.f32 -0.28449672, %v6416_v61  ;;  %v6356_v61 = vmul.f32 1.0614054, %v10314_v46  ;;  %v6358_v29 = vmul.f32 1.0614054, %v10331_v9  ;;  %8666 = vpow2.f32 %v6530_v47 }
0x1390   :  { %v6434_v24 = vadd.f32 -0.28449672, %v6418_v59  ;;  %v6387_v43 = vmul.f32 %v10292_v45, %v6371_v19  ;;  %v6296_v10 = vmul.f32 0.3275911, %v10329_v49  ;;  %v6401_v54 = vadd.f32 1.4214138, %v6385_v22 }
0x1391   :  { %v6448_v48 = vmul.f32 %v10252_v16, %v6432_v62  ;;  %v6372_v59 = vadd.f32 -1.4531521, %v6356_v61  ;;  %v6540_v62 = vmul.f32 1.442695, %v6518_v30  ;;  %v6374_v1 = vadd.f32 -1.4531521, %v6358_v29  ;;  %v8659_v61 = vpop.eup %8658 }
0x1392   :  { %v6450_v35 = vmul.f32 %v10260_v33, %v6434_v24  ;;  %v6357_v30 = vmul.f32 1.0614054, %v10338_v20  ;;  %v10351_v47 = vmul.f32 0.70710677, %v10336_v15  ;;  %v6403_v36 = vadd.f32 1.4214138, %v6387_v43 }
0x1393   :  { %v6464_v50 = vadd.f32 0.2548296, %v6448_v48  ;;  %v6388_v51 = vmul.f32 %v10314_v46, %v6372_v59  ;;  %v6503_v48 = vsub.f32 0.0, %v10276_v32  ;;  %8668 = vpow2.f32 %v6540_v62 }
0x1394   :  { %v6466_v4 = vadd.f32 0.2548296, %v6450_v35  ;;  %v6390_v19 = vmul.f32 %v10331_v9, %v6374_v1  ;;  %v6373_v59 = vadd.f32 -1.4531521, %v6357_v30  ;;  %8670 = vpow2.f32 %v6534_v42 }
0x1395   :  { %v6480_v24 = vmul.f32 %v10252_v16, %v6464_v50  ;;  %v6404_v35 = vadd.f32 1.4214138, %v6388_v51  ;;  %v6517_v16 = vmul.f32 %v6501_v58, %v10238_v40  ;;  %v6519_v40 = vmul.f32 %v6503_v48, %v10276_v32 }
0x1396   :  { %v6482_v50 = vmul.f32 %v10260_v33, %v6466_v4  ;;  %v6406_v22 = vadd.f32 1.4214138, %v6390_v19  ;;  %v6389_v51 = vmul.f32 %v10338_v20, %v6373_v59  ;;  %v6312_v58 = vadd.f32 1.0, %v6296_v10 }
0x1397   :  { %v6560_v29 = vmul.f32 %v8659_v61, %v6480_v24  ;;  %v6420_v3 = vmul.f32 %v10314_v46, %v6404_v35  ;;  %v6417_v62 = vmul.f32 %v10278_v0, %v6401_v54  ;;  %v6538_v1 = vmul.f32 1.442695, %v6517_v16 }
0x1398   :  { %v10354_v26 = vpop.eup %8660  ;;  %v6422_v43 = vmul.f32 %v10331_v9, %v6406_v22  ;;  %v6405_v42 = vadd.f32 1.4214138, %v6389_v51  ;;  %v10362_v61 = vand.u32 2147483647, %v10351_v47  ;;  %v6419_v19 = vmul.f32 %v10292_v45, %v6403_v36 }
0x1399   :  { %v8663_v33 = vpop.eup %8662  ;;  %v6436_v4 = vadd.f32 -0.28449672, %v6420_v3  ;;  %v6359_v30 = vmul.f32 1.0614054, %v10354_v26  ;;  %v6576_v35 = vsub.f32 1.0, %v6560_v29  ;;  %8672 = vrcp.f32 %v6312_v58 }
0x139a   :  { %v6562_v24 = vmul.f32 %v8663_v33, %v6482_v50  ;;  %v6438_v10 = vadd.f32 -0.28449672, %v6422_v43  ;;  %v6421_v54 = vmul.f32 %v10338_v20, %v6405_v42  ;;  %v6542_v3 = vmul.f32 1.442695, %v6519_v40  ;;  %v6148_v40 = vpop.f32.mrf.mxu1 }
0x139b   :  { %v6452_v32 = vmul.f32 %v10314_v46, %v6436_v4  ;;  %v6375_v48 = vadd.f32 -1.4531521, %v6359_v30  ;;  %v6433_v16 = vadd.f32 -0.28449672, %v6417_v62  ;;  %8674 = vpow2.f32 %v6538_v1  ;;  %v8665_v36 = vpop.eup %8664 }
0x139c   :  { %v6578_v22 = vsub.f32 1.0, %v6562_v24  ;;  %v6454_v51 = vmul.f32 %v10331_v9, %v6438_v10  ;;  %v6437_v33 = vadd.f32 -0.28449672, %v6421_v54  ;;  %v6298_v29 = vmul.f32 0.3275911, %v10362_v61  ;;  %v8667_v1 = vpop.eup %8666 }
0x139d   :  { %v6468_v59 = vadd.f32 0.2548296, %v6452_v32  ;;  %v6391_v50 = vmul.f32 %v10354_v26, %v6375_v48  ;;  %v6592_v4 = vmul.f32 %v6576_v35, %v10322_v57  ;;  %v6435_v30 = vadd.f32 -0.28449672, %v6419_v19 }
0x139e   :  { %v6258_v58 = vsel %vm6242_vm12, 1.0, %v10736_v23  ;;  %v6470_v62 = vadd.f32 0.2548296, %v6454_v51  ;;  %8676 = vpow2.f32 %v6542_v3  ;;  %v6449_v24 = vmul.f32 %v10278_v0, %v6433_v16 }
0x139f   :  { %v6484_v43 = vmul.f32 %v10314_v46, %v6468_v59  ;;  %v6407_v42 = vadd.f32 1.4214138, %v6391_v50  ;;  %v6453_v48 = vmul.f32 %v10338_v20, %v6437_v33  ;;  %v6594_v46 = vmul.f32 %v6578_v22, %v6258_v58 }
0x13a0   :  { %v8669_v35 = vpop.eup %8668  ;;  %v6486_v19 = vmul.f32 %v10331_v9, %v6470_v62  ;;  %v6314_v10 = vadd.f32 1.0, %v6298_v29  ;;  %v10381_v27 = vadd.f32 %v6148_v40, %v10171_v5  ;;  %v6608_v54 = vadd.f32 1.0, %v6592_v4  ;;  %v6201_v40 = vpop.f32.mrf.mxu0 }
0x13a1   :  { %v6564_v32 = vmul.f32 %v8665_v36, %v6484_v43  ;;  %v6423_v57 = vmul.f32 %v10354_v26, %v6407_v42  ;;  %v6451_v59 = vmul.f32 %v10292_v45, %v6435_v30  ;;  %v8671_v51 = vpop.eup %8670  ;;  %v6260_v16 = vsel %vm6244_vm13, 1.0, %v10736_v23 }
0x13a2   :  { %v6566_v33 = vmul.f32 %v8669_v35, %v6486_v19  ;;  %8678 = vrcp.f32 %v6314_v10  ;;  %v6465_v22 = vadd.f32 0.2548296, %v6449_v24  ;;  %v6212_v9 = vmul.f32 0.5, %v10210_v8 }
0x13a3   :  { %v6580_v3 = vsub.f32 1.0, %v6564_v32  ;;  %v6439_v50 = vadd.f32 -0.28449672, %v6423_v57  ;;  %v6469_v36 = vadd.f32 0.2548296, %v6453_v48  ;;  %v6610_v43 = vadd.f32 1.0, %v6594_v46 }
0x13a4   :  { %v6582_v4 = vsub.f32 1.0, %v6566_v33  ;;  %v10391_v42 = vmul.f32 0.70710677, %v10381_v27  ;;  %v6624_v28 = vmul.f32 %v6608_v54, %v10317_v53  ;;  %v6467_v58 = vadd.f32 0.2548296, %v6451_v59 }
0x13a5   :  { %v6596_v29 = vmul.f32 %v6580_v3, %v6260_v16  ;;  %v6455_v30 = vmul.f32 %v10354_v26, %v6439_v50  ;;  %v6262_v63 = vsel %vm6246_vm14, 1.0, %v10736_v23  ;;  %v5892_v24 = vadd.f32 %v10132_v56, %v10250_v12 }
0x13a6   :  { %v6210_v8 = vmul.f32 0.5, %v10180_v37  ;;  %v6214_v32 = vmul.f32 0.5, %v10213_v21  ;;  %v6598_v48 = vmul.f32 %v6582_v4, %v6262_v63  ;;  %v10399_v57 = vpop.eup %8672  ;;  %v6481_v35 = vmul.f32 %v10278_v0, %v6465_v22 }
0x13a7   :  { %v6612_v62 = vadd.f32 1.0, %v6596_v29  ;;  %v6485_v19 = vmul.f32 %v10338_v20, %v6469_v36  ;;  %v10404_v53 = vadd.f32 %v6201_v40, %v10174_v52  ;;  %v6471_v3 = vadd.f32 0.2548296, %v6455_v30  ;;  %v6150_v30 = vpop.f32.mrf.mxu1  ;;  %v6203_v40 = vpop.f32.mrf.mxu0 }
0x13a8   :  { %v8675_v10 = vpop.eup %8674  ;;  %v6626_v54 = vmul.f32 %v6610_v43, %v6210_v8  ;;  %v6614_v59 = vadd.f32 1.0, %v6598_v48  ;;  %v10407_v56 = vand.u32 2147483647, %v10391_v42  ;;  %v10411_v37 = vadd.f32 %v10134_v31, %v10255_v39 }
0x13a9   :  { %v6628_v46 = vmul.f32 %v6612_v62, %v6212_v9  ;;  %v10414_v21 = vmul.f32 %v6624_v28, %v10269_v60  ;;  %v6483_v0 = vmul.f32 %v10292_v45, %v6467_v58  ;;  %v6360_v16 = vmul.f32 1.0614054, %v10399_v57 }
0x13aa   :  { %v6630_v50 = vmul.f32 %v6614_v59, %v6214_v32  ;;  %v6297_v33 = vmul.f32 0.3275911, %v10407_v56  ;;  %v6561_v9 = vmul.f32 %v8667_v1, %v6481_v35  ;;  %v6565_v29 = vmul.f32 %v8675_v10, %v6485_v19  ;;  %v6152_v10 = vpop.f32.mrf.mxu1 }
0x13ab   :  { %v10418_v20 = vmul.f32 %v6628_v46, %v10311_v41  ;;  %v8677_v22 = vpop.eup %8676  ;;  %v10426_v60 = vmul.f32 0.70710677, %v10404_v53  ;;  %v10429_v45 = vmul.f32 %v6626_v54, %v10273_v14  ;;  %v6487_v7 = vmul.f32 %v10354_v26, %v6471_v3 }
0x13ac   :  { %v10431_v41 = vmul.f32 %v6630_v50, %v5892_v24  ;;  %v6313_v36 = vadd.f32 1.0, %v6297_v33  ;;  %v6257_v43 = vsel %vm6241_vm15, 1.0, %v10736_v23  ;;  %v6563_v1 = vmul.f32 %v8671_v51, %v6483_v0 }
0x13ad   :  { %v6656_v31 = vpack.c.bf16 %v10418_v20, %v10414_v21  ;;  %v10437_v4 = vand.u32 2147483647, %v10426_v60  ;;  %v6376_v14 = vadd.f32 -1.4531521, %v6360_v16  ;;  %v6577_v26 = vsub.f32 1.0, %v6561_v9 }
0x13ae   :  { %v6658_v28 = vpack.c.bf16 %v10431_v41, %v10429_v45  ;;  %8680 = vrcp.f32 %v6313_v36  ;;  %v6581_v62 = vsub.f32 1.0, %v6565_v29  ;;  %v6504_v63 = vsub.f32 0.0, %v10329_v49 }
0x13af   :  { %v10442_v58 = vpop.eup %8678  ;;  %v6299_v51 = vmul.f32 0.3275911, %v10437_v4  ;;  %v6567_v24 = vmul.f32 %v8677_v22, %v6487_v7  ;;  %v10448_v32 = vadd.f32 %v6150_v30, %v10161_v34  ;;  %v10451_v48 = vadd.f32 %v6203_v40, %v10164_v38 }
0x13b0   :  { %v6362_v8 = vmul.f32 1.0614054, %v10442_v58  ;;  %v6259_v17 = vsel %vm6243_vm0, 1.0, %v10736_v23  ;;  %v6579_v35 = vsub.f32 1.0, %v6563_v1  ;;  %v6261_v46 = vsel %vm6245_vm1, 1.0, %v10736_v23 }
0x13b1   :  { %v6315_v19 = vadd.f32 1.0, %v6299_v51  ;;  %v6392_v54 = vmul.f32 %v10399_v57, %v6376_v14  ;;  %v10460_v34 = vmul.f32 0.70710677, %v10448_v32  ;;  %v6597_v3 = vmul.f32 %v6581_v62, %v6261_v46 }
0x13b2   :  { %v6378_v59 = vadd.f32 -1.4531521, %v6362_v8  ;;  %v6520_v38 = vmul.f32 %v6504_v63, %v10329_v49  ;;  %v10464_v25 = vmul.f32 0.70710677, %v10451_v48  ;;  %v6593_v0 = vmul.f32 %v6577_v26, %v6257_v43 }
0x13b3   :  { %8682 = vrcp.f32 %v6315_v19  ;;  %v6583_v50 = vsub.f32 1.0, %v6567_v24  ;;  %v10467_v16 = vand.u32 2147483647, %v10460_v34  ;;  %v10470_v33 = vadd.f32 %v6152_v10, %v10171_v5 }
0x13b4   :  { %v6209_v22 = vmul.f32 0.5, %v10189_v44  ;;  %v6211_v9 = vmul.f32 0.5, %v10192_v11  ;;  %v6595_v29 = vmul.f32 %v6579_v35, %v6259_v17  ;;  %v6506_v7 = vsub.f32 0.0, %v10362_v61  ;;  %v6205_v11 = vpop.f32.mrf.mxu0 }
0x13b5   :  { %v6213_v49 = vmul.f32 0.5, %v10216_v6  ;;  %v6408_v36 = vadd.f32 1.4214138, %v6392_v54  ;;  %v6394_v1 = vmul.f32 %v10442_v58, %v6378_v59  ;;  %v6300_v43 = vmul.f32 0.3275911, %v10467_v16 }
0x13b6   :  { %v6613_v30 = vadd.f32 1.0, %v6597_v3  ;;  %v6263_v5 = vsel %vm6247_vm2, 1.0, %v10736_v23  ;;  %v10482_v40 = vand.u32 2147483647, %v10464_v25  ;;  %v10485_v44 = vmul.f32 0.70710677, %v10470_v33 }
0x13b7   :  { %v6609_v14 = vadd.f32 1.0, %v6593_v0  ;;  %v6599_v26 = vmul.f32 %v6583_v50, %v6263_v5  ;;  %v6544_v6 = vmul.f32 1.442695, %v6520_v38  ;;  %v6316_v62 = vadd.f32 1.0, %v6300_v43 }
0x13b8   :  { %v6611_v63 = vadd.f32 1.0, %v6595_v29  ;;  %v6215_v51 = vmul.f32 0.5, %v10241_v2  ;;  %v6522_v24 = vmul.f32 %v6506_v7, %v10362_v61  ;;  %v6302_v8 = vmul.f32 0.3275911, %v10482_v40 }
0x13b9   :  { %v6424_v55 = vmul.f32 %v10399_v57, %v6408_v36  ;;  %v6410_v17 = vadd.f32 1.4214138, %v6394_v1  ;;  %8684 = vrcp.f32 %v6316_v62  ;;  %v10492_v35 = vadd.f32 %v6205_v11, %v10174_v52 }
0x13ba   :  { %v6629_v19 = vmul.f32 %v6613_v30, %v6213_v49  ;;  %v6505_v10 = vsub.f32 0.0, %v10407_v56  ;;  %v6318_v54 = vadd.f32 1.0, %v6302_v8  ;;  %v10498_v59 = vand.u32 2147483647, %v10485_v44 }
0x13bb   :  { %v10494_v46 = vpop.eup %8680  ;;  %v6625_v2 = vmul.f32 %v6609_v14, %v6209_v22  ;;  %v6615_v61 = vadd.f32 1.0, %v6599_v26  ;;  %8686 = vpow2.f32 %v6544_v6  ;;  %v6627_v38 = vmul.f32 %v6611_v63, %v6211_v9 }
0x13bc   :  { %v6361_v3 = vmul.f32 1.0614054, %v10494_v46  ;;  %v6548_v0 = vmul.f32 1.442695, %v6522_v24  ;;  %8688 = vrcp.f32 %v6318_v54  ;;  %v6301_v52 = vmul.f32 0.3275911, %v10498_v59 }
0x13bd   :  { %v6440_v50 = vadd.f32 -0.28449672, %v6424_v55  ;;  %v6426_v29 = vmul.f32 %v10442_v58, %v6410_v17  ;;  %v10504_v49 = vmul.f32 0.70710677, %v10492_v35  ;;  %v6521_v36 = vmul.f32 %v6505_v10, %v10407_v56  ;;  %v10737_v24 = vld [vmem:[#allocation67_spill] sm:$0xff] }
0x13be   :  { %v6377_v7 = vadd.f32 -1.4531521, %v6361_v3  ;;  %v6507_v22 = vsub.f32 0.0, %v10437_v4  ;;  %v6317_v1 = vadd.f32 1.0, %v6301_v52  ;;  %v6645_v43 = vmul.f32 %v6629_v19, %v10411_v37  ;;  %v10738_v3 = vld [vmem:[#allocation78_spill] sm:$0xff] }
0x13bf   :  { %v6631_v9 = vmul.f32 %v6615_v61, %v6215_v51  ;;  %v6508_v11 = vsub.f32 0.0, %v10467_v16  ;;  %v10514_v14 = vand.u32 2147483647, %v10504_v49  ;;  %v6510_v6 = vsub.f32 0.0, %v10482_v40 }
0x13c0   :  { %v10509_v30 = vpop.eup %8682  ;;  %v6393_v5 = vmul.f32 %v10494_v46, %v6377_v7  ;;  %8690 = vrcp.f32 %v6317_v1  ;;  %v6641_v56 = vmul.f32 %v6625_v2, %v10282_v13  ;;  %v6456_v62 = vmul.f32 %v10399_v57, %v6440_v50 }
0x13c1   :  { %v6363_v26 = vmul.f32 1.0614054, %v10509_v30  ;;  %v6442_v37 = vadd.f32 -0.28449672, %v6426_v29  ;;  %v6303_v51 = vmul.f32 0.3275911, %v10514_v14  ;;  %v5894_v8 = vadd.f32 %v10737_v24, %v10264_v18 }
0x13c2   :  { %v6409_v63 = vadd.f32 1.4214138, %v6393_v5  ;;  %8692 = vpow2.f32 %v6548_v0  ;;  %v6657_v17 = vpack.c.bf16 %v6645_v43, %v6641_v56  ;;  %v6546_v10 = vmul.f32 1.442695, %v6521_v36  ;;  %v10740_v24 = vld [vmem:[#allocation68_spill] sm:$0xff] }
0x13c3   :  { %v6379_v55 = vadd.f32 -1.4531521, %v6363_v26  ;;  %v6524_v54 = vmul.f32 %v6508_v11, %v10467_v16  ;;  %v6319_v61 = vadd.f32 1.0, %v6303_v51  ;;  %v6523_v2 = vmul.f32 %v6507_v22, %v10437_v4 }
0x13c4   :  { %v6425_v19 = vmul.f32 %v10494_v46, %v6409_v63  ;;  %6892 = vmatprep.mubr.bf16.mxu1 %v6657_v17  ;;  %v6643_v52 = vmul.f32 %v6627_v38, %v10738_v3  ;;  %v6647_v50 = vmul.f32 %v6631_v9, %v5894_v8  ;;  %v6472_v29 = vadd.f32 0.2548296, %v6456_v62  ;;  %v10742_v3 = vld [vmem:[#allocation72_spill] sm:$0xff] }
0x13c5   :  { %v6395_v13 = vmul.f32 %v10509_v30, %v6379_v55  ;;  %v6458_v7 = vmul.f32 %v10442_v58, %v6442_v37  ;;  %v6526_v0 = vmul.f32 %v6510_v6, %v10482_v40  ;;  %8694 = vrcp.f32 %v6319_v61  ;;  %6893 = vmatmul.mubr.bf16.vlgmr.msra.gmra.mxu1 %v6656_v31  ;;  %v10741_v55 = vld [vmem:[#allocation69_spill] sm:$0xff] }
0x13c6   :  { %v10533_v16 = vpop.eup %8684  ;;  %v6441_v36 = vadd.f32 -0.28449672, %v6425_v19  ;;  %v6509_v4 = vsub.f32 0.0, %v10498_v59  ;;  %v6659_v22 = vpack.c.bf16 %v6647_v50, %v6643_v52  ;;  %v6552_v43 = vmul.f32 1.442695, %v6524_v54 }
0x13c7   :  { %v6411_v1 = vadd.f32 1.4214138, %v6395_v13  ;;  %v6364_v38 = vmul.f32 1.0614054, %v10533_v16  ;;  %8696 = vpow2.f32 %v6546_v10  ;;  %v6550_v40 = vmul.f32 1.442695, %v6523_v2 }
0x13c8   :  { %v8687_v9 = vpop.eup %8686  ;;  %6941 = vmatprep.mubr.bf16.mxu0 %v6659_v22  ;;  %v6488_v21 = vmul.f32 %v10399_v57, %v6472_v29  ;;  %v6474_v20 = vadd.f32 0.2548296, %v6458_v7  ;;  %v6556_v26 = vmul.f32 1.442695, %v6526_v0  ;;  %v6457_v6 = vmul.f32 %v10494_v46, %v6441_v36  ;;  %v10739_v57 = vld [vmem:[#allocation76_spill] sm:$0xff]  ;;  %v10744_v36 = vld [vmem:[#allocation79_spill] sm:$0xff] }
0x13c9   :  { %v6427_v5 = vmul.f32 %v10509_v30, %v6411_v1  ;;  %v10538_v11 = vpop.eup %8688  ;;  %v6380_v31 = vadd.f32 -1.4531521, %v6364_v38  ;;  %6942 = vmatmul.mubr.bf16.vlgmr.msra.gmra.mxu0 %v6658_v28  ;;  %v6525_v62 = vmul.f32 %v6509_v4, %v10498_v59  ;;  %8698 = vpow2.f32 %v6552_v43 }
0x13ca   :  { %v6366_v56 = vmul.f32 1.0614054, %v10538_v11  ;;  %v6511_v51 = vsub.f32 0.0, %v10514_v14  ;;  %v10551_v8 = vadd.f32 %v10740_v24, %v10739_v57  ;;  %v10555_v45 = vadd.f32 %v10741_v55, %v10250_v12 }
0x13cb   :  { %v6443_v37 = vadd.f32 -0.28449672, %v6427_v5  ;;  %v6396_v63 = vmul.f32 %v10533_v16, %v6380_v31  ;;  %8700 = vpow2.f32 %v6550_v40  ;;  %v6568_v17 = vmul.f32 %v8687_v9, %v6488_v21 }
0x13cc   :  { %v6382_v41 = vadd.f32 -1.4531521, %v6366_v56  ;;  %v6490_v59 = vmul.f32 %v10442_v58, %v6474_v20  ;;  %8702 = vpow2.f32 %v6556_v26  ;;  %v6473_v10 = vadd.f32 0.2548296, %v6457_v6  ;;  %v10743_v58 = vld [vmem:[#allocation77_spill] sm:$0xff] }
0x13cd   :  { %v10557_v28 = vpop.eup %8690  ;;  %v6412_v19 = vadd.f32 1.4214138, %v6396_v63  ;;  %v6554_v13 = vmul.f32 1.442695, %v6525_v62  ;;  %v10564_v52 = vadd.f32 %v10742_v3, %v10739_v57  ;;  %v6459_v50 = vmul.f32 %v10509_v30, %v6443_v37 }
0x13ce   :  { %v6398_v54 = vmul.f32 %v10538_v11, %v6382_v41  ;;  %v6365_v61 = vmul.f32 1.0614054, %v10557_v28  ;;  %v6527_v7 = vmul.f32 %v6511_v51, %v10514_v14  ;;  %v10570_v0 = vmul.f32 0.5, %v10743_v58 }
0x13cf   :  { %v8693_v2 = vpop.eup %8692  ;;  %v6428_v29 = vmul.f32 %v10533_v16, %v6412_v19  ;;  %vm6248_vm3 = vcmp.ge.f32.partialorder %v10744_v36, 0.0  ;;  %v6584_v22 = vsub.f32 1.0, %v6568_v17  ;;  %vm6250_vm4 = vcmp.ge.f32.partialorder %v10351_v47, 0.0 }
0x13d0   :  { %v6414_v1 = vadd.f32 1.4214138, %v6398_v54  ;;  %v6381_v4 = vadd.f32 -1.4531521, %v6365_v61  ;;  %v6570_v38 = vmul.f32 %v8693_v2, %v6490_v59  ;;  %v6489_v5 = vmul.f32 %v10494_v46, %v6473_v10 }
0x13d1   :  { %v6444_v43 = vadd.f32 -0.28449672, %v6428_v29  ;;  %8704 = vpow2.f32 %v6554_v13  ;;  %v6475_v21 = vadd.f32 0.2548296, %v6459_v50  ;;  %v6558_v26 = vmul.f32 1.442695, %v6527_v7 }
0x13d2   :  { %v10574_v9 = vpop.eup %8694  ;;  %v6430_v40 = vmul.f32 %v10538_v11, %v6414_v1  ;;  %v6397_v14 = vmul.f32 %v10557_v28, %v6381_v4  ;;  %v6264_v47 = vsel %vm6248_vm3, 1.0, %v10736_v23  ;;  %v6266_v6 = vsel %vm6250_vm4, 1.0, %v10736_v23 }
0x13d3   :  { %v6460_v20 = vmul.f32 %v10533_v16, %v6444_v43  ;;  %v6367_v31 = vmul.f32 1.0614054, %v10574_v9  ;;  %v6600_v37 = vmul.f32 %v6584_v22, %v6264_v47  ;;  %vm6249_vm5 = vcmp.ge.f32.partialorder %v10391_v42, 0.0 }
0x13d4   :  { %v6446_v56 = vadd.f32 -0.28449672, %v6430_v40  ;;  %v6413_v62 = vadd.f32 1.4214138, %v6397_v14  ;;  %v8697_v46 = vpop.eup %8696  ;;  %v6586_v57 = vsub.f32 1.0, %v6570_v38  ;;  %v6491_v17 = vmul.f32 %v10509_v30, %v6475_v21 }
0x13d5   :  { %v6476_v63 = vadd.f32 0.2548296, %v6460_v20  ;;  %v6383_v51 = vadd.f32 -1.4531521, %v6367_v31  ;;  %v6569_v24 = vmul.f32 %v8697_v46, %v6489_v5  ;;  %8706 = vpow2.f32 %v6558_v26 }
0x13d6   :  { %v6462_v55 = vmul.f32 %v10538_v11, %v6446_v56  ;;  %v6429_v41 = vmul.f32 %v10557_v28, %v6413_v62  ;;  %v8699_v10 = vpop.eup %8698  ;;  %v6265_v54 = vsel %vm6249_vm5, 1.0, %v10736_v23  ;;  %vm6251_vm6 = vcmp.ge.f32.partialorder %v10426_v60, 0.0 }
0x13d7   :  { %v6492_v59 = vmul.f32 %v10533_v16, %v6476_v63  ;;  %v6399_v19 = vmul.f32 %v10574_v9, %v6383_v51  ;;  %vm6252_vm7 = vcmp.ge.f32.partialorder %v10460_v34, 0.0  ;;  %vm6254_vm8 = vcmp.ge.f32.partialorder %v10464_v25, 0.0 }
0x13d8   :  { %v6478_v42 = vadd.f32 0.2548296, %v6462_v55  ;;  %v6445_v61 = vadd.f32 -0.28449672, %v6429_v41  ;;  %v8701_v13 = vpop.eup %8700  ;;  %v6602_v50 = vmul.f32 %v6586_v57, %v6266_v6  ;;  %v6585_v16 = vsub.f32 1.0, %v6569_v24 }
0x13d9   :  { %v6572_v2 = vmul.f32 %v8699_v10, %v6492_v59  ;;  %v6415_v3 = vadd.f32 1.4214138, %v6399_v19  ;;  %v8703_v30 = vpop.eup %8702  ;;  %v6616_v58 = vadd.f32 1.0, %v6600_v37  ;;  %v6571_v36 = vmul.f32 %v8701_v13, %v6491_v17  ;;  %v10745_v10 = vld [vmem:[#allocation73_spill] sm:$0xff] }
0x13da   :  { %v6494_v29 = vmul.f32 %v10538_v11, %v6478_v42  ;;  %v6461_v7 = vmul.f32 %v10557_v28, %v6445_v61  ;;  %v6220_v22 = vmul.f32 0.5, %v10448_v32  ;;  %v6268_v34 = vsel %vm6252_vm7, 1.0, %v10736_v23 }
0x13db   :  { %v6588_v1 = vsub.f32 1.0, %v6572_v2  ;;  %v6431_v4 = vmul.f32 %v10574_v9, %v6415_v3  ;;  %v6270_v40 = vsel %vm6254_vm8, 1.0, %v10736_v23  ;;  %vm6253_vm9 = vcmp.ge.f32.partialorder %v10485_v44, 0.0 }
0x13dc   :  { %v6574_v38 = vmul.f32 %v8703_v30, %v6494_v29  ;;  %v6477_v43 = vadd.f32 0.2548296, %v6461_v7  ;;  %v6618_v14 = vadd.f32 1.0, %v6602_v50  ;;  %v6601_v21 = vmul.f32 %v6585_v16, %v6265_v54 }
0x13dd   :  { %v6604_v5 = vmul.f32 %v6588_v1, %v6268_v34  ;;  %v6447_v11 = vadd.f32 -0.28449672, %v6431_v4  ;;  %v6632_v32 = vmul.f32 %v6616_v58, %v10570_v0  ;;  %v6587_v47 = vsub.f32 1.0, %v6571_v36 }
0x13de   :  { %v6590_v20 = vsub.f32 1.0, %v6574_v38  ;;  %v6493_v31 = vmul.f32 %v10557_v28, %v6477_v43  ;;  %v8705_v26 = vpop.eup %8704  ;;  %v6218_v62 = vmul.f32 0.5, %v10336_v15  ;;  %v6267_v25 = vsel %vm6251_vm6, 1.0, %v10736_v23  ;;  %v10748_v43 = vld [vmem:[#allocation71_spill] sm:$0xff] }
0x13df   :  { %v6620_v6 = vadd.f32 1.0, %v6604_v5  ;;  %v6463_v56 = vmul.f32 %v10574_v9, %v6447_v11  ;;  %v6222_v51 = vmul.f32 0.5, %v10451_v48  ;;  %v6269_v28 = vsel %vm6253_vm9, 1.0, %v10736_v23 }
0x13e0   :  { %v6606_v46 = vmul.f32 %v6590_v20, %v6270_v40  ;;  %v6573_v37 = vmul.f32 %v8705_v26, %v6493_v31  ;;  %v6634_v57 = vmul.f32 %v6618_v14, %v6218_v62  ;;  %v6617_v24 = vadd.f32 1.0, %v6601_v21  ;;  %v10749_v40 = vld [vmem:[#allocation75_spill] sm:$0xff] }
0x13e1   :  { %v6636_v63 = vmul.f32 %v6620_v6, %v6220_v22  ;;  %v6479_v0 = vadd.f32 0.2548296, %v6463_v56  ;;  %v6648_v15 = vmul.f32 %v6632_v32, %v10551_v8  ;;  %v6603_v17 = vmul.f32 %v6587_v47, %v6267_v25 }
0x13e2   :  { %v6622_v55 = vadd.f32 1.0, %v6606_v46  ;;  %v6589_v41 = vsub.f32 1.0, %v6573_v37  ;;  %v8707_v19 = vpop.eup %8706  ;;  %v5902_v48 = vadd.f32 %v10745_v10, %v10250_v12  ;;  %v6217_v54 = vmul.f32 0.5, %v10381_v27  ;;  %v10747_v27 = vld [vmem:[#allocation74_spill] sm:$0xff] }
0x13e3   :  { %v6652_v60 = vmul.f32 %v6636_v63, %v10564_v52  ;;  %v6495_v59 = vmul.f32 %v10574_v9, %v6479_v0  ;;  %v6221_v61 = vmul.f32 0.5, %v10470_v33  ;;  %vm6255_vm10 = vcmp.ge.f32.partialorder %v10504_v49, 0.0  ;;  %v10746_v9 = vld [vmem:[#allocation70_spill] sm:$0xff] }
0x13e4   :  { %v6638_v44 = vmul.f32 %v6622_v55, %v6222_v51  ;;  %v6605_v42 = vmul.f32 %v6589_v41, %v6269_v28  ;;  %v6633_v8 = vmul.f32 %v6617_v24, %v6217_v54  ;;  %v6650_v52 = vmul.f32 %v6634_v57, %v10555_v45 }
0x13e5   :  { %v6575_v13 = vmul.f32 %v8707_v19, %v6495_v59  ;;  %v6660_v2 = vpack.c.bf16 %v6652_v60, %v6648_v15  ;;  %v5847_v50 = vadd.f32 %v10746_v9, %v10255_v39  ;;  %v6619_v16 = vadd.f32 1.0, %v6603_v17 }
0x13e6   :  { %v6621_v3 = vadd.f32 1.0, %v6605_v42  ;;  %v6654_v30 = vmul.f32 %v6638_v44, %v5902_v48  ;;  %v5851_v29 = vadd.f32 %v10747_v27, %v10255_v39  ;;  %v6271_v33 = vsel %vm6255_vm10, 1.0, %v10736_v23 }
0x13e7   :  { %v6591_v12 = vsub.f32 1.0, %v6575_v13  ;;  %v6219_v49 = vmul.f32 0.5, %v10404_v53  ;;  %v6649_v1 = vmul.f32 %v6633_v8, %v5847_v50  ;;  %v6223_v45 = vmul.f32 0.5, %v10492_v35 }
0x13e8   :  { %v6637_v7 = vmul.f32 %v6621_v3, %v6221_v61  ;;  %v6662_v58 = vpack.c.bf16 %v6654_v30, %v6650_v52  ;;  %v5900_v5 = vadd.f32 %v10748_v43, %v10264_v18  ;;  %v5904_v39 = vadd.f32 %v10749_v40, %v10264_v18 }
0x13e9   :  { %v6607_v36 = vmul.f32 %v6591_v12, %v6271_v33  ;;  %v6635_v22 = vmul.f32 %v6619_v16, %v6219_v49 }
0x13ea   :  { %v6653_v4 = vmul.f32 %v6637_v7, %v5851_v29 }
0x13eb   :  { %v6623_v34 = vadd.f32 1.0, %v6607_v36  ;;  %v6651_v23 = vmul.f32 %v6635_v22, %v5900_v5 }
0x13ec   :  { %v6661_v38 = vpack.c.bf16 %v6653_v4, %v6649_v1 }
0x13ed   :  { %v6639_v11 = vmul.f32 %v6623_v34, %v6223_v45 }
0x13ee   :  { %6900 = vmatprep.mubr.bf16.mxu1 %v6661_v38 }
0x13ef   :  { %v6655_v14 = vmul.f32 %v6639_v11, %v5904_v39  ;;  %6901 = vmatmul.mubr.bf16.gmra.mxu1 %v6660_v2 }
0x13f1   :  { %v6663_v53 = vpack.c.bf16 %v6655_v14, %v6651_v23 }
0x13f3   :  { %6949 = vmatprep.mubr.bf16.mxu0 %v6663_v53 }
0x13f4   :  { %6950 = vmatmul.mubr.bf16.gmra.mxu0 %v6662_v58 }
0x13f5   :  { %9250 = shalt.err (!%p9247_p8)
}
0x13f6   :  { %s10750_s27 = sld [smem:[#allocation92_spill]]  ;;  %v8718_v35 = vld [vmem:[#allocation7 + $0x10] sm:$0x3]  ;;  %v10751_v21 = vld [vmem:[#allocation62_spill] sm:$0xff]  ;;  %v10752_v0 = vld [vmem:[#allocation63_spill] sm:$0xff]  ;;  %s9348_s14 = smov [#allocation44]  }
0x13f7   :  { %v6667_v20 = vrot.slane %v8718_v35, %v10751_v21  ;;  %v10753_v41 = vld [vmem:[#allocation64_spill] sm:$0xff]  ;;  %v10754_v52 = vld [vmem:[#allocation65_spill] sm:$0xff]  ;;  %s6985_s4 = sshll.u32 %s9348_s14, 4  ;;  %v10755_v16 = vld [vmem:[#allocation66_spill] sm:$0xff]  ;;  %s6986_s4 = int_to_ptr.vmem [resolvable:$true] %s6985_s4 }
0x13f8   :  { %s9259_s15 = scalar_lea.vmem %s6986_s4, 512  ;;  %p9264_p10 = scmp.lt.s32.totalorder %s6986_s4, %s6986_s4 }
0x13f9   :  { %p9260_p9 = scmp.ne.s32.totalorder %s6986_s4, %s9259_s15  ;;  %p9265_p11 = scmp.lt.s32.totalorder %s9259_s15, %s9259_s15 }
0x13fb   :  { %p9266_p12 = por %p9265_p11, %p9264_p10 }
0x13fc   :  { %6979 = dma.vmem_to_hbm [thread:$0]  %s6974_s25, 256, %s10750_s27, [#allocation4], %s9313_s5, %s9313_s5, %s9314_s28  }
0x13fd   :  { %p9267_p13 = pnand %p9266_p12, %p9260_p9 }
0x1485   :  { %v7682_v18 = vpop.f32.mrf.mxu1 }
0x1487   :  { %v7683_v31 = vpop.f32.mrf.mxu1 }
0x1488   :  { %v7684_v26 = vadd.f32 %v7683_v31, %v7682_v18 }
0x1489   :  { %v7710_v32 = vpop.f32.mrf.mxu0  ;;  %v7685_v47 = vpop.f32.mrf.mxu1 }
0x148a   :  { %v6895_v6 = vadd.f32 %v7684_v26, %v6667_v20 }
0x148b   :  { %v7711_v56 = vpop.f32.mrf.mxu0  ;;  %v7686_v62 = vpop.f32.mrf.mxu1 }
0x148c   :  { %v7712_v25 = vadd.f32 %v7711_v56, %v7710_v32  ;;  %v7687_v46 = vadd.f32 %v7686_v62, %v7685_v47 }
0x148d   :  { %v7713_v37 = vpop.f32.mrf.mxu0 }
0x148e   :  { %v6944_v63 = vadd.f32 %v7712_v25, %v6895_v6  ;;  %v6898_v51 = vadd.f32 %v7687_v46, %v6667_v20 }
0x148f   :  { %v7714_v28 = vpop.f32.mrf.mxu0 }
0x1490   :  { %v6958_v57 = vadd.f32 %v6944_v63, %v10752_v0  ;;  %v7715_v24 = vadd.f32 %v7714_v28, %v7713_v37 }
0x1492   :  { %6964 = vst [vmem:[#allocation44] sm:$0xff] %v6958_v57  ;;  %v6947_v55 = vadd.f32 %v7715_v24, %v6898_v51 }
0x1494   :  { %v6959_v15 = vadd.f32 %v6947_v55, %v10753_v41 }
0x1496   :  { %6965 = vst [vmem:[#allocation44 + $0x8] sm:$0xff] %v6959_v15 }
0x14af   :  { %v7688_v17 = vpop.f32.mrf.mxu1 }
0x14b1   :  { %v7689_v60 = vpop.f32.mrf.mxu1 }
0x14b2   :  { %v7690_v59 = vadd.f32 %v7689_v60, %v7688_v17 }
0x14b3   :  { %v7691_v19 = vpop.f32.mrf.mxu1 }
0x14b4   :  { %v7716_v10 = vpop.f32.mrf.mxu0  ;;  %v6903_v48 = vadd.f32 %v7690_v59, %v6667_v20 }
0x14b5   :  { %v7692_v54 = vpop.f32.mrf.mxu1 }
0x14b6   :  { %v7717_v44 = vpop.f32.mrf.mxu0  ;;  %v7693_v42 = vadd.f32 %v7692_v54, %v7691_v19 }
0x14b7   :  { %v7718_v61 = vadd.f32 %v7717_v44, %v7716_v10 }
0x14b8   :  { %v7719_v13 = vpop.f32.mrf.mxu0  ;;  %v6906_v8 = vadd.f32 %v7693_v42, %v6667_v20 }
0x14b9   :  { %v6952_v2 = vadd.f32 %v7718_v61, %v6903_v48 }
0x14ba   :  { %v7720_v3 = vpop.f32.mrf.mxu0 }
0x14bb   :  { %v6960_v30 = vadd.f32 %v6952_v2, %v10754_v52  ;;  %v7721_v9 = vadd.f32 %v7720_v3, %v7719_v13 }
0x14bd   :  { %6966 = vst [vmem:[#allocation44 + $0x10] sm:$0xff] %v6960_v30  ;;  %v6955_v50 = vadd.f32 %v7721_v9, %v6906_v8 }
0x14bf   :  { %v6961_v12 = vadd.f32 %v6955_v50, %v10755_v16 }
0x14c1   :  { %6967 = vst [vmem:[#allocation44 + $0x18] sm:$0xff] %v6961_v12 }
0x14c2   :  { %9270 = shalt.err (!%p9267_p13)
}
0x14c3   :  { %s10756_s3 = sld [smem:[#allocation93_spill]] }
0x14c9   :  { %6991 = dma.vmem_to_hbm [thread:$0]  %s6986_s4, 512, %s10756_s3, [#allocation45], %s9313_s5, %s9313_s5, %s9314_s28  }
0x14ca   :  { %9307 = dma.done.wait [#allocation4], 256  }
0x14cb   :  { %9308 = vsyncadd [#allocation4], 4294967040 }
0x14cc   :  { %9309 = dma.done.wait [#allocation45], 512  }
0x14cd   :  { %9310 = vsyncadd [#allocation45], 4294966784 }
0x14ce   :  { %6998 = vsyncpa [#allocation3], 1 }
0x14cf   :  { %6999 = vsyncpa [#allocation6], 1 }
0x14d0   :  { %7000 = vsyncpa [#allocation9], 1 }
0x14d1   :  { %7001 = vsyncpa [#allocation12], 1 }
0x14d2   :  { %7002 = vsyncpa [#allocation15], 1 }
0x14d3   :  { %7003 = vsyncpa [#allocation18], 1 }
0x14d4   :  { %7004 = vsyncpa [#allocation21], 1 }
0x14d5   :  { %7005 = vsyncpa [#allocation24], 1 }
0x14d6   :  { %7006 = vsyncpa [#allocation27], 1 }
0x14d7   :  { %7007 = vsyncpa [#allocation30], 1 }
0x14d8   :  { %7008 = vsyncpa [#allocation33], 1 }
0x14d9   :  { %7009 = vsyncpa [#allocation36], 1 }
0x14da   :  { %7010 = vsyncpa [#allocation39], 1 }
0x14db   :  { %7011 = vsyncpa [#allocation42], 1 }
0x14dc   :  { %7012 = vsyncpa [#allocation4], 1 }
0x14dd   :  { %7013 = vsyncpa [#allocation45], 1 }

</bundles_post_ra>
